<compile_context>
chip_gen: v7x
topology: tpu7x:2x2x1
jax: 0.10.0
libtpu: 0.0.40
codegen_flags: <defaults>
</compile_context>

<pallas_src>
import jax
import jax.numpy as jnp
from jax.experimental import pallas as pl
from jax.experimental.pallas import tpu as pltpu


def _make_kernel(H, W):
    HW = H * W
    inv_hw = 1.0 / float(HW)

    def kernel(x_ref, w1_ref, b1_ref, w2_ref, b2_ref, wsp_ref, bsp_ref,
               o_ref, pad_ref, mflat_ref, sa2d_ref, saflat_ref):
        x = x_ref[...]                        # (Bt, C, HW) f32, lane-dense
        Bt, C, _ = x.shape
        Cr = w1_ref.shape[0]
        inv_c = 1.0 / float(C)

        # ---------------- channel attention (VPU, batched over Bt) ----------
        # GAP kept as (Bt, C, 1): C stays in the sublane dim, which is exactly
        # the layout needed to broadcast the per-channel gate at the end.
        pooled = jnp.sum(x, axis=2, keepdims=True) * inv_hw        # (Bt, C, 1)
        ca_pre = b2_ref[...]                                       # (C, 1)
        for r in range(Cr):                    # Cr = C//16 (tiny, unrolled)
            hr = jnp.sum(pooled * w1_ref[r], axis=1, keepdims=True)  # (Bt,1,1)
            hr = jnp.maximum(hr + b1_ref[r], 0.0)
            ca_pre = ca_pre + hr * w2_ref[r]                       # (Bt, C, 1)
        ca = jax.nn.sigmoid(ca_pre)                                # (Bt, C, 1)

        # ---------------- spatial attention ---------------------------------
        # channel mean / max on the lane-dense layout (sum * 1/C, one pass)
        avg_f = jnp.sum(x, axis=1, keepdims=True) * inv_c          # (Bt, 1, HW)
        max_f = jnp.max(x, axis=1, keepdims=True)                  # (Bt, 1, HW)
        mflat_ref[0] = avg_f
        mflat_ref[1] = max_f

        # Build zero-padded 2-D maps in scratch (row-wise copies; avoids
        # minor-dim value reshapes).  Border stays zero, interior overwritten.
        pad_ref[...] = jnp.zeros(pad_ref.shape, pad_ref.dtype)
        for r in range(H):
            src = pl.ds(r * W, W)
            pad_ref[0, :, 3 + r, pl.ds(3, W)] = mflat_ref[0, :, 0, src]
            pad_ref[1, :, 3 + r, pl.ds(3, W)] = mflat_ref[1, :, 0, src]

        # 7x7 conv, fully unrolled.  Weights hoisted out of the tap loop;
        # 7 independent row-accumulator pairs, tree-summed at the end.
        w_avg = [wsp_ref[0, k] for k in range(49)]
        w_max = [wsp_ref[1, k] for k in range(49)]

        row_parts = []
        for kh in range(7):
            base = kh * 7
            acc_a = None
            acc_m = None
            for kw in range(7):
                ta = w_avg[base + kw] * pad_ref[0, :, pl.ds(kh, H), pl.ds(kw, W)]
                tm = w_max[base + kw] * pad_ref[1, :, pl.ds(kh, H), pl.ds(kw, W)]
                acc_a = ta if acc_a is None else acc_a + ta
                acc_m = tm if acc_m is None else acc_m + tm
            row_parts.append(acc_a + acc_m)
        while len(row_parts) > 1:              # tree sum of independent rows
            nxt = [row_parts[i] + row_parts[i + 1]
                   for i in range(0, len(row_parts) - 1, 2)]
            if len(row_parts) % 2:
                nxt.append(row_parts[-1])
            row_parts = nxt
        sa2d = jax.nn.sigmoid(row_parts[0] + bsp_ref[0])           # (Bt, H, W)

        # Flatten sa back to (Bt, 1, HW) via scratch (row-wise copies).
        sa2d_ref[...] = sa2d
        for r in range(H):
            saflat_ref[:, 0, pl.ds(r * W, W)] = sa2d_ref[:, r, :]
        sa = saflat_ref[...]                                       # (Bt, 1, HW)

        # ---------------- gate & lane-dense store ----------------------------
        o_ref[...] = x * ca * sa

    return kernel


def _pick_batch_tile(B):
    """Batch-tile size: amortize per-step overhead but keep >=2 grid steps
    (v7x has 2 TensorCores sharded over parallel grid axes)."""
    if B <= 1:
        return 1
    bt = min(4, max(1, B // 2))
    while B % bt:
        bt -= 1
    return bt


def sa_c2f(x, w1, b1, w2, b2, wsp, bsp):
    """x: (B,C,H,W); w1: (C//16,C); b1: (C//16,); w2: (C,C//16); b2: (C,);
    wsp: (1,2,7,7); bsp: (1,).  Returns (B,C,H,W)."""
    B, C, H, W = x.shape
    Cr = w1.shape[0]
    HW = H * W
    bt = _pick_batch_tile(B)
    grid = (B // bt,)

    x_flat = x.reshape(B, C, HW)
    w1r = w1.reshape(Cr, C, 1)                     # rows of W1 (C in sublanes)
    w2c = jnp.transpose(w2).reshape(Cr, C, 1)      # columns of W2
    b1s = b1.reshape(Cr)                           # SMEM scalars
    b2c = b2.reshape(C, 1)
    wsp2 = wsp.reshape(2, 49)                      # SMEM scalars (7x7 taps)
    bsp1 = bsp.reshape(1)

    kernel = _make_kernel(H, W)
    out_flat = pl.pallas_call(
        kernel,
        out_shape=jax.ShapeDtypeStruct((B, C, HW), x.dtype),
        grid=grid,
        in_specs=[
            pl.BlockSpec((bt, C, HW), lambda i: (i, 0, 0)),        # x (lane-dense)
            pl.BlockSpec((Cr, C, 1), lambda i: (0, 0, 0)),         # W1 rows
            pl.BlockSpec(memory_space=pltpu.MemorySpace.SMEM),     # b1
            pl.BlockSpec((Cr, C, 1), lambda i: (0, 0, 0)),         # W2 cols
            pl.BlockSpec((C, 1), lambda i: (0, 0)),                # b2
            pl.BlockSpec(memory_space=pltpu.MemorySpace.SMEM),     # wsp (2,49)
            pl.BlockSpec(memory_space=pltpu.MemorySpace.SMEM),     # bsp (1,)
        ],
        out_specs=pl.BlockSpec((bt, C, HW), lambda i: (i, 0, 0)),
        scratch_shapes=[
            pltpu.VMEM((2, bt, H + 6, W + 6), jnp.float32),   # padded avg/max maps
            pltpu.VMEM((2, bt, 1, HW), jnp.float32),          # flat avg/max maps
            pltpu.VMEM((bt, H, W), jnp.float32),              # sa (2-D)
            pltpu.VMEM((bt, 1, HW), jnp.float32),             # sa (flat)
        ],
        compiler_params=pltpu.CompilerParams(
            dimension_semantics=("parallel",)),
    )(x_flat, w1r, b1s, w2c, b2c, wsp2, bsp1)
    return out_flat.reshape(B, C, H, W)


def sa_c2f_ref(x, w1, b1, w2, b2, wsp_full, bsp):
    """Pure-JAX reference mirroring the PyTorch forward."""
    pooled = jnp.mean(x, axis=(2, 3), keepdims=True)                    # (B,C,1,1)
    h = jnp.einsum('oc,bcij->boij', w1, pooled) + b1.reshape(1, -1, 1, 1)
    h = jnp.maximum(h, 0.0)
    ca = jax.nn.sigmoid(jnp.einsum('oc,bcij->boij', w2, h)
                        + b2.reshape(1, -1, 1, 1))                       # (B,C,1,1)
    avg_out = jnp.mean(x, axis=1, keepdims=True)
    max_out = jnp.max(x, axis=1, keepdims=True)
    s_in = jnp.concatenate([avg_out, max_out], axis=1)                   # (B,2,H,W)
    sa = jax.lax.conv_general_dilated(
        s_in, wsp_full, window_strides=(1, 1), padding='SAME',
        dimension_numbers=('NCHW', 'OIHW', 'NCHW')) + bsp
    sa = jax.nn.sigmoid(sa)                                              # (B,1,H,W)
    return x * ca * sa


if __name__ == "__main__":
    B, C, H, W = 2, 32, 16, 16          # channels // 16 = 2 hidden units
    Cr = C // 16

    key = jax.random.PRNGKey(0)
    kx, k1, kb1, k2, kb2, ks, kbs = jax.random.split(key, 7)

    x = jax.random.normal(kx, (B, C, H, W), jnp.float32)

    # Parameters (PyTorch shapes with 1x1 kernels squeezed)
    w1 = 0.1 * jax.random.normal(k1, (Cr, C), jnp.float32)       # Conv2d(C, C//16, 1)
    b1 = 0.1 * jax.random.normal(kb1, (Cr,), jnp.float32)
    w2 = 0.1 * jax.random.normal(k2, (C, Cr), jnp.float32)       # Conv2d(C//16, C, 1)
    b2 = 0.1 * jax.random.normal(kb2, (C,), jnp.float32)
    wsp_full = 0.1 * jax.random.normal(ks, (1, 2, 7, 7), jnp.float32)  # Conv2d(2,1,7,pad=3)
    bsp = 0.1 * jax.random.normal(kbs, (1,), jnp.float32)

    out = sa_c2f(x, w1, b1, w2, b2, wsp_full, bsp)
    out = jax.block_until_ready(out)

    ref = sa_c2f_ref(x, w1, b1, w2, b2, wsp_full, bsp)
    assert out.shape == (B, C, H, W)
    assert jnp.allclose(out, ref, atol=1e-4, rtol=1e-4), \
        float(jnp.max(jnp.abs(out - ref)))

    print("KERNEL_OK")
</pallas_src>

<mosaic_0001>
module attributes {stable_mosaic.version = 11 : i64} {
  func.func @kernel(%arg0: i32, %arg1: memref<1x32x256xf32, #tpu.memory_space<vmem>>, %arg2: memref<2x32x1xf32, #tpu.memory_space<vmem>>, %arg3: memref<2xf32, #tpu.memory_space<smem>>, %arg4: memref<2x32x1xf32, #tpu.memory_space<vmem>>, %arg5: memref<32x1xf32, #tpu.memory_space<vmem>>, %arg6: memref<2x49xf32, #tpu.memory_space<smem>>, %arg7: memref<1xf32, #tpu.memory_space<smem>>, %arg8: memref<1x32x256xf32, #tpu.memory_space<vmem>>, %arg9: memref<2x1x22x22xf32, #tpu.memory_space<vmem>>, %arg10: memref<2x1x1x256xf32, #tpu.memory_space<vmem>>, %arg11: memref<1x16x16xf32, #tpu.memory_space<vmem>>, %arg12: memref<1x1x256xf32, #tpu.memory_space<vmem>>) attributes {dimension_semantics = [#tpu.dimension_semantics<parallel>], iteration_bounds = array<i64: 2>, scalar_prefetch = 0 : i64, scratch_operands = 4 : i64, tpu.core_type = #tpu.core_type<tc>, window_params = [{transform_indices = @transform_0, window_bounds = array<i64: 1, 32, 256>}, {pipeline_mode = #tpu.pipeline_mode<synchronous>, transform_indices = @transform_1, window_bounds = array<i64: 2, 32, 1>}, {transform_indices = @transform_2, window_bounds = array<i64: 2>}, {pipeline_mode = #tpu.pipeline_mode<synchronous>, transform_indices = @transform_3, window_bounds = array<i64: 2, 32, 1>}, {pipeline_mode = #tpu.pipeline_mode<synchronous>, transform_indices = @transform_4, window_bounds = array<i64: 32, 1>}, {transform_indices = @transform_5, window_bounds = array<i64: 2, 49>}, {transform_indices = @transform_6, window_bounds = array<i64: 1>}, {transform_indices = @transform_7, window_bounds = array<i64: 1, 32, 256>}]} {
    %c0 = arith.constant 0 : index
    %c0_0 = arith.constant 0 : index
    %c0_1 = arith.constant 0 : index
    %0 = vector.load %arg1[%c0, %c0_0, %c0_1] : memref<1x32x256xf32, #tpu.memory_space<vmem>>, vector<1x32x256xf32>
    %cst = arith.constant dense<0.000000e+00> : vector<1x32xf32>
    %1 = vector.multi_reduction <add>, %0, %cst [2] : vector<1x32x256xf32> to vector<1x32xf32>
    %2 = vector.shape_cast %1 : vector<1x32xf32> to vector<1x32x1xf32>
    %cst_2 = arith.constant 3.906250e-03 : f32
    %3 = vector.broadcast %cst_2 : f32 to vector<1x32x1xf32>
    %4 = arith.mulf %2, %3 : vector<1x32x1xf32>
    %c0_3 = arith.constant 0 : index
    %c0_4 = arith.constant 0 : index
    %5 = vector.load %arg5[%c0_3, %c0_4] : memref<32x1xf32, #tpu.memory_space<vmem>>, vector<32x1xf32>
    %c0_5 = arith.constant 0 : index
    %c0_6 = arith.constant 0 : index
    %c0_7 = arith.constant 0 : index
    %6 = vector.load %arg2[%c0_5, %c0_6, %c0_7] : memref<2x32x1xf32, #tpu.memory_space<vmem>>, vector<1x32x1xf32>
    %7 = vector.shape_cast %6 : vector<1x32x1xf32> to vector<32x1xf32>
    %8 = vector.shape_cast %7 : vector<32x1xf32> to vector<1x32x1xf32>
    %9 = arith.mulf %4, %8 : vector<1x32x1xf32>
    %cst_8 = arith.constant dense<0.000000e+00> : vector<1x1xf32>
    %10 = vector.multi_reduction <add>, %9, %cst_8 [1] : vector<1x32x1xf32> to vector<1x1xf32>
    %11 = vector.shape_cast %10 : vector<1x1xf32> to vector<1x1x1xf32>
    %c0_9 = arith.constant 0 : index
    %12 = memref.load %arg3[%c0_9] : memref<2xf32, #tpu.memory_space<smem>>
    %13 = vector.broadcast %12 : f32 to vector<1x1x1xf32>
    %14 = arith.addf %11, %13 : vector<1x1x1xf32>
    %cst_10 = arith.constant 0.000000e+00 : f32
    %15 = vector.broadcast %cst_10 : f32 to vector<1x1x1xf32>
    %16 = arith.maximumf %14, %15 : vector<1x1x1xf32>
    %c0_11 = arith.constant 0 : index
    %c0_12 = arith.constant 0 : index
    %c0_13 = arith.constant 0 : index
    %17 = vector.load %arg4[%c0_11, %c0_12, %c0_13] : memref<2x32x1xf32, #tpu.memory_space<vmem>>, vector<1x32x1xf32>
    %18 = vector.shape_cast %17 : vector<1x32x1xf32> to vector<32x1xf32>
    %19 = vector.shape_cast %18 : vector<32x1xf32> to vector<1x32x1xf32>
    %20 = vector.broadcast %16 : vector<1x1x1xf32> to vector<1x32x1xf32>
    %21 = arith.mulf %20, %19 : vector<1x32x1xf32>
    %22 = vector.shape_cast %5 : vector<32x1xf32> to vector<1x32x1xf32>
    %23 = arith.addf %22, %21 : vector<1x32x1xf32>
    %c1 = arith.constant 1 : index
    %c0_14 = arith.constant 0 : index
    %c0_15 = arith.constant 0 : index
    %24 = vector.load %arg2[%c1, %c0_14, %c0_15] : memref<2x32x1xf32, #tpu.memory_space<vmem>>, vector<1x32x1xf32>
    %25 = vector.shape_cast %24 : vector<1x32x1xf32> to vector<32x1xf32>
    %26 = vector.shape_cast %25 : vector<32x1xf32> to vector<1x32x1xf32>
    %27 = arith.mulf %4, %26 : vector<1x32x1xf32>
    %cst_16 = arith.constant dense<0.000000e+00> : vector<1x1xf32>
    %28 = vector.multi_reduction <add>, %27, %cst_16 [1] : vector<1x32x1xf32> to vector<1x1xf32>
    %29 = vector.shape_cast %28 : vector<1x1xf32> to vector<1x1x1xf32>
    %c1_17 = arith.constant 1 : index
    %30 = memref.load %arg3[%c1_17] : memref<2xf32, #tpu.memory_space<smem>>
    %31 = vector.broadcast %30 : f32 to vector<1x1x1xf32>
    %32 = arith.addf %29, %31 : vector<1x1x1xf32>
    %cst_18 = arith.constant 0.000000e+00 : f32
    %33 = vector.broadcast %cst_18 : f32 to vector<1x1x1xf32>
    %34 = arith.maximumf %32, %33 : vector<1x1x1xf32>
    %c1_19 = arith.constant 1 : index
    %c0_20 = arith.constant 0 : index
    %c0_21 = arith.constant 0 : index
    %35 = vector.load %arg4[%c1_19, %c0_20, %c0_21] : memref<2x32x1xf32, #tpu.memory_space<vmem>>, vector<1x32x1xf32>
    %36 = vector.shape_cast %35 : vector<1x32x1xf32> to vector<32x1xf32>
    %37 = vector.shape_cast %36 : vector<32x1xf32> to vector<1x32x1xf32>
    %38 = vector.broadcast %34 : vector<1x1x1xf32> to vector<1x32x1xf32>
    %39 = arith.mulf %38, %37 : vector<1x32x1xf32>
    %40 = arith.addf %23, %39 : vector<1x32x1xf32>
    %41 = arith.negf %40 : vector<1x32x1xf32>
    %42 = math.exp %41 : vector<1x32x1xf32>
    %cst_22 = arith.constant 1.000000e+00 : f32
    %43 = vector.broadcast %cst_22 : f32 to vector<1x32x1xf32>
    %44 = arith.addf %43, %42 : vector<1x32x1xf32>
    %45 = arith.divf %43, %44 : vector<1x32x1xf32>
    %cst_23 = arith.constant dense<0.000000e+00> : vector<1x256xf32>
    %46 = vector.multi_reduction <add>, %0, %cst_23 [1] : vector<1x32x256xf32> to vector<1x256xf32>
    %47 = vector.shape_cast %46 : vector<1x256xf32> to vector<1x1x256xf32>
    %cst_24 = arith.constant 3.125000e-02 : f32
    %48 = vector.broadcast %cst_24 : f32 to vector<1x1x256xf32>
    %49 = arith.mulf %47, %48 : vector<1x1x256xf32>
    %cst_25 = arith.constant dense<0xFF800000> : vector<1x256xf32>
    %50 = vector.multi_reduction <maximumf>, %0, %cst_25 [1] : vector<1x32x256xf32> to vector<1x256xf32>
    %51 = vector.shape_cast %50 : vector<1x256xf32> to vector<1x1x256xf32>
    %c0_26 = arith.constant 0 : index
    %c0_27 = arith.constant 0 : index
    %c0_28 = arith.constant 0 : index
    %c0_29 = arith.constant 0 : index
    %52 = vector.load %arg10[%c0_26, %c0_27, %c0_28, %c0_29] : memref<2x1x1x256xf32, #tpu.memory_space<vmem>>, vector<1x1x1x256xf32>
    %53 = vector.shape_cast %52 : vector<1x1x1x256xf32> to vector<1x1x256xf32>
    %54 = vector.shape_cast %49 : vector<1x1x256xf32> to vector<1x1x1x256xf32>
    tpu.vector_store %arg10[%c0_26, %c0_27, %c0_28, %c0_29], %54 {strides = array<i32>} : memref<2x1x1x256xf32, #tpu.memory_space<vmem>>, vector<1x1x1x256xf32>,
    %c1_30 = arith.constant 1 : index
    %c0_31 = arith.constant 0 : index
    %c0_32 = arith.constant 0 : index
    %c0_33 = arith.constant 0 : index
    %55 = vector.load %arg10[%c1_30, %c0_31, %c0_32, %c0_33] : memref<2x1x1x256xf32, #tpu.memory_space<vmem>>, vector<1x1x1x256xf32>
    %56 = vector.shape_cast %55 : vector<1x1x1x256xf32> to vector<1x1x256xf32>
    %57 = vector.shape_cast %51 : vector<1x1x256xf32> to vector<1x1x1x256xf32>
    tpu.vector_store %arg10[%c1_30, %c0_31, %c0_32, %c0_33], %57 {strides = array<i32>} : memref<2x1x1x256xf32, #tpu.memory_space<vmem>>, vector<1x1x1x256xf32>,
    %cst_34 = arith.constant 0.000000e+00 : f32
    %58 = vector.broadcast %cst_34 : f32 to vector<2x1x22x22xf32>
    %c0_35 = arith.constant 0 : index
    %c0_36 = arith.constant 0 : index
    %c0_37 = arith.constant 0 : index
    %c0_38 = arith.constant 0 : index
    %59 = vector.load %arg9[%c0_35, %c0_36, %c0_37, %c0_38] : memref<2x1x22x22xf32, #tpu.memory_space<vmem>>, vector<2x1x22x22xf32>
    tpu.vector_store %arg9[%c0_35, %c0_36, %c0_37, %c0_38], %58 {strides = array<i32>} : memref<2x1x22x22xf32, #tpu.memory_space<vmem>>, vector<2x1x22x22xf32>,
    %c0_39 = arith.constant 0 : index
    %c0_40 = arith.constant 0 : index
    %c0_41 = arith.constant 0 : index
    %c0_42 = arith.constant 0 : index
    %60 = vector.load %arg10[%c0_39, %c0_40, %c0_41, %c0_42] : memref<2x1x1x256xf32, #tpu.memory_space<vmem>>, vector<1x1x1x16xf32>
    %61 = vector.shape_cast %60 : vector<1x1x1x16xf32> to vector<1x16xf32>
    %c0_43 = arith.constant 0 : index
    %c0_44 = arith.constant 0 : index
    %c3 = arith.constant 3 : index
    %c3_45 = arith.constant 3 : index
    %62 = vector.load %arg9[%c0_43, %c0_44, %c3, %c3_45] : memref<2x1x22x22xf32, #tpu.memory_space<vmem>>, vector<1x1x1x16xf32>
    %63 = vector.shape_cast %62 : vector<1x1x1x16xf32> to vector<1x16xf32>
    %64 = vector.shape_cast %61 : vector<1x16xf32> to vector<1x1x1x16xf32>
    tpu.vector_store %arg9[%c0_43, %c0_44, %c3, %c3_45], %64 {strides = array<i32>} : memref<2x1x22x22xf32, #tpu.memory_space<vmem>>, vector<1x1x1x16xf32>,
    %c1_46 = arith.constant 1 : index
    %c0_47 = arith.constant 0 : index
    %c0_48 = arith.constant 0 : index
    %c0_49 = arith.constant 0 : index
    %65 = vector.load %arg10[%c1_46, %c0_47, %c0_48, %c0_49] : memref<2x1x1x256xf32, #tpu.memory_space<vmem>>, vector<1x1x1x16xf32>
    %66 = vector.shape_cast %65 : vector<1x1x1x16xf32> to vector<1x16xf32>
    %c1_50 = arith.constant 1 : index
    %c0_51 = arith.constant 0 : index
    %c3_52 = arith.constant 3 : index
    %c3_53 = arith.constant 3 : index
    %67 = vector.load %arg9[%c1_50, %c0_51, %c3_52, %c3_53] : memref<2x1x22x22xf32, #tpu.memory_space<vmem>>, vector<1x1x1x16xf32>
    %68 = vector.shape_cast %67 : vector<1x1x1x16xf32> to vector<1x16xf32>
    %69 = vector.shape_cast %66 : vector<1x16xf32> to vector<1x1x1x16xf32>
    tpu.vector_store %arg9[%c1_50, %c0_51, %c3_52, %c3_53], %69 {strides = array<i32>} : memref<2x1x22x22xf32, #tpu.memory_space<vmem>>, vector<1x1x1x16xf32>,
    %c0_54 = arith.constant 0 : index
    %c0_55 = arith.constant 0 : index
    %c0_56 = arith.constant 0 : index
    %c16 = arith.constant 16 : index
    %70 = vector.load %arg10[%c0_54, %c0_55, %c0_56, %c16] : memref<2x1x1x256xf32, #tpu.memory_space<vmem>>, vector<1x1x1x16xf32>
    %71 = vector.shape_cast %70 : vector<1x1x1x16xf32> to vector<1x16xf32>
    %c0_57 = arith.constant 0 : index
    %c0_58 = arith.constant 0 : index
    %c4 = arith.constant 4 : index
    %c3_59 = arith.constant 3 : index
    %72 = vector.load %arg9[%c0_57, %c0_58, %c4, %c3_59] : memref<2x1x22x22xf32, #tpu.memory_space<vmem>>, vector<1x1x1x16xf32>
    %73 = vector.shape_cast %72 : vector<1x1x1x16xf32> to vector<1x16xf32>
    %74 = vector.shape_cast %71 : vector<1x16xf32> to vector<1x1x1x16xf32>
    tpu.vector_store %arg9[%c0_57, %c0_58, %c4, %c3_59], %74 {strides = array<i32>} : memref<2x1x22x22xf32, #tpu.memory_space<vmem>>, vector<1x1x1x16xf32>,
    %c1_60 = arith.constant 1 : index
    %c0_61 = arith.constant 0 : index
    %c0_62 = arith.constant 0 : index
    %c16_63 = arith.constant 16 : index
    %75 = vector.load %arg10[%c1_60, %c0_61, %c0_62, %c16_63] : memref<2x1x1x256xf32, #tpu.memory_space<vmem>>, vector<1x1x1x16xf32>
    %76 = vector.shape_cast %75 : vector<1x1x1x16xf32> to vector<1x16xf32>
    %c1_64 = arith.constant 1 : index
    %c0_65 = arith.constant 0 : index
    %c4_66 = arith.constant 4 : index
    %c3_67 = arith.constant 3 : index
    %77 = vector.load %arg9[%c1_64, %c0_65, %c4_66, %c3_67] : memref<2x1x22x22xf32, #tpu.memory_space<vmem>>, vector<1x1x1x16xf32>
    %78 = vector.shape_cast %77 : vector<1x1x1x16xf32> to vector<1x16xf32>
    %79 = vector.shape_cast %76 : vector<1x16xf32> to vector<1x1x1x16xf32>
    tpu.vector_store %arg9[%c1_64, %c0_65, %c4_66, %c3_67], %79 {strides = array<i32>} : memref<2x1x22x22xf32, #tpu.memory_space<vmem>>, vector<1x1x1x16xf32>,
    %c0_68 = arith.constant 0 : index
    %c0_69 = arith.constant 0 : index
    %c0_70 = arith.constant 0 : index
    %c32 = arith.constant 32 : index
    %80 = vector.load %arg10[%c0_68, %c0_69, %c0_70, %c32] : memref<2x1x1x256xf32, #tpu.memory_space<vmem>>, vector<1x1x1x16xf32>
    %81 = vector.shape_cast %80 : vector<1x1x1x16xf32> to vector<1x16xf32>
    %c0_71 = arith.constant 0 : index
    %c0_72 = arith.constant 0 : index
    %c5 = arith.constant 5 : index
    %c3_73 = arith.constant 3 : index
    %82 = vector.load %arg9[%c0_71, %c0_72, %c5, %c3_73] : memref<2x1x22x22xf32, #tpu.memory_space<vmem>>, vector<1x1x1x16xf32>
    %83 = vector.shape_cast %82 : vector<1x1x1x16xf32> to vector<1x16xf32>
    %84 = vector.shape_cast %81 : vector<1x16xf32> to vector<1x1x1x16xf32>
    tpu.vector_store %arg9[%c0_71, %c0_72, %c5, %c3_73], %84 {strides = array<i32>} : memref<2x1x22x22xf32, #tpu.memory_space<vmem>>, vector<1x1x1x16xf32>,
    %c1_74 = arith.constant 1 : index
    %c0_75 = arith.constant 0 : index
    %c0_76 = arith.constant 0 : index
    %c32_77 = arith.constant 32 : index
    %85 = vector.load %arg10[%c1_74, %c0_75, %c0_76, %c32_77] : memref<2x1x1x256xf32, #tpu.memory_space<vmem>>, vector<1x1x1x16xf32>
    %86 = vector.shape_cast %85 : vector<1x1x1x16xf32> to vector<1x16xf32>
    %c1_78 = arith.constant 1 : index
    %c0_79 = arith.constant 0 : index
    %c5_80 = arith.constant 5 : index
    %c3_81 = arith.constant 3 : index
    %87 = vector.load %arg9[%c1_78, %c0_79, %c5_80, %c3_81] : memref<2x1x22x22xf32, #tpu.memory_space<vmem>>, vector<1x1x1x16xf32>
    %88 = vector.shape_cast %87 : vector<1x1x1x16xf32> to vector<1x16xf32>
    %89 = vector.shape_cast %86 : vector<1x16xf32> to vector<1x1x1x16xf32>
    tpu.vector_store %arg9[%c1_78, %c0_79, %c5_80, %c3_81], %89 {strides = array<i32>} : memref<2x1x22x22xf32, #tpu.memory_space<vmem>>, vector<1x1x1x16xf32>,
    %c0_82 = arith.constant 0 : index
    %c0_83 = arith.constant 0 : index
    %c0_84 = arith.constant 0 : index
    %c48 = arith.constant 48 : index
    %90 = vector.load %arg10[%c0_82, %c0_83, %c0_84, %c48] : memref<2x1x1x256xf32, #tpu.memory_space<vmem>>, vector<1x1x1x16xf32>
    %91 = vector.shape_cast %90 : vector<1x1x1x16xf32> to vector<1x16xf32>
    %c0_85 = arith.constant 0 : index
    %c0_86 = arith.constant 0 : index
    %c6 = arith.constant 6 : index
    %c3_87 = arith.constant 3 : index
    %92 = vector.load %arg9[%c0_85, %c0_86, %c6, %c3_87] : memref<2x1x22x22xf32, #tpu.memory_space<vmem>>, vector<1x1x1x16xf32>
    %93 = vector.shape_cast %92 : vector<1x1x1x16xf32> to vector<1x16xf32>
    %94 = vector.shape_cast %91 : vector<1x16xf32> to vector<1x1x1x16xf32>
    tpu.vector_store %arg9[%c0_85, %c0_86, %c6, %c3_87], %94 {strides = array<i32>} : memref<2x1x22x22xf32, #tpu.memory_space<vmem>>, vector<1x1x1x16xf32>,
    %c1_88 = arith.constant 1 : index
    %c0_89 = arith.constant 0 : index
    %c0_90 = arith.constant 0 : index
    %c48_91 = arith.constant 48 : index
    %95 = vector.load %arg10[%c1_88, %c0_89, %c0_90, %c48_91] : memref<2x1x1x256xf32, #tpu.memory_space<vmem>>, vector<1x1x1x16xf32>
    %96 = vector.shape_cast %95 : vector<1x1x1x16xf32> to vector<1x16xf32>
    %c1_92 = arith.constant 1 : index
    %c0_93 = arith.constant 0 : index
    %c6_94 = arith.constant 6 : index
    %c3_95 = arith.constant 3 : index
    %97 = vector.load %arg9[%c1_92, %c0_93, %c6_94, %c3_95] : memref<2x1x22x22xf32, #tpu.memory_space<vmem>>, vector<1x1x1x16xf32>
    %98 = vector.shape_cast %97 : vector<1x1x1x16xf32> to vector<1x16xf32>
    %99 = vector.shape_cast %96 : vector<1x16xf32> to vector<1x1x1x16xf32>
    tpu.vector_store %arg9[%c1_92, %c0_93, %c6_94, %c3_95], %99 {strides = array<i32>} : memref<2x1x22x22xf32, #tpu.memory_space<vmem>>, vector<1x1x1x16xf32>,
    %c0_96 = arith.constant 0 : index
    %c0_97 = arith.constant 0 : index
    %c0_98 = arith.constant 0 : index
    %c64 = arith.constant 64 : index
    %100 = vector.load %arg10[%c0_96, %c0_97, %c0_98, %c64] : memref<2x1x1x256xf32, #tpu.memory_space<vmem>>, vector<1x1x1x16xf32>
    %101 = vector.shape_cast %100 : vector<1x1x1x16xf32> to vector<1x16xf32>
    %c0_99 = arith.constant 0 : index
    %c0_100 = arith.constant 0 : index
    %c7 = arith.constant 7 : index
    %c3_101 = arith.constant 3 : index
    %102 = vector.load %arg9[%c0_99, %c0_100, %c7, %c3_101] : memref<2x1x22x22xf32, #tpu.memory_space<vmem>>, vector<1x1x1x16xf32>
    %103 = vector.shape_cast %102 : vector<1x1x1x16xf32> to vector<1x16xf32>
    %104 = vector.shape_cast %101 : vector<1x16xf32> to vector<1x1x1x16xf32>
    tpu.vector_store %arg9[%c0_99, %c0_100, %c7, %c3_101], %104 {strides = array<i32>} : memref<2x1x22x22xf32, #tpu.memory_space<vmem>>, vector<1x1x1x16xf32>,
    %c1_102 = arith.constant 1 : index
    %c0_103 = arith.constant 0 : index
    %c0_104 = arith.constant 0 : index
    %c64_105 = arith.constant 64 : index
    %105 = vector.load %arg10[%c1_102, %c0_103, %c0_104, %c64_105] : memref<2x1x1x256xf32, #tpu.memory_space<vmem>>, vector<1x1x1x16xf32>
    %106 = vector.shape_cast %105 : vector<1x1x1x16xf32> to vector<1x16xf32>
    %c1_106 = arith.constant 1 : index
    %c0_107 = arith.constant 0 : index
    %c7_108 = arith.constant 7 : index
    %c3_109 = arith.constant 3 : index
    %107 = vector.load %arg9[%c1_106, %c0_107, %c7_108, %c3_109] : memref<2x1x22x22xf32, #tpu.memory_space<vmem>>, vector<1x1x1x16xf32>
    %108 = vector.shape_cast %107 : vector<1x1x1x16xf32> to vector<1x16xf32>
    %109 = vector.shape_cast %106 : vector<1x16xf32> to vector<1x1x1x16xf32>
    tpu.vector_store %arg9[%c1_106, %c0_107, %c7_108, %c3_109], %109 {strides = array<i32>} : memref<2x1x22x22xf32, #tpu.memory_space<vmem>>, vector<1x1x1x16xf32>,
    %c0_110 = arith.constant 0 : index
    %c0_111 = arith.constant 0 : index
    %c0_112 = arith.constant 0 : index
    %c80 = arith.constant 80 : index
    %110 = vector.load %arg10[%c0_110, %c0_111, %c0_112, %c80] : memref<2x1x1x256xf32, #tpu.memory_space<vmem>>, vector<1x1x1x16xf32>
    %111 = vector.shape_cast %110 : vector<1x1x1x16xf32> to vector<1x16xf32>
    %c0_113 = arith.constant 0 : index
    %c0_114 = arith.constant 0 : index
    %c8 = arith.constant 8 : index
    %c3_115 = arith.constant 3 : index
    %112 = vector.load %arg9[%c0_113, %c0_114, %c8, %c3_115] : memref<2x1x22x22xf32, #tpu.memory_space<vmem>>, vector<1x1x1x16xf32>
    %113 = vector.shape_cast %112 : vector<1x1x1x16xf32> to vector<1x16xf32>
    %114 = vector.shape_cast %111 : vector<1x16xf32> to vector<1x1x1x16xf32>
    tpu.vector_store %arg9[%c0_113, %c0_114, %c8, %c3_115], %114 {strides = array<i32>} : memref<2x1x22x22xf32, #tpu.memory_space<vmem>>, vector<1x1x1x16xf32>,
    %c1_116 = arith.constant 1 : index
    %c0_117 = arith.constant 0 : index
    %c0_118 = arith.constant 0 : index
    %c80_119 = arith.constant 80 : index
    %115 = vector.load %arg10[%c1_116, %c0_117, %c0_118, %c80_119] : memref<2x1x1x256xf32, #tpu.memory_space<vmem>>, vector<1x1x1x16xf32>
    %116 = vector.shape_cast %115 : vector<1x1x1x16xf32> to vector<1x16xf32>
    %c1_120 = arith.constant 1 : index
    %c0_121 = arith.constant 0 : index
    %c8_122 = arith.constant 8 : index
    %c3_123 = arith.constant 3 : index
    %117 = vector.load %arg9[%c1_120, %c0_121, %c8_122, %c3_123] : memref<2x1x22x22xf32, #tpu.memory_space<vmem>>, vector<1x1x1x16xf32>
    %118 = vector.shape_cast %117 : vector<1x1x1x16xf32> to vector<1x16xf32>
    %119 = vector.shape_cast %116 : vector<1x16xf32> to vector<1x1x1x16xf32>
    tpu.vector_store %arg9[%c1_120, %c0_121, %c8_122, %c3_123], %119 {strides = array<i32>} : memref<2x1x22x22xf32, #tpu.memory_space<vmem>>, vector<1x1x1x16xf32>,
    %c0_124 = arith.constant 0 : index
    %c0_125 = arith.constant 0 : index
    %c0_126 = arith.constant 0 : index
    %c96 = arith.constant 96 : index
    %120 = vector.load %arg10[%c0_124, %c0_125, %c0_126, %c96] : memref<2x1x1x256xf32, #tpu.memory_space<vmem>>, vector<1x1x1x16xf32>
    %121 = vector.shape_cast %120 : vector<1x1x1x16xf32> to vector<1x16xf32>
    %c0_127 = arith.constant 0 : index
    %c0_128 = arith.constant 0 : index
    %c9 = arith.constant 9 : index
    %c3_129 = arith.constant 3 : index
    %122 = vector.load %arg9[%c0_127, %c0_128, %c9, %c3_129] : memref<2x1x22x22xf32, #tpu.memory_space<vmem>>, vector<1x1x1x16xf32>
    %123 = vector.shape_cast %122 : vector<1x1x1x16xf32> to vector<1x16xf32>
    %124 = vector.shape_cast %121 : vector<1x16xf32> to vector<1x1x1x16xf32>
    tpu.vector_store %arg9[%c0_127, %c0_128, %c9, %c3_129], %124 {strides = array<i32>} : memref<2x1x22x22xf32, #tpu.memory_space<vmem>>, vector<1x1x1x16xf32>,
    %c1_130 = arith.constant 1 : index
    %c0_131 = arith.constant 0 : index
    %c0_132 = arith.constant 0 : index
    %c96_133 = arith.constant 96 : index
    %125 = vector.load %arg10[%c1_130, %c0_131, %c0_132, %c96_133] : memref<2x1x1x256xf32, #tpu.memory_space<vmem>>, vector<1x1x1x16xf32>
    %126 = vector.shape_cast %125 : vector<1x1x1x16xf32> to vector<1x16xf32>
    %c1_134 = arith.constant 1 : index
    %c0_135 = arith.constant 0 : index
    %c9_136 = arith.constant 9 : index
    %c3_137 = arith.constant 3 : index
    %127 = vector.load %arg9[%c1_134, %c0_135, %c9_136, %c3_137] : memref<2x1x22x22xf32, #tpu.memory_space<vmem>>, vector<1x1x1x16xf32>
    %128 = vector.shape_cast %127 : vector<1x1x1x16xf32> to vector<1x16xf32>
    %129 = vector.shape_cast %126 : vector<1x16xf32> to vector<1x1x1x16xf32>
    tpu.vector_store %arg9[%c1_134, %c0_135, %c9_136, %c3_137], %129 {strides = array<i32>} : memref<2x1x22x22xf32, #tpu.memory_space<vmem>>, vector<1x1x1x16xf32>,
    %c0_138 = arith.constant 0 : index
    %c0_139 = arith.constant 0 : index
    %c0_140 = arith.constant 0 : index
    %c112 = arith.constant 112 : index
    %130 = vector.load %arg10[%c0_138, %c0_139, %c0_140, %c112] : memref<2x1x1x256xf32, #tpu.memory_space<vmem>>, vector<1x1x1x16xf32>
    %131 = vector.shape_cast %130 : vector<1x1x1x16xf32> to vector<1x16xf32>
    %c0_141 = arith.constant 0 : index
    %c0_142 = arith.constant 0 : index
    %c10 = arith.constant 10 : index
    %c3_143 = arith.constant 3 : index
    %132 = vector.load %arg9[%c0_141, %c0_142, %c10, %c3_143] : memref<2x1x22x22xf32, #tpu.memory_space<vmem>>, vector<1x1x1x16xf32>
    %133 = vector.shape_cast %132 : vector<1x1x1x16xf32> to vector<1x16xf32>
    %134 = vector.shape_cast %131 : vector<1x16xf32> to vector<1x1x1x16xf32>
    tpu.vector_store %arg9[%c0_141, %c0_142, %c10, %c3_143], %134 {strides = array<i32>} : memref<2x1x22x22xf32, #tpu.memory_space<vmem>>, vector<1x1x1x16xf32>,
    %c1_144 = arith.constant 1 : index
    %c0_145 = arith.constant 0 : index
    %c0_146 = arith.constant 0 : index
    %c112_147 = arith.constant 112 : index
    %135 = vector.load %arg10[%c1_144, %c0_145, %c0_146, %c112_147] : memref<2x1x1x256xf32, #tpu.memory_space<vmem>>, vector<1x1x1x16xf32>
    %136 = vector.shape_cast %135 : vector<1x1x1x16xf32> to vector<1x16xf32>
    %c1_148 = arith.constant 1 : index
    %c0_149 = arith.constant 0 : index
    %c10_150 = arith.constant 10 : index
    %c3_151 = arith.constant 3 : index
    %137 = vector.load %arg9[%c1_148, %c0_149, %c10_150, %c3_151] : memref<2x1x22x22xf32, #tpu.memory_space<vmem>>, vector<1x1x1x16xf32>
    %138 = vector.shape_cast %137 : vector<1x1x1x16xf32> to vector<1x16xf32>
    %139 = vector.shape_cast %136 : vector<1x16xf32> to vector<1x1x1x16xf32>
    tpu.vector_store %arg9[%c1_148, %c0_149, %c10_150, %c3_151], %139 {strides = array<i32>} : memref<2x1x22x22xf32, #tpu.memory_space<vmem>>, vector<1x1x1x16xf32>,
    %c0_152 = arith.constant 0 : index
    %c0_153 = arith.constant 0 : index
    %c0_154 = arith.constant 0 : index
    %c128 = arith.constant 128 : index
    %140 = vector.load %arg10[%c0_152, %c0_153, %c0_154, %c128] : memref<2x1x1x256xf32, #tpu.memory_space<vmem>>, vector<1x1x1x16xf32>
    %141 = vector.shape_cast %140 : vector<1x1x1x16xf32> to vector<1x16xf32>
    %c0_155 = arith.constant 0 : index
    %c0_156 = arith.constant 0 : index
    %c11 = arith.constant 11 : index
    %c3_157 = arith.constant 3 : index
    %142 = vector.load %arg9[%c0_155, %c0_156, %c11, %c3_157] : memref<2x1x22x22xf32, #tpu.memory_space<vmem>>, vector<1x1x1x16xf32>
    %143 = vector.shape_cast %142 : vector<1x1x1x16xf32> to vector<1x16xf32>
    %144 = vector.shape_cast %141 : vector<1x16xf32> to vector<1x1x1x16xf32>
    tpu.vector_store %arg9[%c0_155, %c0_156, %c11, %c3_157], %144 {strides = array<i32>} : memref<2x1x22x22xf32, #tpu.memory_space<vmem>>, vector<1x1x1x16xf32>,
    %c1_158 = arith.constant 1 : index
    %c0_159 = arith.constant 0 : index
    %c0_160 = arith.constant 0 : index
    %c128_161 = arith.constant 128 : index
    %145 = vector.load %arg10[%c1_158, %c0_159, %c0_160, %c128_161] : memref<2x1x1x256xf32, #tpu.memory_space<vmem>>, vector<1x1x1x16xf32>
    %146 = vector.shape_cast %145 : vector<1x1x1x16xf32> to vector<1x16xf32>
    %c1_162 = arith.constant 1 : index
    %c0_163 = arith.constant 0 : index
    %c11_164 = arith.constant 11 : index
    %c3_165 = arith.constant 3 : index
    %147 = vector.load %arg9[%c1_162, %c0_163, %c11_164, %c3_165] : memref<2x1x22x22xf32, #tpu.memory_space<vmem>>, vector<1x1x1x16xf32>
    %148 = vector.shape_cast %147 : vector<1x1x1x16xf32> to vector<1x16xf32>
    %149 = vector.shape_cast %146 : vector<1x16xf32> to vector<1x1x1x16xf32>
    tpu.vector_store %arg9[%c1_162, %c0_163, %c11_164, %c3_165], %149 {strides = array<i32>} : memref<2x1x22x22xf32, #tpu.memory_space<vmem>>, vector<1x1x1x16xf32>,
    %c0_166 = arith.constant 0 : index
    %c0_167 = arith.constant 0 : index
    %c0_168 = arith.constant 0 : index
    %c144 = arith.constant 144 : index
    %150 = vector.load %arg10[%c0_166, %c0_167, %c0_168, %c144] : memref<2x1x1x256xf32, #tpu.memory_space<vmem>>, vector<1x1x1x16xf32>
    %151 = vector.shape_cast %150 : vector<1x1x1x16xf32> to vector<1x16xf32>
    %c0_169 = arith.constant 0 : index
    %c0_170 = arith.constant 0 : index
    %c12 = arith.constant 12 : index
    %c3_171 = arith.constant 3 : index
    %152 = vector.load %arg9[%c0_169, %c0_170, %c12, %c3_171] : memref<2x1x22x22xf32, #tpu.memory_space<vmem>>, vector<1x1x1x16xf32>
    %153 = vector.shape_cast %152 : vector<1x1x1x16xf32> to vector<1x16xf32>
    %154 = vector.shape_cast %151 : vector<1x16xf32> to vector<1x1x1x16xf32>
    tpu.vector_store %arg9[%c0_169, %c0_170, %c12, %c3_171], %154 {strides = array<i32>} : memref<2x1x22x22xf32, #tpu.memory_space<vmem>>, vector<1x1x1x16xf32>,
    %c1_172 = arith.constant 1 : index
    %c0_173 = arith.constant 0 : index
    %c0_174 = arith.constant 0 : index
    %c144_175 = arith.constant 144 : index
    %155 = vector.load %arg10[%c1_172, %c0_173, %c0_174, %c144_175] : memref<2x1x1x256xf32, #tpu.memory_space<vmem>>, vector<1x1x1x16xf32>
    %156 = vector.shape_cast %155 : vector<1x1x1x16xf32> to vector<1x16xf32>
    %c1_176 = arith.constant 1 : index
    %c0_177 = arith.constant 0 : index
    %c12_178 = arith.constant 12 : index
    %c3_179 = arith.constant 3 : index
    %157 = vector.load %arg9[%c1_176, %c0_177, %c12_178, %c3_179] : memref<2x1x22x22xf32, #tpu.memory_space<vmem>>, vector<1x1x1x16xf32>
    %158 = vector.shape_cast %157 : vector<1x1x1x16xf32> to vector<1x16xf32>
    %159 = vector.shape_cast %156 : vector<1x16xf32> to vector<1x1x1x16xf32>
    tpu.vector_store %arg9[%c1_176, %c0_177, %c12_178, %c3_179], %159 {strides = array<i32>} : memref<2x1x22x22xf32, #tpu.memory_space<vmem>>, vector<1x1x1x16xf32>,
    %c0_180 = arith.constant 0 : index
    %c0_181 = arith.constant 0 : index
    %c0_182 = arith.constant 0 : index
    %c160 = arith.constant 160 : index
    %160 = vector.load %arg10[%c0_180, %c0_181, %c0_182, %c160] : memref<2x1x1x256xf32, #tpu.memory_space<vmem>>, vector<1x1x1x16xf32>
    %161 = vector.shape_cast %160 : vector<1x1x1x16xf32> to vector<1x16xf32>
    %c0_183 = arith.constant 0 : index
    %c0_184 = arith.constant 0 : index
    %c13 = arith.constant 13 : index
    %c3_185 = arith.constant 3 : index
    %162 = vector.load %arg9[%c0_183, %c0_184, %c13, %c3_185] : memref<2x1x22x22xf32, #tpu.memory_space<vmem>>, vector<1x1x1x16xf32>
    %163 = vector.shape_cast %162 : vector<1x1x1x16xf32> to vector<1x16xf32>
    %164 = vector.shape_cast %161 : vector<1x16xf32> to vector<1x1x1x16xf32>
    tpu.vector_store %arg9[%c0_183, %c0_184, %c13, %c3_185], %164 {strides = array<i32>} : memref<2x1x22x22xf32, #tpu.memory_space<vmem>>, vector<1x1x1x16xf32>,
    %c1_186 = arith.constant 1 : index
    %c0_187 = arith.constant 0 : index
    %c0_188 = arith.constant 0 : index
    %c160_189 = arith.constant 160 : index
    %165 = vector.load %arg10[%c1_186, %c0_187, %c0_188, %c160_189] : memref<2x1x1x256xf32, #tpu.memory_space<vmem>>, vector<1x1x1x16xf32>
    %166 = vector.shape_cast %165 : vector<1x1x1x16xf32> to vector<1x16xf32>
    %c1_190 = arith.constant 1 : index
    %c0_191 = arith.constant 0 : index
    %c13_192 = arith.constant 13 : index
    %c3_193 = arith.constant 3 : index
    %167 = vector.load %arg9[%c1_190, %c0_191, %c13_192, %c3_193] : memref<2x1x22x22xf32, #tpu.memory_space<vmem>>, vector<1x1x1x16xf32>
    %168 = vector.shape_cast %167 : vector<1x1x1x16xf32> to vector<1x16xf32>
    %169 = vector.shape_cast %166 : vector<1x16xf32> to vector<1x1x1x16xf32>
    tpu.vector_store %arg9[%c1_190, %c0_191, %c13_192, %c3_193], %169 {strides = array<i32>} : memref<2x1x22x22xf32, #tpu.memory_space<vmem>>, vector<1x1x1x16xf32>,
    %c0_194 = arith.constant 0 : index
    %c0_195 = arith.constant 0 : index
    %c0_196 = arith.constant 0 : index
    %c176 = arith.constant 176 : index
    %170 = vector.load %arg10[%c0_194, %c0_195, %c0_196, %c176] : memref<2x1x1x256xf32, #tpu.memory_space<vmem>>, vector<1x1x1x16xf32>
    %171 = vector.shape_cast %170 : vector<1x1x1x16xf32> to vector<1x16xf32>
    %c0_197 = arith.constant 0 : index
    %c0_198 = arith.constant 0 : index
    %c14 = arith.constant 14 : index
    %c3_199 = arith.constant 3 : index
    %172 = vector.load %arg9[%c0_197, %c0_198, %c14, %c3_199] : memref<2x1x22x22xf32, #tpu.memory_space<vmem>>, vector<1x1x1x16xf32>
    %173 = vector.shape_cast %172 : vector<1x1x1x16xf32> to vector<1x16xf32>
    %174 = vector.shape_cast %171 : vector<1x16xf32> to vector<1x1x1x16xf32>
    tpu.vector_store %arg9[%c0_197, %c0_198, %c14, %c3_199], %174 {strides = array<i32>} : memref<2x1x22x22xf32, #tpu.memory_space<vmem>>, vector<1x1x1x16xf32>,
    %c1_200 = arith.constant 1 : index
    %c0_201 = arith.constant 0 : index
    %c0_202 = arith.constant 0 : index
    %c176_203 = arith.constant 176 : index
    %175 = vector.load %arg10[%c1_200, %c0_201, %c0_202, %c176_203] : memref<2x1x1x256xf32, #tpu.memory_space<vmem>>, vector<1x1x1x16xf32>
    %176 = vector.shape_cast %175 : vector<1x1x1x16xf32> to vector<1x16xf32>
    %c1_204 = arith.constant 1 : index
    %c0_205 = arith.constant 0 : index
    %c14_206 = arith.constant 14 : index
    %c3_207 = arith.constant 3 : index
    %177 = vector.load %arg9[%c1_204, %c0_205, %c14_206, %c3_207] : memref<2x1x22x22xf32, #tpu.memory_space<vmem>>, vector<1x1x1x16xf32>
    %178 = vector.shape_cast %177 : vector<1x1x1x16xf32> to vector<1x16xf32>
    %179 = vector.shape_cast %176 : vector<1x16xf32> to vector<1x1x1x16xf32>
    tpu.vector_store %arg9[%c1_204, %c0_205, %c14_206, %c3_207], %179 {strides = array<i32>} : memref<2x1x22x22xf32, #tpu.memory_space<vmem>>, vector<1x1x1x16xf32>,
    %c0_208 = arith.constant 0 : index
    %c0_209 = arith.constant 0 : index
    %c0_210 = arith.constant 0 : index
    %c192 = arith.constant 192 : index
    %180 = vector.load %arg10[%c0_208, %c0_209, %c0_210, %c192] : memref<2x1x1x256xf32, #tpu.memory_space<vmem>>, vector<1x1x1x16xf32>
    %181 = vector.shape_cast %180 : vector<1x1x1x16xf32> to vector<1x16xf32>
    %c0_211 = arith.constant 0 : index
    %c0_212 = arith.constant 0 : index
    %c15 = arith.constant 15 : index
    %c3_213 = arith.constant 3 : index
    %182 = vector.load %arg9[%c0_211, %c0_212, %c15, %c3_213] : memref<2x1x22x22xf32, #tpu.memory_space<vmem>>, vector<1x1x1x16xf32>
    %183 = vector.shape_cast %182 : vector<1x1x1x16xf32> to vector<1x16xf32>
    %184 = vector.shape_cast %181 : vector<1x16xf32> to vector<1x1x1x16xf32>
    tpu.vector_store %arg9[%c0_211, %c0_212, %c15, %c3_213], %184 {strides = array<i32>} : memref<2x1x22x22xf32, #tpu.memory_space<vmem>>, vector<1x1x1x16xf32>,
    %c1_214 = arith.constant 1 : index
    %c0_215 = arith.constant 0 : index
    %c0_216 = arith.constant 0 : index
    %c192_217 = arith.constant 192 : index
    %185 = vector.load %arg10[%c1_214, %c0_215, %c0_216, %c192_217] : memref<2x1x1x256xf32, #tpu.memory_space<vmem>>, vector<1x1x1x16xf32>
    %186 = vector.shape_cast %185 : vector<1x1x1x16xf32> to vector<1x16xf32>
    %c1_218 = arith.constant 1 : index
    %c0_219 = arith.constant 0 : index
    %c15_220 = arith.constant 15 : index
    %c3_221 = arith.constant 3 : index
    %187 = vector.load %arg9[%c1_218, %c0_219, %c15_220, %c3_221] : memref<2x1x22x22xf32, #tpu.memory_space<vmem>>, vector<1x1x1x16xf32>
    %188 = vector.shape_cast %187 : vector<1x1x1x16xf32> to vector<1x16xf32>
    %189 = vector.shape_cast %186 : vector<1x16xf32> to vector<1x1x1x16xf32>
    tpu.vector_store %arg9[%c1_218, %c0_219, %c15_220, %c3_221], %189 {strides = array<i32>} : memref<2x1x22x22xf32, #tpu.memory_space<vmem>>, vector<1x1x1x16xf32>,
    %c0_222 = arith.constant 0 : index
    %c0_223 = arith.constant 0 : index
    %c0_224 = arith.constant 0 : index
    %c208 = arith.constant 208 : index
    %190 = vector.load %arg10[%c0_222, %c0_223, %c0_224, %c208] : memref<2x1x1x256xf32, #tpu.memory_space<vmem>>, vector<1x1x1x16xf32>
    %191 = vector.shape_cast %190 : vector<1x1x1x16xf32> to vector<1x16xf32>
    %c0_225 = arith.constant 0 : index
    %c0_226 = arith.constant 0 : index
    %c16_227 = arith.constant 16 : index
    %c3_228 = arith.constant 3 : index
    %192 = vector.load %arg9[%c0_225, %c0_226, %c16_227, %c3_228] : memref<2x1x22x22xf32, #tpu.memory_space<vmem>>, vector<1x1x1x16xf32>
    %193 = vector.shape_cast %192 : vector<1x1x1x16xf32> to vector<1x16xf32>
    %194 = vector.shape_cast %191 : vector<1x16xf32> to vector<1x1x1x16xf32>
    tpu.vector_store %arg9[%c0_225, %c0_226, %c16_227, %c3_228], %194 {strides = array<i32>} : memref<2x1x22x22xf32, #tpu.memory_space<vmem>>, vector<1x1x1x16xf32>,
    %c1_229 = arith.constant 1 : index
    %c0_230 = arith.constant 0 : index
    %c0_231 = arith.constant 0 : index
    %c208_232 = arith.constant 208 : index
    %195 = vector.load %arg10[%c1_229, %c0_230, %c0_231, %c208_232] : memref<2x1x1x256xf32, #tpu.memory_space<vmem>>, vector<1x1x1x16xf32>
    %196 = vector.shape_cast %195 : vector<1x1x1x16xf32> to vector<1x16xf32>
    %c1_233 = arith.constant 1 : index
    %c0_234 = arith.constant 0 : index
    %c16_235 = arith.constant 16 : index
    %c3_236 = arith.constant 3 : index
    %197 = vector.load %arg9[%c1_233, %c0_234, %c16_235, %c3_236] : memref<2x1x22x22xf32, #tpu.memory_space<vmem>>, vector<1x1x1x16xf32>
    %198 = vector.shape_cast %197 : vector<1x1x1x16xf32> to vector<1x16xf32>
    %199 = vector.shape_cast %196 : vector<1x16xf32> to vector<1x1x1x16xf32>
    tpu.vector_store %arg9[%c1_233, %c0_234, %c16_235, %c3_236], %199 {strides = array<i32>} : memref<2x1x22x22xf32, #tpu.memory_space<vmem>>, vector<1x1x1x16xf32>,
    %c0_237 = arith.constant 0 : index
    %c0_238 = arith.constant 0 : index
    %c0_239 = arith.constant 0 : index
    %c224 = arith.constant 224 : index
    %200 = vector.load %arg10[%c0_237, %c0_238, %c0_239, %c224] : memref<2x1x1x256xf32, #tpu.memory_space<vmem>>, vector<1x1x1x16xf32>
    %201 = vector.shape_cast %200 : vector<1x1x1x16xf32> to vector<1x16xf32>
    %c0_240 = arith.constant 0 : index
    %c0_241 = arith.constant 0 : index
    %c17 = arith.constant 17 : index
    %c3_242 = arith.constant 3 : index
    %202 = vector.load %arg9[%c0_240, %c0_241, %c17, %c3_242] : memref<2x1x22x22xf32, #tpu.memory_space<vmem>>, vector<1x1x1x16xf32>
    %203 = vector.shape_cast %202 : vector<1x1x1x16xf32> to vector<1x16xf32>
    %204 = vector.shape_cast %201 : vector<1x16xf32> to vector<1x1x1x16xf32>
    tpu.vector_store %arg9[%c0_240, %c0_241, %c17, %c3_242], %204 {strides = array<i32>} : memref<2x1x22x22xf32, #tpu.memory_space<vmem>>, vector<1x1x1x16xf32>,
    %c1_243 = arith.constant 1 : index
    %c0_244 = arith.constant 0 : index
    %c0_245 = arith.constant 0 : index
    %c224_246 = arith.constant 224 : index
    %205 = vector.load %arg10[%c1_243, %c0_244, %c0_245, %c224_246] : memref<2x1x1x256xf32, #tpu.memory_space<vmem>>, vector<1x1x1x16xf32>
    %206 = vector.shape_cast %205 : vector<1x1x1x16xf32> to vector<1x16xf32>
    %c1_247 = arith.constant 1 : index
    %c0_248 = arith.constant 0 : index
    %c17_249 = arith.constant 17 : index
    %c3_250 = arith.constant 3 : index
    %207 = vector.load %arg9[%c1_247, %c0_248, %c17_249, %c3_250] : memref<2x1x22x22xf32, #tpu.memory_space<vmem>>, vector<1x1x1x16xf32>
    %208 = vector.shape_cast %207 : vector<1x1x1x16xf32> to vector<1x16xf32>
    %209 = vector.shape_cast %206 : vector<1x16xf32> to vector<1x1x1x16xf32>
    tpu.vector_store %arg9[%c1_247, %c0_248, %c17_249, %c3_250], %209 {strides = array<i32>} : memref<2x1x22x22xf32, #tpu.memory_space<vmem>>, vector<1x1x1x16xf32>,
    %c0_251 = arith.constant 0 : index
    %c0_252 = arith.constant 0 : index
    %c0_253 = arith.constant 0 : index
    %c240 = arith.constant 240 : index
    %210 = vector.load %arg10[%c0_251, %c0_252, %c0_253, %c240] : memref<2x1x1x256xf32, #tpu.memory_space<vmem>>, vector<1x1x1x16xf32>
    %211 = vector.shape_cast %210 : vector<1x1x1x16xf32> to vector<1x16xf32>
    %c0_254 = arith.constant 0 : index
    %c0_255 = arith.constant 0 : index
    %c18 = arith.constant 18 : index
    %c3_256 = arith.constant 3 : index
    %212 = vector.load %arg9[%c0_254, %c0_255, %c18, %c3_256] : memref<2x1x22x22xf32, #tpu.memory_space<vmem>>, vector<1x1x1x16xf32>
    %213 = vector.shape_cast %212 : vector<1x1x1x16xf32> to vector<1x16xf32>
    %214 = vector.shape_cast %211 : vector<1x16xf32> to vector<1x1x1x16xf32>
    tpu.vector_store %arg9[%c0_254, %c0_255, %c18, %c3_256], %214 {strides = array<i32>} : memref<2x1x22x22xf32, #tpu.memory_space<vmem>>, vector<1x1x1x16xf32>,
    %c1_257 = arith.constant 1 : index
    %c0_258 = arith.constant 0 : index
    %c0_259 = arith.constant 0 : index
    %c240_260 = arith.constant 240 : index
    %215 = vector.load %arg10[%c1_257, %c0_258, %c0_259, %c240_260] : memref<2x1x1x256xf32, #tpu.memory_space<vmem>>, vector<1x1x1x16xf32>
    %216 = vector.shape_cast %215 : vector<1x1x1x16xf32> to vector<1x16xf32>
    %c1_261 = arith.constant 1 : index
    %c0_262 = arith.constant 0 : index
    %c18_263 = arith.constant 18 : index
    %c3_264 = arith.constant 3 : index
    %217 = vector.load %arg9[%c1_261, %c0_262, %c18_263, %c3_264] : memref<2x1x22x22xf32, #tpu.memory_space<vmem>>, vector<1x1x1x16xf32>
    %218 = vector.shape_cast %217 : vector<1x1x1x16xf32> to vector<1x16xf32>
    %219 = vector.shape_cast %216 : vector<1x16xf32> to vector<1x1x1x16xf32>
    tpu.vector_store %arg9[%c1_261, %c0_262, %c18_263, %c3_264], %219 {strides = array<i32>} : memref<2x1x22x22xf32, #tpu.memory_space<vmem>>, vector<1x1x1x16xf32>,
    %c0_265 = arith.constant 0 : index
    %c0_266 = arith.constant 0 : index
    %220 = memref.load %arg6[%c0_265, %c0_266] : memref<2x49xf32, #tpu.memory_space<smem>>
    %c0_267 = arith.constant 0 : index
    %c1_268 = arith.constant 1 : index
    %221 = memref.load %arg6[%c0_267, %c1_268] : memref<2x49xf32, #tpu.memory_space<smem>>
    %c0_269 = arith.constant 0 : index
    %c2 = arith.constant 2 : index
    %222 = memref.load %arg6[%c0_269, %c2] : memref<2x49xf32, #tpu.memory_space<smem>>
    %c0_270 = arith.constant 0 : index
    %c3_271 = arith.constant 3 : index
    %223 = memref.load %arg6[%c0_270, %c3_271] : memref<2x49xf32, #tpu.memory_space<smem>>
    %c0_272 = arith.constant 0 : index
    %c4_273 = arith.constant 4 : index
    %224 = memref.load %arg6[%c0_272, %c4_273] : memref<2x49xf32, #tpu.memory_space<smem>>
    %c0_274 = arith.constant 0 : index
    %c5_275 = arith.constant 5 : index
    %225 = memref.load %arg6[%c0_274, %c5_275] : memref<2x49xf32, #tpu.memory_space<smem>>
    %c0_276 = arith.constant 0 : index
    %c6_277 = arith.constant 6 : index
    %226 = memref.load %arg6[%c0_276, %c6_277] : memref<2x49xf32, #tpu.memory_space<smem>>
    %c0_278 = arith.constant 0 : index
    %c7_279 = arith.constant 7 : index
    %227 = memref.load %arg6[%c0_278, %c7_279] : memref<2x49xf32, #tpu.memory_space<smem>>
    %c0_280 = arith.constant 0 : index
    %c8_281 = arith.constant 8 : index
    %228 = memref.load %arg6[%c0_280, %c8_281] : memref<2x49xf32, #tpu.memory_space<smem>>
    %c0_282 = arith.constant 0 : index
    %c9_283 = arith.constant 9 : index
    %229 = memref.load %arg6[%c0_282, %c9_283] : memref<2x49xf32, #tpu.memory_space<smem>>
    %c0_284 = arith.constant 0 : index
    %c10_285 = arith.constant 10 : index
    %230 = memref.load %arg6[%c0_284, %c10_285] : memref<2x49xf32, #tpu.memory_space<smem>>
    %c0_286 = arith.constant 0 : index
    %c11_287 = arith.constant 11 : index
    %231 = memref.load %arg6[%c0_286, %c11_287] : memref<2x49xf32, #tpu.memory_space<smem>>
    %c0_288 = arith.constant 0 : index
    %c12_289 = arith.constant 12 : index
    %232 = memref.load %arg6[%c0_288, %c12_289] : memref<2x49xf32, #tpu.memory_space<smem>>
    %c0_290 = arith.constant 0 : index
    %c13_291 = arith.constant 13 : index
    %233 = memref.load %arg6[%c0_290, %c13_291] : memref<2x49xf32, #tpu.memory_space<smem>>
    %c0_292 = arith.constant 0 : index
    %c14_293 = arith.constant 14 : index
    %234 = memref.load %arg6[%c0_292, %c14_293] : memref<2x49xf32, #tpu.memory_space<smem>>
    %c0_294 = arith.constant 0 : index
    %c15_295 = arith.constant 15 : index
    %235 = memref.load %arg6[%c0_294, %c15_295] : memref<2x49xf32, #tpu.memory_space<smem>>
    %c0_296 = arith.constant 0 : index
    %c16_297 = arith.constant 16 : index
    %236 = memref.load %arg6[%c0_296, %c16_297] : memref<2x49xf32, #tpu.memory_space<smem>>
    %c0_298 = arith.constant 0 : index
    %c17_299 = arith.constant 17 : index
    %237 = memref.load %arg6[%c0_298, %c17_299] : memref<2x49xf32, #tpu.memory_space<smem>>
    %c0_300 = arith.constant 0 : index
    %c18_301 = arith.constant 18 : index
    %238 = memref.load %arg6[%c0_300, %c18_301] : memref<2x49xf32, #tpu.memory_space<smem>>
    %c0_302 = arith.constant 0 : index
    %c19 = arith.constant 19 : index
    %239 = memref.load %arg6[%c0_302, %c19] : memref<2x49xf32, #tpu.memory_space<smem>>
    %c0_303 = arith.constant 0 : index
    %c20 = arith.constant 20 : index
    %240 = memref.load %arg6[%c0_303, %c20] : memref<2x49xf32, #tpu.memory_space<smem>>
    %c0_304 = arith.constant 0 : index
    %c21 = arith.constant 21 : index
    %241 = memref.load %arg6[%c0_304, %c21] : memref<2x49xf32, #tpu.memory_space<smem>>
    %c0_305 = arith.constant 0 : index
    %c22 = arith.constant 22 : index
    %242 = memref.load %arg6[%c0_305, %c22] : memref<2x49xf32, #tpu.memory_space<smem>>
    %c0_306 = arith.constant 0 : index
    %c23 = arith.constant 23 : index
    %243 = memref.load %arg6[%c0_306, %c23] : memref<2x49xf32, #tpu.memory_space<smem>>
    %c0_307 = arith.constant 0 : index
    %c24 = arith.constant 24 : index
    %244 = memref.load %arg6[%c0_307, %c24] : memref<2x49xf32, #tpu.memory_space<smem>>
    %c0_308 = arith.constant 0 : index
    %c25 = arith.constant 25 : index
    %245 = memref.load %arg6[%c0_308, %c25] : memref<2x49xf32, #tpu.memory_space<smem>>
    %c0_309 = arith.constant 0 : index
    %c26 = arith.constant 26 : index
    %246 = memref.load %arg6[%c0_309, %c26] : memref<2x49xf32, #tpu.memory_space<smem>>
    %c0_310 = arith.constant 0 : index
    %c27 = arith.constant 27 : index
    %247 = memref.load %arg6[%c0_310, %c27] : memref<2x49xf32, #tpu.memory_space<smem>>
    %c0_311 = arith.constant 0 : index
    %c28 = arith.constant 28 : index
    %248 = memref.load %arg6[%c0_311, %c28] : memref<2x49xf32, #tpu.memory_space<smem>>
    %c0_312 = arith.constant 0 : index
    %c29 = arith.constant 29 : index
    %249 = memref.load %arg6[%c0_312, %c29] : memref<2x49xf32, #tpu.memory_space<smem>>
    %c0_313 = arith.constant 0 : index
    %c30 = arith.constant 30 : index
    %250 = memref.load %arg6[%c0_313, %c30] : memref<2x49xf32, #tpu.memory_space<smem>>
    %c0_314 = arith.constant 0 : index
    %c31 = arith.constant 31 : index
    %251 = memref.load %arg6[%c0_314, %c31] : memref<2x49xf32, #tpu.memory_space<smem>>
    %c0_315 = arith.constant 0 : index
    %c32_316 = arith.constant 32 : index
    %252 = memref.load %arg6[%c0_315, %c32_316] : memref<2x49xf32, #tpu.memory_space<smem>>
    %c0_317 = arith.constant 0 : index
    %c33 = arith.constant 33 : index
    %253 = memref.load %arg6[%c0_317, %c33] : memref<2x49xf32, #tpu.memory_space<smem>>
    %c0_318 = arith.constant 0 : index
    %c34 = arith.constant 34 : index
    %254 = memref.load %arg6[%c0_318, %c34] : memref<2x49xf32, #tpu.memory_space<smem>>
    %c0_319 = arith.constant 0 : index
    %c35 = arith.constant 35 : index
    %255 = memref.load %arg6[%c0_319, %c35] : memref<2x49xf32, #tpu.memory_space<smem>>
    %c0_320 = arith.constant 0 : index
    %c36 = arith.constant 36 : index
    %256 = memref.load %arg6[%c0_320, %c36] : memref<2x49xf32, #tpu.memory_space<smem>>
    %c0_321 = arith.constant 0 : index
    %c37 = arith.constant 37 : index
    %257 = memref.load %arg6[%c0_321, %c37] : memref<2x49xf32, #tpu.memory_space<smem>>
    %c0_322 = arith.constant 0 : index
    %c38 = arith.constant 38 : index
    %258 = memref.load %arg6[%c0_322, %c38] : memref<2x49xf32, #tpu.memory_space<smem>>
    %c0_323 = arith.constant 0 : index
    %c39 = arith.constant 39 : index
    %259 = memref.load %arg6[%c0_323, %c39] : memref<2x49xf32, #tpu.memory_space<smem>>
    %c0_324 = arith.constant 0 : index
    %c40 = arith.constant 40 : index
    %260 = memref.load %arg6[%c0_324, %c40] : memref<2x49xf32, #tpu.memory_space<smem>>
    %c0_325 = arith.constant 0 : index
    %c41 = arith.constant 41 : index
    %261 = memref.load %arg6[%c0_325, %c41] : memref<2x49xf32, #tpu.memory_space<smem>>
    %c0_326 = arith.constant 0 : index
    %c42 = arith.constant 42 : index
    %262 = memref.load %arg6[%c0_326, %c42] : memref<2x49xf32, #tpu.memory_space<smem>>
    %c0_327 = arith.constant 0 : index
    %c43 = arith.constant 43 : index
    %263 = memref.load %arg6[%c0_327, %c43] : memref<2x49xf32, #tpu.memory_space<smem>>
    %c0_328 = arith.constant 0 : index
    %c44 = arith.constant 44 : index
    %264 = memref.load %arg6[%c0_328, %c44] : memref<2x49xf32, #tpu.memory_space<smem>>
    %c0_329 = arith.constant 0 : index
    %c45 = arith.constant 45 : index
    %265 = memref.load %arg6[%c0_329, %c45] : memref<2x49xf32, #tpu.memory_space<smem>>
    %c0_330 = arith.constant 0 : index
    %c46 = arith.constant 46 : index
    %266 = memref.load %arg6[%c0_330, %c46] : memref<2x49xf32, #tpu.memory_space<smem>>
    %c0_331 = arith.constant 0 : index
    %c47 = arith.constant 47 : index
    %267 = memref.load %arg6[%c0_331, %c47] : memref<2x49xf32, #tpu.memory_space<smem>>
    %c0_332 = arith.constant 0 : index
    %c48_333 = arith.constant 48 : index
    %268 = memref.load %arg6[%c0_332, %c48_333] : memref<2x49xf32, #tpu.memory_space<smem>>
    %c1_334 = arith.constant 1 : index
    %c0_335 = arith.constant 0 : index
    %269 = memref.load %arg6[%c1_334, %c0_335] : memref<2x49xf32, #tpu.memory_space<smem>>
    %c1_336 = arith.constant 1 : index
    %c1_337 = arith.constant 1 : index
    %270 = memref.load %arg6[%c1_336, %c1_337] : memref<2x49xf32, #tpu.memory_space<smem>>
    %c1_338 = arith.constant 1 : index
    %c2_339 = arith.constant 2 : index
    %271 = memref.load %arg6[%c1_338, %c2_339] : memref<2x49xf32, #tpu.memory_space<smem>>
    %c1_340 = arith.constant 1 : index
    %c3_341 = arith.constant 3 : index
    %272 = memref.load %arg6[%c1_340, %c3_341] : memref<2x49xf32, #tpu.memory_space<smem>>
    %c1_342 = arith.constant 1 : index
    %c4_343 = arith.constant 4 : index
    %273 = memref.load %arg6[%c1_342, %c4_343] : memref<2x49xf32, #tpu.memory_space<smem>>
    %c1_344 = arith.constant 1 : index
    %c5_345 = arith.constant 5 : index
    %274 = memref.load %arg6[%c1_344, %c5_345] : memref<2x49xf32, #tpu.memory_space<smem>>
    %c1_346 = arith.constant 1 : index
    %c6_347 = arith.constant 6 : index
    %275 = memref.load %arg6[%c1_346, %c6_347] : memref<2x49xf32, #tpu.memory_space<smem>>
    %c1_348 = arith.constant 1 : index
    %c7_349 = arith.constant 7 : index
    %276 = memref.load %arg6[%c1_348, %c7_349] : memref<2x49xf32, #tpu.memory_space<smem>>
    %c1_350 = arith.constant 1 : index
    %c8_351 = arith.constant 8 : index
    %277 = memref.load %arg6[%c1_350, %c8_351] : memref<2x49xf32, #tpu.memory_space<smem>>
    %c1_352 = arith.constant 1 : index
    %c9_353 = arith.constant 9 : index
    %278 = memref.load %arg6[%c1_352, %c9_353] : memref<2x49xf32, #tpu.memory_space<smem>>
    %c1_354 = arith.constant 1 : index
    %c10_355 = arith.constant 10 : index
    %279 = memref.load %arg6[%c1_354, %c10_355] : memref<2x49xf32, #tpu.memory_space<smem>>
    %c1_356 = arith.constant 1 : index
    %c11_357 = arith.constant 11 : index
    %280 = memref.load %arg6[%c1_356, %c11_357] : memref<2x49xf32, #tpu.memory_space<smem>>
    %c1_358 = arith.constant 1 : index
    %c12_359 = arith.constant 12 : index
    %281 = memref.load %arg6[%c1_358, %c12_359] : memref<2x49xf32, #tpu.memory_space<smem>>
    %c1_360 = arith.constant 1 : index
    %c13_361 = arith.constant 13 : index
    %282 = memref.load %arg6[%c1_360, %c13_361] : memref<2x49xf32, #tpu.memory_space<smem>>
    %c1_362 = arith.constant 1 : index
    %c14_363 = arith.constant 14 : index
    %283 = memref.load %arg6[%c1_362, %c14_363] : memref<2x49xf32, #tpu.memory_space<smem>>
    %c1_364 = arith.constant 1 : index
    %c15_365 = arith.constant 15 : index
    %284 = memref.load %arg6[%c1_364, %c15_365] : memref<2x49xf32, #tpu.memory_space<smem>>
    %c1_366 = arith.constant 1 : index
    %c16_367 = arith.constant 16 : index
    %285 = memref.load %arg6[%c1_366, %c16_367] : memref<2x49xf32, #tpu.memory_space<smem>>
    %c1_368 = arith.constant 1 : index
    %c17_369 = arith.constant 17 : index
    %286 = memref.load %arg6[%c1_368, %c17_369] : memref<2x49xf32, #tpu.memory_space<smem>>
    %c1_370 = arith.constant 1 : index
    %c18_371 = arith.constant 18 : index
    %287 = memref.load %arg6[%c1_370, %c18_371] : memref<2x49xf32, #tpu.memory_space<smem>>
    %c1_372 = arith.constant 1 : index
    %c19_373 = arith.constant 19 : index
    %288 = memref.load %arg6[%c1_372, %c19_373] : memref<2x49xf32, #tpu.memory_space<smem>>
    %c1_374 = arith.constant 1 : index
    %c20_375 = arith.constant 20 : index
    %289 = memref.load %arg6[%c1_374, %c20_375] : memref<2x49xf32, #tpu.memory_space<smem>>
    %c1_376 = arith.constant 1 : index
    %c21_377 = arith.constant 21 : index
    %290 = memref.load %arg6[%c1_376, %c21_377] : memref<2x49xf32, #tpu.memory_space<smem>>
    %c1_378 = arith.constant 1 : index
    %c22_379 = arith.constant 22 : index
    %291 = memref.load %arg6[%c1_378, %c22_379] : memref<2x49xf32, #tpu.memory_space<smem>>
    %c1_380 = arith.constant 1 : index
    %c23_381 = arith.constant 23 : index
    %292 = memref.load %arg6[%c1_380, %c23_381] : memref<2x49xf32, #tpu.memory_space<smem>>
    %c1_382 = arith.constant 1 : index
    %c24_383 = arith.constant 24 : index
    %293 = memref.load %arg6[%c1_382, %c24_383] : memref<2x49xf32, #tpu.memory_space<smem>>
    %c1_384 = arith.constant 1 : index
    %c25_385 = arith.constant 25 : index
    %294 = memref.load %arg6[%c1_384, %c25_385] : memref<2x49xf32, #tpu.memory_space<smem>>
    %c1_386 = arith.constant 1 : index
    %c26_387 = arith.constant 26 : index
    %295 = memref.load %arg6[%c1_386, %c26_387] : memref<2x49xf32, #tpu.memory_space<smem>>
    %c1_388 = arith.constant 1 : index
    %c27_389 = arith.constant 27 : index
    %296 = memref.load %arg6[%c1_388, %c27_389] : memref<2x49xf32, #tpu.memory_space<smem>>
    %c1_390 = arith.constant 1 : index
    %c28_391 = arith.constant 28 : index
    %297 = memref.load %arg6[%c1_390, %c28_391] : memref<2x49xf32, #tpu.memory_space<smem>>
    %c1_392 = arith.constant 1 : index
    %c29_393 = arith.constant 29 : index
    %298 = memref.load %arg6[%c1_392, %c29_393] : memref<2x49xf32, #tpu.memory_space<smem>>
    %c1_394 = arith.constant 1 : index
    %c30_395 = arith.constant 30 : index
    %299 = memref.load %arg6[%c1_394, %c30_395] : memref<2x49xf32, #tpu.memory_space<smem>>
    %c1_396 = arith.constant 1 : index
    %c31_397 = arith.constant 31 : index
    %300 = memref.load %arg6[%c1_396, %c31_397] : memref<2x49xf32, #tpu.memory_space<smem>>
    %c1_398 = arith.constant 1 : index
    %c32_399 = arith.constant 32 : index
    %301 = memref.load %arg6[%c1_398, %c32_399] : memref<2x49xf32, #tpu.memory_space<smem>>
    %c1_400 = arith.constant 1 : index
    %c33_401 = arith.constant 33 : index
    %302 = memref.load %arg6[%c1_400, %c33_401] : memref<2x49xf32, #tpu.memory_space<smem>>
    %c1_402 = arith.constant 1 : index
    %c34_403 = arith.constant 34 : index
    %303 = memref.load %arg6[%c1_402, %c34_403] : memref<2x49xf32, #tpu.memory_space<smem>>
    %c1_404 = arith.constant 1 : index
    %c35_405 = arith.constant 35 : index
    %304 = memref.load %arg6[%c1_404, %c35_405] : memref<2x49xf32, #tpu.memory_space<smem>>
    %c1_406 = arith.constant 1 : index
    %c36_407 = arith.constant 36 : index
    %305 = memref.load %arg6[%c1_406, %c36_407] : memref<2x49xf32, #tpu.memory_space<smem>>
    %c1_408 = arith.constant 1 : index
    %c37_409 = arith.constant 37 : index
    %306 = memref.load %arg6[%c1_408, %c37_409] : memref<2x49xf32, #tpu.memory_space<smem>>
    %c1_410 = arith.constant 1 : index
    %c38_411 = arith.constant 38 : index
    %307 = memref.load %arg6[%c1_410, %c38_411] : memref<2x49xf32, #tpu.memory_space<smem>>
    %c1_412 = arith.constant 1 : index
    %c39_413 = arith.constant 39 : index
    %308 = memref.load %arg6[%c1_412, %c39_413] : memref<2x49xf32, #tpu.memory_space<smem>>
    %c1_414 = arith.constant 1 : index
    %c40_415 = arith.constant 40 : index
    %309 = memref.load %arg6[%c1_414, %c40_415] : memref<2x49xf32, #tpu.memory_space<smem>>
    %c1_416 = arith.constant 1 : index
    %c41_417 = arith.constant 41 : index
    %310 = memref.load %arg6[%c1_416, %c41_417] : memref<2x49xf32, #tpu.memory_space<smem>>
    %c1_418 = arith.constant 1 : index
    %c42_419 = arith.constant 42 : index
    %311 = memref.load %arg6[%c1_418, %c42_419] : memref<2x49xf32, #tpu.memory_space<smem>>
    %c1_420 = arith.constant 1 : index
    %c43_421 = arith.constant 43 : index
    %312 = memref.load %arg6[%c1_420, %c43_421] : memref<2x49xf32, #tpu.memory_space<smem>>
    %c1_422 = arith.constant 1 : index
    %c44_423 = arith.constant 44 : index
    %313 = memref.load %arg6[%c1_422, %c44_423] : memref<2x49xf32, #tpu.memory_space<smem>>
    %c1_424 = arith.constant 1 : index
    %c45_425 = arith.constant 45 : index
    %314 = memref.load %arg6[%c1_424, %c45_425] : memref<2x49xf32, #tpu.memory_space<smem>>
    %c1_426 = arith.constant 1 : index
    %c46_427 = arith.constant 46 : index
    %315 = memref.load %arg6[%c1_426, %c46_427] : memref<2x49xf32, #tpu.memory_space<smem>>
    %c1_428 = arith.constant 1 : index
    %c47_429 = arith.constant 47 : index
    %316 = memref.load %arg6[%c1_428, %c47_429] : memref<2x49xf32, #tpu.memory_space<smem>>
    %c1_430 = arith.constant 1 : index
    %c48_431 = arith.constant 48 : index
    %317 = memref.load %arg6[%c1_430, %c48_431] : memref<2x49xf32, #tpu.memory_space<smem>>
    %c0_432 = arith.constant 0 : index
    %c0_433 = arith.constant 0 : index
    %c0_434 = arith.constant 0 : index
    %c0_435 = arith.constant 0 : index
    %318 = vector.load %arg9[%c0_432, %c0_433, %c0_434, %c0_435] : memref<2x1x22x22xf32, #tpu.memory_space<vmem>>, vector<1x1x16x16xf32>
    %319 = vector.shape_cast %318 : vector<1x1x16x16xf32> to vector<1x16x16xf32>
    %320 = vector.broadcast %220 : f32 to vector<1x16x16xf32>
    %321 = arith.mulf %320, %319 : vector<1x16x16xf32>
    %c1_436 = arith.constant 1 : index
    %c0_437 = arith.constant 0 : index
    %c0_438 = arith.constant 0 : index
    %c0_439 = arith.constant 0 : index
    %322 = vector.load %arg9[%c1_436, %c0_437, %c0_438, %c0_439] : memref<2x1x22x22xf32, #tpu.memory_space<vmem>>, vector<1x1x16x16xf32>
    %323 = vector.shape_cast %322 : vector<1x1x16x16xf32> to vector<1x16x16xf32>
    %324 = vector.broadcast %269 : f32 to vector<1x16x16xf32>
    %325 = arith.mulf %324, %323 : vector<1x16x16xf32>
    %c0_440 = arith.constant 0 : index
    %c0_441 = arith.constant 0 : index
    %c0_442 = arith.constant 0 : index
    %c1_443 = arith.constant 1 : index
    %326 = vector.load %arg9[%c0_440, %c0_441, %c0_442, %c1_443] : memref<2x1x22x22xf32, #tpu.memory_space<vmem>>, vector<1x1x16x16xf32>
    %327 = vector.shape_cast %326 : vector<1x1x16x16xf32> to vector<1x16x16xf32>
    %328 = vector.broadcast %221 : f32 to vector<1x16x16xf32>
    %329 = arith.mulf %328, %327 : vector<1x16x16xf32>
    %c1_444 = arith.constant 1 : index
    %c0_445 = arith.constant 0 : index
    %c0_446 = arith.constant 0 : index
    %c1_447 = arith.constant 1 : index
    %330 = vector.load %arg9[%c1_444, %c0_445, %c0_446, %c1_447] : memref<2x1x22x22xf32, #tpu.memory_space<vmem>>, vector<1x1x16x16xf32>
    %331 = vector.shape_cast %330 : vector<1x1x16x16xf32> to vector<1x16x16xf32>
    %332 = vector.broadcast %270 : f32 to vector<1x16x16xf32>
    %333 = arith.mulf %332, %331 : vector<1x16x16xf32>
    %334 = arith.addf %321, %329 : vector<1x16x16xf32>
    %335 = arith.addf %325, %333 : vector<1x16x16xf32>
    %c0_448 = arith.constant 0 : index
    %c0_449 = arith.constant 0 : index
    %c0_450 = arith.constant 0 : index
    %c2_451 = arith.constant 2 : index
    %336 = vector.load %arg9[%c0_448, %c0_449, %c0_450, %c2_451] : memref<2x1x22x22xf32, #tpu.memory_space<vmem>>, vector<1x1x16x16xf32>
    %337 = vector.shape_cast %336 : vector<1x1x16x16xf32> to vector<1x16x16xf32>
    %338 = vector.broadcast %222 : f32 to vector<1x16x16xf32>
    %339 = arith.mulf %338, %337 : vector<1x16x16xf32>
    %c1_452 = arith.constant 1 : index
    %c0_453 = arith.constant 0 : index
    %c0_454 = arith.constant 0 : index
    %c2_455 = arith.constant 2 : index
    %340 = vector.load %arg9[%c1_452, %c0_453, %c0_454, %c2_455] : memref<2x1x22x22xf32, #tpu.memory_space<vmem>>, vector<1x1x16x16xf32>
    %341 = vector.shape_cast %340 : vector<1x1x16x16xf32> to vector<1x16x16xf32>
    %342 = vector.broadcast %271 : f32 to vector<1x16x16xf32>
    %343 = arith.mulf %342, %341 : vector<1x16x16xf32>
    %344 = arith.addf %334, %339 : vector<1x16x16xf32>
    %345 = arith.addf %335, %343 : vector<1x16x16xf32>
    %c0_456 = arith.constant 0 : index
    %c0_457 = arith.constant 0 : index
    %c0_458 = arith.constant 0 : index
    %c3_459 = arith.constant 3 : index
    %346 = vector.load %arg9[%c0_456, %c0_457, %c0_458, %c3_459] : memref<2x1x22x22xf32, #tpu.memory_space<vmem>>, vector<1x1x16x16xf32>
    %347 = vector.shape_cast %346 : vector<1x1x16x16xf32> to vector<1x16x16xf32>
    %348 = vector.broadcast %223 : f32 to vector<1x16x16xf32>
    %349 = arith.mulf %348, %347 : vector<1x16x16xf32>
    %c1_460 = arith.constant 1 : index
    %c0_461 = arith.constant 0 : index
    %c0_462 = arith.constant 0 : index
    %c3_463 = arith.constant 3 : index
    %350 = vector.load %arg9[%c1_460, %c0_461, %c0_462, %c3_463] : memref<2x1x22x22xf32, #tpu.memory_space<vmem>>, vector<1x1x16x16xf32>
    %351 = vector.shape_cast %350 : vector<1x1x16x16xf32> to vector<1x16x16xf32>
    %352 = vector.broadcast %272 : f32 to vector<1x16x16xf32>
    %353 = arith.mulf %352, %351 : vector<1x16x16xf32>
    %354 = arith.addf %344, %349 : vector<1x16x16xf32>
    %355 = arith.addf %345, %353 : vector<1x16x16xf32>
    %c0_464 = arith.constant 0 : index
    %c0_465 = arith.constant 0 : index
    %c0_466 = arith.constant 0 : index
    %c4_467 = arith.constant 4 : index
    %356 = vector.load %arg9[%c0_464, %c0_465, %c0_466, %c4_467] : memref<2x1x22x22xf32, #tpu.memory_space<vmem>>, vector<1x1x16x16xf32>
    %357 = vector.shape_cast %356 : vector<1x1x16x16xf32> to vector<1x16x16xf32>
    %358 = vector.broadcast %224 : f32 to vector<1x16x16xf32>
    %359 = arith.mulf %358, %357 : vector<1x16x16xf32>
    %c1_468 = arith.constant 1 : index
    %c0_469 = arith.constant 0 : index
    %c0_470 = arith.constant 0 : index
    %c4_471 = arith.constant 4 : index
    %360 = vector.load %arg9[%c1_468, %c0_469, %c0_470, %c4_471] : memref<2x1x22x22xf32, #tpu.memory_space<vmem>>, vector<1x1x16x16xf32>
    %361 = vector.shape_cast %360 : vector<1x1x16x16xf32> to vector<1x16x16xf32>
    %362 = vector.broadcast %273 : f32 to vector<1x16x16xf32>
    %363 = arith.mulf %362, %361 : vector<1x16x16xf32>
    %364 = arith.addf %354, %359 : vector<1x16x16xf32>
    %365 = arith.addf %355, %363 : vector<1x16x16xf32>
    %c0_472 = arith.constant 0 : index
    %c0_473 = arith.constant 0 : index
    %c0_474 = arith.constant 0 : index
    %c5_475 = arith.constant 5 : index
    %366 = vector.load %arg9[%c0_472, %c0_473, %c0_474, %c5_475] : memref<2x1x22x22xf32, #tpu.memory_space<vmem>>, vector<1x1x16x16xf32>
    %367 = vector.shape_cast %366 : vector<1x1x16x16xf32> to vector<1x16x16xf32>
    %368 = vector.broadcast %225 : f32 to vector<1x16x16xf32>
    %369 = arith.mulf %368, %367 : vector<1x16x16xf32>
    %c1_476 = arith.constant 1 : index
    %c0_477 = arith.constant 0 : index
    %c0_478 = arith.constant 0 : index
    %c5_479 = arith.constant 5 : index
    %370 = vector.load %arg9[%c1_476, %c0_477, %c0_478, %c5_479] : memref<2x1x22x22xf32, #tpu.memory_space<vmem>>, vector<1x1x16x16xf32>
    %371 = vector.shape_cast %370 : vector<1x1x16x16xf32> to vector<1x16x16xf32>
    %372 = vector.broadcast %274 : f32 to vector<1x16x16xf32>
    %373 = arith.mulf %372, %371 : vector<1x16x16xf32>
    %374 = arith.addf %364, %369 : vector<1x16x16xf32>
    %375 = arith.addf %365, %373 : vector<1x16x16xf32>
    %c0_480 = arith.constant 0 : index
    %c0_481 = arith.constant 0 : index
    %c0_482 = arith.constant 0 : index
    %c6_483 = arith.constant 6 : index
    %376 = vector.load %arg9[%c0_480, %c0_481, %c0_482, %c6_483] : memref<2x1x22x22xf32, #tpu.memory_space<vmem>>, vector<1x1x16x16xf32>
    %377 = vector.shape_cast %376 : vector<1x1x16x16xf32> to vector<1x16x16xf32>
    %378 = vector.broadcast %226 : f32 to vector<1x16x16xf32>
    %379 = arith.mulf %378, %377 : vector<1x16x16xf32>
    %c1_484 = arith.constant 1 : index
    %c0_485 = arith.constant 0 : index
    %c0_486 = arith.constant 0 : index
    %c6_487 = arith.constant 6 : index
    %380 = vector.load %arg9[%c1_484, %c0_485, %c0_486, %c6_487] : memref<2x1x22x22xf32, #tpu.memory_space<vmem>>, vector<1x1x16x16xf32>
    %381 = vector.shape_cast %380 : vector<1x1x16x16xf32> to vector<1x16x16xf32>
    %382 = vector.broadcast %275 : f32 to vector<1x16x16xf32>
    %383 = arith.mulf %382, %381 : vector<1x16x16xf32>
    %384 = arith.addf %374, %379 : vector<1x16x16xf32>
    %385 = arith.addf %375, %383 : vector<1x16x16xf32>
    %386 = arith.addf %384, %385 : vector<1x16x16xf32>
    %c0_488 = arith.constant 0 : index
    %c0_489 = arith.constant 0 : index
    %c1_490 = arith.constant 1 : index
    %c0_491 = arith.constant 0 : index
    %387 = vector.load %arg9[%c0_488, %c0_489, %c1_490, %c0_491] : memref<2x1x22x22xf32, #tpu.memory_space<vmem>>, vector<1x1x16x16xf32>
    %388 = vector.shape_cast %387 : vector<1x1x16x16xf32> to vector<1x16x16xf32>
    %389 = vector.broadcast %227 : f32 to vector<1x16x16xf32>
    %390 = arith.mulf %389, %388 : vector<1x16x16xf32>
    %c1_492 = arith.constant 1 : index
    %c0_493 = arith.constant 0 : index
    %c1_494 = arith.constant 1 : index
    %c0_495 = arith.constant 0 : index
    %391 = vector.load %arg9[%c1_492, %c0_493, %c1_494, %c0_495] : memref<2x1x22x22xf32, #tpu.memory_space<vmem>>, vector<1x1x16x16xf32>
    %392 = vector.shape_cast %391 : vector<1x1x16x16xf32> to vector<1x16x16xf32>
    %393 = vector.broadcast %276 : f32 to vector<1x16x16xf32>
    %394 = arith.mulf %393, %392 : vector<1x16x16xf32>
    %c0_496 = arith.constant 0 : index
    %c0_497 = arith.constant 0 : index
    %c1_498 = arith.constant 1 : index
    %c1_499 = arith.constant 1 : index
    %395 = vector.load %arg9[%c0_496, %c0_497, %c1_498, %c1_499] : memref<2x1x22x22xf32, #tpu.memory_space<vmem>>, vector<1x1x16x16xf32>
    %396 = vector.shape_cast %395 : vector<1x1x16x16xf32> to vector<1x16x16xf32>
    %397 = vector.broadcast %228 : f32 to vector<1x16x16xf32>
    %398 = arith.mulf %397, %396 : vector<1x16x16xf32>
    %c1_500 = arith.constant 1 : index
    %c0_501 = arith.constant 0 : index
    %c1_502 = arith.constant 1 : index
    %c1_503 = arith.constant 1 : index
    %399 = vector.load %arg9[%c1_500, %c0_501, %c1_502, %c1_503] : memref<2x1x22x22xf32, #tpu.memory_space<vmem>>, vector<1x1x16x16xf32>
    %400 = vector.shape_cast %399 : vector<1x1x16x16xf32> to vector<1x16x16xf32>
    %401 = vector.broadcast %277 : f32 to vector<1x16x16xf32>
    %402 = arith.mulf %401, %400 : vector<1x16x16xf32>
    %403 = arith.addf %390, %398 : vector<1x16x16xf32>
    %404 = arith.addf %394, %402 : vector<1x16x16xf32>
    %c0_504 = arith.constant 0 : index
    %c0_505 = arith.constant 0 : index
    %c1_506 = arith.constant 1 : index
    %c2_507 = arith.constant 2 : index
    %405 = vector.load %arg9[%c0_504, %c0_505, %c1_506, %c2_507] : memref<2x1x22x22xf32, #tpu.memory_space<vmem>>, vector<1x1x16x16xf32>
    %406 = vector.shape_cast %405 : vector<1x1x16x16xf32> to vector<1x16x16xf32>
    %407 = vector.broadcast %229 : f32 to vector<1x16x16xf32>
    %408 = arith.mulf %407, %406 : vector<1x16x16xf32>
    %c1_508 = arith.constant 1 : index
    %c0_509 = arith.constant 0 : index
    %c1_510 = arith.constant 1 : index
    %c2_511 = arith.constant 2 : index
    %409 = vector.load %arg9[%c1_508, %c0_509, %c1_510, %c2_511] : memref<2x1x22x22xf32, #tpu.memory_space<vmem>>, vector<1x1x16x16xf32>
    %410 = vector.shape_cast %409 : vector<1x1x16x16xf32> to vector<1x16x16xf32>
    %411 = vector.broadcast %278 : f32 to vector<1x16x16xf32>
    %412 = arith.mulf %411, %410 : vector<1x16x16xf32>
    %413 = arith.addf %403, %408 : vector<1x16x16xf32>
    %414 = arith.addf %404, %412 : vector<1x16x16xf32>
    %c0_512 = arith.constant 0 : index
    %c0_513 = arith.constant 0 : index
    %c1_514 = arith.constant 1 : index
    %c3_515 = arith.constant 3 : index
    %415 = vector.load %arg9[%c0_512, %c0_513, %c1_514, %c3_515] : memref<2x1x22x22xf32, #tpu.memory_space<vmem>>, vector<1x1x16x16xf32>
    %416 = vector.shape_cast %415 : vector<1x1x16x16xf32> to vector<1x16x16xf32>
    %417 = vector.broadcast %230 : f32 to vector<1x16x16xf32>
    %418 = arith.mulf %417, %416 : vector<1x16x16xf32>
    %c1_516 = arith.constant 1 : index
    %c0_517 = arith.constant 0 : index
    %c1_518 = arith.constant 1 : index
    %c3_519 = arith.constant 3 : index
    %419 = vector.load %arg9[%c1_516, %c0_517, %c1_518, %c3_519] : memref<2x1x22x22xf32, #tpu.memory_space<vmem>>, vector<1x1x16x16xf32>
    %420 = vector.shape_cast %419 : vector<1x1x16x16xf32> to vector<1x16x16xf32>
    %421 = vector.broadcast %279 : f32 to vector<1x16x16xf32>
    %422 = arith.mulf %421, %420 : vector<1x16x16xf32>
    %423 = arith.addf %413, %418 : vector<1x16x16xf32>
    %424 = arith.addf %414, %422 : vector<1x16x16xf32>
    %c0_520 = arith.constant 0 : index
    %c0_521 = arith.constant 0 : index
    %c1_522 = arith.constant 1 : index
    %c4_523 = arith.constant 4 : index
    %425 = vector.load %arg9[%c0_520, %c0_521, %c1_522, %c4_523] : memref<2x1x22x22xf32, #tpu.memory_space<vmem>>, vector<1x1x16x16xf32>
    %426 = vector.shape_cast %425 : vector<1x1x16x16xf32> to vector<1x16x16xf32>
    %427 = vector.broadcast %231 : f32 to vector<1x16x16xf32>
    %428 = arith.mulf %427, %426 : vector<1x16x16xf32>
    %c1_524 = arith.constant 1 : index
    %c0_525 = arith.constant 0 : index
    %c1_526 = arith.constant 1 : index
    %c4_527 = arith.constant 4 : index
    %429 = vector.load %arg9[%c1_524, %c0_525, %c1_526, %c4_527] : memref<2x1x22x22xf32, #tpu.memory_space<vmem>>, vector<1x1x16x16xf32>
    %430 = vector.shape_cast %429 : vector<1x1x16x16xf32> to vector<1x16x16xf32>
    %431 = vector.broadcast %280 : f32 to vector<1x16x16xf32>
    %432 = arith.mulf %431, %430 : vector<1x16x16xf32>
    %433 = arith.addf %423, %428 : vector<1x16x16xf32>
    %434 = arith.addf %424, %432 : vector<1x16x16xf32>
    %c0_528 = arith.constant 0 : index
    %c0_529 = arith.constant 0 : index
    %c1_530 = arith.constant 1 : index
    %c5_531 = arith.constant 5 : index
    %435 = vector.load %arg9[%c0_528, %c0_529, %c1_530, %c5_531] : memref<2x1x22x22xf32, #tpu.memory_space<vmem>>, vector<1x1x16x16xf32>
    %436 = vector.shape_cast %435 : vector<1x1x16x16xf32> to vector<1x16x16xf32>
    %437 = vector.broadcast %232 : f32 to vector<1x16x16xf32>
    %438 = arith.mulf %437, %436 : vector<1x16x16xf32>
    %c1_532 = arith.constant 1 : index
    %c0_533 = arith.constant 0 : index
    %c1_534 = arith.constant 1 : index
    %c5_535 = arith.constant 5 : index
    %439 = vector.load %arg9[%c1_532, %c0_533, %c1_534, %c5_535] : memref<2x1x22x22xf32, #tpu.memory_space<vmem>>, vector<1x1x16x16xf32>
    %440 = vector.shape_cast %439 : vector<1x1x16x16xf32> to vector<1x16x16xf32>
    %441 = vector.broadcast %281 : f32 to vector<1x16x16xf32>
    %442 = arith.mulf %441, %440 : vector<1x16x16xf32>
    %443 = arith.addf %433, %438 : vector<1x16x16xf32>
    %444 = arith.addf %434, %442 : vector<1x16x16xf32>
    %c0_536 = arith.constant 0 : index
    %c0_537 = arith.constant 0 : index
    %c1_538 = arith.constant 1 : index
    %c6_539 = arith.constant 6 : index
    %445 = vector.load %arg9[%c0_536, %c0_537, %c1_538, %c6_539] : memref<2x1x22x22xf32, #tpu.memory_space<vmem>>, vector<1x1x16x16xf32>
    %446 = vector.shape_cast %445 : vector<1x1x16x16xf32> to vector<1x16x16xf32>
    %447 = vector.broadcast %233 : f32 to vector<1x16x16xf32>
    %448 = arith.mulf %447, %446 : vector<1x16x16xf32>
    %c1_540 = arith.constant 1 : index
    %c0_541 = arith.constant 0 : index
    %c1_542 = arith.constant 1 : index
    %c6_543 = arith.constant 6 : index
    %449 = vector.load %arg9[%c1_540, %c0_541, %c1_542, %c6_543] : memref<2x1x22x22xf32, #tpu.memory_space<vmem>>, vector<1x1x16x16xf32>
    %450 = vector.shape_cast %449 : vector<1x1x16x16xf32> to vector<1x16x16xf32>
    %451 = vector.broadcast %282 : f32 to vector<1x16x16xf32>
    %452 = arith.mulf %451, %450 : vector<1x16x16xf32>
    %453 = arith.addf %443, %448 : vector<1x16x16xf32>
    %454 = arith.addf %444, %452 : vector<1x16x16xf32>
    %455 = arith.addf %453, %454 : vector<1x16x16xf32>
    %c0_544 = arith.constant 0 : index
    %c0_545 = arith.constant 0 : index
    %c2_546 = arith.constant 2 : index
    %c0_547 = arith.constant 0 : index
    %456 = vector.load %arg9[%c0_544, %c0_545, %c2_546, %c0_547] : memref<2x1x22x22xf32, #tpu.memory_space<vmem>>, vector<1x1x16x16xf32>
    %457 = vector.shape_cast %456 : vector<1x1x16x16xf32> to vector<1x16x16xf32>
    %458 = vector.broadcast %234 : f32 to vector<1x16x16xf32>
    %459 = arith.mulf %458, %457 : vector<1x16x16xf32>
    %c1_548 = arith.constant 1 : index
    %c0_549 = arith.constant 0 : index
    %c2_550 = arith.constant 2 : index
    %c0_551 = arith.constant 0 : index
    %460 = vector.load %arg9[%c1_548, %c0_549, %c2_550, %c0_551] : memref<2x1x22x22xf32, #tpu.memory_space<vmem>>, vector<1x1x16x16xf32>
    %461 = vector.shape_cast %460 : vector<1x1x16x16xf32> to vector<1x16x16xf32>
    %462 = vector.broadcast %283 : f32 to vector<1x16x16xf32>
    %463 = arith.mulf %462, %461 : vector<1x16x16xf32>
    %c0_552 = arith.constant 0 : index
    %c0_553 = arith.constant 0 : index
    %c2_554 = arith.constant 2 : index
    %c1_555 = arith.constant 1 : index
    %464 = vector.load %arg9[%c0_552, %c0_553, %c2_554, %c1_555] : memref<2x1x22x22xf32, #tpu.memory_space<vmem>>, vector<1x1x16x16xf32>
    %465 = vector.shape_cast %464 : vector<1x1x16x16xf32> to vector<1x16x16xf32>
    %466 = vector.broadcast %235 : f32 to vector<1x16x16xf32>
    %467 = arith.mulf %466, %465 : vector<1x16x16xf32>
    %c1_556 = arith.constant 1 : index
    %c0_557 = arith.constant 0 : index
    %c2_558 = arith.constant 2 : index
    %c1_559 = arith.constant 1 : index
    %468 = vector.load %arg9[%c1_556, %c0_557, %c2_558, %c1_559] : memref<2x1x22x22xf32, #tpu.memory_space<vmem>>, vector<1x1x16x16xf32>
    %469 = vector.shape_cast %468 : vector<1x1x16x16xf32> to vector<1x16x16xf32>
    %470 = vector.broadcast %284 : f32 to vector<1x16x16xf32>
    %471 = arith.mulf %470, %469 : vector<1x16x16xf32>
    %472 = arith.addf %459, %467 : vector<1x16x16xf32>
    %473 = arith.addf %463, %471 : vector<1x16x16xf32>
    %c0_560 = arith.constant 0 : index
    %c0_561 = arith.constant 0 : index
    %c2_562 = arith.constant 2 : index
    %c2_563 = arith.constant 2 : index
    %474 = vector.load %arg9[%c0_560, %c0_561, %c2_562, %c2_563] : memref<2x1x22x22xf32, #tpu.memory_space<vmem>>, vector<1x1x16x16xf32>
    %475 = vector.shape_cast %474 : vector<1x1x16x16xf32> to vector<1x16x16xf32>
    %476 = vector.broadcast %236 : f32 to vector<1x16x16xf32>
    %477 = arith.mulf %476, %475 : vector<1x16x16xf32>
    %c1_564 = arith.constant 1 : index
    %c0_565 = arith.constant 0 : index
    %c2_566 = arith.constant 2 : index
    %c2_567 = arith.constant 2 : index
    %478 = vector.load %arg9[%c1_564, %c0_565, %c2_566, %c2_567] : memref<2x1x22x22xf32, #tpu.memory_space<vmem>>, vector<1x1x16x16xf32>
    %479 = vector.shape_cast %478 : vector<1x1x16x16xf32> to vector<1x16x16xf32>
    %480 = vector.broadcast %285 : f32 to vector<1x16x16xf32>
    %481 = arith.mulf %480, %479 : vector<1x16x16xf32>
    %482 = arith.addf %472, %477 : vector<1x16x16xf32>
    %483 = arith.addf %473, %481 : vector<1x16x16xf32>
    %c0_568 = arith.constant 0 : index
    %c0_569 = arith.constant 0 : index
    %c2_570 = arith.constant 2 : index
    %c3_571 = arith.constant 3 : index
    %484 = vector.load %arg9[%c0_568, %c0_569, %c2_570, %c3_571] : memref<2x1x22x22xf32, #tpu.memory_space<vmem>>, vector<1x1x16x16xf32>
    %485 = vector.shape_cast %484 : vector<1x1x16x16xf32> to vector<1x16x16xf32>
    %486 = vector.broadcast %237 : f32 to vector<1x16x16xf32>
    %487 = arith.mulf %486, %485 : vector<1x16x16xf32>
    %c1_572 = arith.constant 1 : index
    %c0_573 = arith.constant 0 : index
    %c2_574 = arith.constant 2 : index
    %c3_575 = arith.constant 3 : index
    %488 = vector.load %arg9[%c1_572, %c0_573, %c2_574, %c3_575] : memref<2x1x22x22xf32, #tpu.memory_space<vmem>>, vector<1x1x16x16xf32>
    %489 = vector.shape_cast %488 : vector<1x1x16x16xf32> to vector<1x16x16xf32>
    %490 = vector.broadcast %286 : f32 to vector<1x16x16xf32>
    %491 = arith.mulf %490, %489 : vector<1x16x16xf32>
    %492 = arith.addf %482, %487 : vector<1x16x16xf32>
    %493 = arith.addf %483, %491 : vector<1x16x16xf32>
    %c0_576 = arith.constant 0 : index
    %c0_577 = arith.constant 0 : index
    %c2_578 = arith.constant 2 : index
    %c4_579 = arith.constant 4 : index
    %494 = vector.load %arg9[%c0_576, %c0_577, %c2_578, %c4_579] : memref<2x1x22x22xf32, #tpu.memory_space<vmem>>, vector<1x1x16x16xf32>
    %495 = vector.shape_cast %494 : vector<1x1x16x16xf32> to vector<1x16x16xf32>
    %496 = vector.broadcast %238 : f32 to vector<1x16x16xf32>
    %497 = arith.mulf %496, %495 : vector<1x16x16xf32>
    %c1_580 = arith.constant 1 : index
    %c0_581 = arith.constant 0 : index
    %c2_582 = arith.constant 2 : index
    %c4_583 = arith.constant 4 : index
    %498 = vector.load %arg9[%c1_580, %c0_581, %c2_582, %c4_583] : memref<2x1x22x22xf32, #tpu.memory_space<vmem>>, vector<1x1x16x16xf32>
    %499 = vector.shape_cast %498 : vector<1x1x16x16xf32> to vector<1x16x16xf32>
    %500 = vector.broadcast %287 : f32 to vector<1x16x16xf32>
    %501 = arith.mulf %500, %499 : vector<1x16x16xf32>
    %502 = arith.addf %492, %497 : vector<1x16x16xf32>
    %503 = arith.addf %493, %501 : vector<1x16x16xf32>
    %c0_584 = arith.constant 0 : index
    %c0_585 = arith.constant 0 : index
    %c2_586 = arith.constant 2 : index
    %c5_587 = arith.constant 5 : index
    %504 = vector.load %arg9[%c0_584, %c0_585, %c2_586, %c5_587] : memref<2x1x22x22xf32, #tpu.memory_space<vmem>>, vector<1x1x16x16xf32>
    %505 = vector.shape_cast %504 : vector<1x1x16x16xf32> to vector<1x16x16xf32>
    %506 = vector.broadcast %239 : f32 to vector<1x16x16xf32>
    %507 = arith.mulf %506, %505 : vector<1x16x16xf32>
    %c1_588 = arith.constant 1 : index
    %c0_589 = arith.constant 0 : index
    %c2_590 = arith.constant 2 : index
    %c5_591 = arith.constant 5 : index
    %508 = vector.load %arg9[%c1_588, %c0_589, %c2_590, %c5_591] : memref<2x1x22x22xf32, #tpu.memory_space<vmem>>, vector<1x1x16x16xf32>
    %509 = vector.shape_cast %508 : vector<1x1x16x16xf32> to vector<1x16x16xf32>
    %510 = vector.broadcast %288 : f32 to vector<1x16x16xf32>
    %511 = arith.mulf %510, %509 : vector<1x16x16xf32>
    %512 = arith.addf %502, %507 : vector<1x16x16xf32>
    %513 = arith.addf %503, %511 : vector<1x16x16xf32>
    %c0_592 = arith.constant 0 : index
    %c0_593 = arith.constant 0 : index
    %c2_594 = arith.constant 2 : index
    %c6_595 = arith.constant 6 : index
    %514 = vector.load %arg9[%c0_592, %c0_593, %c2_594, %c6_595] : memref<2x1x22x22xf32, #tpu.memory_space<vmem>>, vector<1x1x16x16xf32>
    %515 = vector.shape_cast %514 : vector<1x1x16x16xf32> to vector<1x16x16xf32>
    %516 = vector.broadcast %240 : f32 to vector<1x16x16xf32>
    %517 = arith.mulf %516, %515 : vector<1x16x16xf32>
    %c1_596 = arith.constant 1 : index
    %c0_597 = arith.constant 0 : index
    %c2_598 = arith.constant 2 : index
    %c6_599 = arith.constant 6 : index
    %518 = vector.load %arg9[%c1_596, %c0_597, %c2_598, %c6_599] : memref<2x1x22x22xf32, #tpu.memory_space<vmem>>, vector<1x1x16x16xf32>
    %519 = vector.shape_cast %518 : vector<1x1x16x16xf32> to vector<1x16x16xf32>
    %520 = vector.broadcast %289 : f32 to vector<1x16x16xf32>
    %521 = arith.mulf %520, %519 : vector<1x16x16xf32>
    %522 = arith.addf %512, %517 : vector<1x16x16xf32>
    %523 = arith.addf %513, %521 : vector<1x16x16xf32>
    %524 = arith.addf %522, %523 : vector<1x16x16xf32>
    %c0_600 = arith.constant 0 : index
    %c0_601 = arith.constant 0 : index
    %c3_602 = arith.constant 3 : index
    %c0_603 = arith.constant 0 : index
    %525 = vector.load %arg9[%c0_600, %c0_601, %c3_602, %c0_603] : memref<2x1x22x22xf32, #tpu.memory_space<vmem>>, vector<1x1x16x16xf32>
    %526 = vector.shape_cast %525 : vector<1x1x16x16xf32> to vector<1x16x16xf32>
    %527 = vector.broadcast %241 : f32 to vector<1x16x16xf32>
    %528 = arith.mulf %527, %526 : vector<1x16x16xf32>
    %c1_604 = arith.constant 1 : index
    %c0_605 = arith.constant 0 : index
    %c3_606 = arith.constant 3 : index
    %c0_607 = arith.constant 0 : index
    %529 = vector.load %arg9[%c1_604, %c0_605, %c3_606, %c0_607] : memref<2x1x22x22xf32, #tpu.memory_space<vmem>>, vector<1x1x16x16xf32>
    %530 = vector.shape_cast %529 : vector<1x1x16x16xf32> to vector<1x16x16xf32>
    %531 = vector.broadcast %290 : f32 to vector<1x16x16xf32>
    %532 = arith.mulf %531, %530 : vector<1x16x16xf32>
    %c0_608 = arith.constant 0 : index
    %c0_609 = arith.constant 0 : index
    %c3_610 = arith.constant 3 : index
    %c1_611 = arith.constant 1 : index
    %533 = vector.load %arg9[%c0_608, %c0_609, %c3_610, %c1_611] : memref<2x1x22x22xf32, #tpu.memory_space<vmem>>, vector<1x1x16x16xf32>
    %534 = vector.shape_cast %533 : vector<1x1x16x16xf32> to vector<1x16x16xf32>
    %535 = vector.broadcast %242 : f32 to vector<1x16x16xf32>
    %536 = arith.mulf %535, %534 : vector<1x16x16xf32>
    %c1_612 = arith.constant 1 : index
    %c0_613 = arith.constant 0 : index
    %c3_614 = arith.constant 3 : index
    %c1_615 = arith.constant 1 : index
    %537 = vector.load %arg9[%c1_612, %c0_613, %c3_614, %c1_615] : memref<2x1x22x22xf32, #tpu.memory_space<vmem>>, vector<1x1x16x16xf32>
    %538 = vector.shape_cast %537 : vector<1x1x16x16xf32> to vector<1x16x16xf32>
    %539 = vector.broadcast %291 : f32 to vector<1x16x16xf32>
    %540 = arith.mulf %539, %538 : vector<1x16x16xf32>
    %541 = arith.addf %528, %536 : vector<1x16x16xf32>
    %542 = arith.addf %532, %540 : vector<1x16x16xf32>
    %c0_616 = arith.constant 0 : index
    %c0_617 = arith.constant 0 : index
    %c3_618 = arith.constant 3 : index
    %c2_619 = arith.constant 2 : index
    %543 = vector.load %arg9[%c0_616, %c0_617, %c3_618, %c2_619] : memref<2x1x22x22xf32, #tpu.memory_space<vmem>>, vector<1x1x16x16xf32>
    %544 = vector.shape_cast %543 : vector<1x1x16x16xf32> to vector<1x16x16xf32>
    %545 = vector.broadcast %243 : f32 to vector<1x16x16xf32>
    %546 = arith.mulf %545, %544 : vector<1x16x16xf32>
    %c1_620 = arith.constant 1 : index
    %c0_621 = arith.constant 0 : index
    %c3_622 = arith.constant 3 : index
    %c2_623 = arith.constant 2 : index
    %547 = vector.load %arg9[%c1_620, %c0_621, %c3_622, %c2_623] : memref<2x1x22x22xf32, #tpu.memory_space<vmem>>, vector<1x1x16x16xf32>
    %548 = vector.shape_cast %547 : vector<1x1x16x16xf32> to vector<1x16x16xf32>
    %549 = vector.broadcast %292 : f32 to vector<1x16x16xf32>
    %550 = arith.mulf %549, %548 : vector<1x16x16xf32>
    %551 = arith.addf %541, %546 : vector<1x16x16xf32>
    %552 = arith.addf %542, %550 : vector<1x16x16xf32>
    %c0_624 = arith.constant 0 : index
    %c0_625 = arith.constant 0 : index
    %c3_626 = arith.constant 3 : index
    %c3_627 = arith.constant 3 : index
    %553 = vector.load %arg9[%c0_624, %c0_625, %c3_626, %c3_627] : memref<2x1x22x22xf32, #tpu.memory_space<vmem>>, vector<1x1x16x16xf32>
    %554 = vector.shape_cast %553 : vector<1x1x16x16xf32> to vector<1x16x16xf32>
    %555 = vector.broadcast %244 : f32 to vector<1x16x16xf32>
    %556 = arith.mulf %555, %554 : vector<1x16x16xf32>
    %c1_628 = arith.constant 1 : index
    %c0_629 = arith.constant 0 : index
    %c3_630 = arith.constant 3 : index
    %c3_631 = arith.constant 3 : index
    %557 = vector.load %arg9[%c1_628, %c0_629, %c3_630, %c3_631] : memref<2x1x22x22xf32, #tpu.memory_space<vmem>>, vector<1x1x16x16xf32>
    %558 = vector.shape_cast %557 : vector<1x1x16x16xf32> to vector<1x16x16xf32>
    %559 = vector.broadcast %293 : f32 to vector<1x16x16xf32>
    %560 = arith.mulf %559, %558 : vector<1x16x16xf32>
    %561 = arith.addf %551, %556 : vector<1x16x16xf32>
    %562 = arith.addf %552, %560 : vector<1x16x16xf32>
    %c0_632 = arith.constant 0 : index
    %c0_633 = arith.constant 0 : index
    %c3_634 = arith.constant 3 : index
    %c4_635 = arith.constant 4 : index
    %563 = vector.load %arg9[%c0_632, %c0_633, %c3_634, %c4_635] : memref<2x1x22x22xf32, #tpu.memory_space<vmem>>, vector<1x1x16x16xf32>
    %564 = vector.shape_cast %563 : vector<1x1x16x16xf32> to vector<1x16x16xf32>
    %565 = vector.broadcast %245 : f32 to vector<1x16x16xf32>
    %566 = arith.mulf %565, %564 : vector<1x16x16xf32>
    %c1_636 = arith.constant 1 : index
    %c0_637 = arith.constant 0 : index
    %c3_638 = arith.constant 3 : index
    %c4_639 = arith.constant 4 : index
    %567 = vector.load %arg9[%c1_636, %c0_637, %c3_638, %c4_639] : memref<2x1x22x22xf32, #tpu.memory_space<vmem>>, vector<1x1x16x16xf32>
    %568 = vector.shape_cast %567 : vector<1x1x16x16xf32> to vector<1x16x16xf32>
    %569 = vector.broadcast %294 : f32 to vector<1x16x16xf32>
    %570 = arith.mulf %569, %568 : vector<1x16x16xf32>
    %571 = arith.addf %561, %566 : vector<1x16x16xf32>
    %572 = arith.addf %562, %570 : vector<1x16x16xf32>
    %c0_640 = arith.constant 0 : index
    %c0_641 = arith.constant 0 : index
    %c3_642 = arith.constant 3 : index
    %c5_643 = arith.constant 5 : index
    %573 = vector.load %arg9[%c0_640, %c0_641, %c3_642, %c5_643] : memref<2x1x22x22xf32, #tpu.memory_space<vmem>>, vector<1x1x16x16xf32>
    %574 = vector.shape_cast %573 : vector<1x1x16x16xf32> to vector<1x16x16xf32>
    %575 = vector.broadcast %246 : f32 to vector<1x16x16xf32>
    %576 = arith.mulf %575, %574 : vector<1x16x16xf32>
    %c1_644 = arith.constant 1 : index
    %c0_645 = arith.constant 0 : index
    %c3_646 = arith.constant 3 : index
    %c5_647 = arith.constant 5 : index
    %577 = vector.load %arg9[%c1_644, %c0_645, %c3_646, %c5_647] : memref<2x1x22x22xf32, #tpu.memory_space<vmem>>, vector<1x1x16x16xf32>
    %578 = vector.shape_cast %577 : vector<1x1x16x16xf32> to vector<1x16x16xf32>
    %579 = vector.broadcast %295 : f32 to vector<1x16x16xf32>
    %580 = arith.mulf %579, %578 : vector<1x16x16xf32>
    %581 = arith.addf %571, %576 : vector<1x16x16xf32>
    %582 = arith.addf %572, %580 : vector<1x16x16xf32>
    %c0_648 = arith.constant 0 : index
    %c0_649 = arith.constant 0 : index
    %c3_650 = arith.constant 3 : index
    %c6_651 = arith.constant 6 : index
    %583 = vector.load %arg9[%c0_648, %c0_649, %c3_650, %c6_651] : memref<2x1x22x22xf32, #tpu.memory_space<vmem>>, vector<1x1x16x16xf32>
    %584 = vector.shape_cast %583 : vector<1x1x16x16xf32> to vector<1x16x16xf32>
    %585 = vector.broadcast %247 : f32 to vector<1x16x16xf32>
    %586 = arith.mulf %585, %584 : vector<1x16x16xf32>
    %c1_652 = arith.constant 1 : index
    %c0_653 = arith.constant 0 : index
    %c3_654 = arith.constant 3 : index
    %c6_655 = arith.constant 6 : index
    %587 = vector.load %arg9[%c1_652, %c0_653, %c3_654, %c6_655] : memref<2x1x22x22xf32, #tpu.memory_space<vmem>>, vector<1x1x16x16xf32>
    %588 = vector.shape_cast %587 : vector<1x1x16x16xf32> to vector<1x16x16xf32>
    %589 = vector.broadcast %296 : f32 to vector<1x16x16xf32>
    %590 = arith.mulf %589, %588 : vector<1x16x16xf32>
    %591 = arith.addf %581, %586 : vector<1x16x16xf32>
    %592 = arith.addf %582, %590 : vector<1x16x16xf32>
    %593 = arith.addf %591, %592 : vector<1x16x16xf32>
    %c0_656 = arith.constant 0 : index
    %c0_657 = arith.constant 0 : index
    %c4_658 = arith.constant 4 : index
    %c0_659 = arith.constant 0 : index
    %594 = vector.load %arg9[%c0_656, %c0_657, %c4_658, %c0_659] : memref<2x1x22x22xf32, #tpu.memory_space<vmem>>, vector<1x1x16x16xf32>
    %595 = vector.shape_cast %594 : vector<1x1x16x16xf32> to vector<1x16x16xf32>
    %596 = vector.broadcast %248 : f32 to vector<1x16x16xf32>
    %597 = arith.mulf %596, %595 : vector<1x16x16xf32>
    %c1_660 = arith.constant 1 : index
    %c0_661 = arith.constant 0 : index
    %c4_662 = arith.constant 4 : index
    %c0_663 = arith.constant 0 : index
    %598 = vector.load %arg9[%c1_660, %c0_661, %c4_662, %c0_663] : memref<2x1x22x22xf32, #tpu.memory_space<vmem>>, vector<1x1x16x16xf32>
    %599 = vector.shape_cast %598 : vector<1x1x16x16xf32> to vector<1x16x16xf32>
    %600 = vector.broadcast %297 : f32 to vector<1x16x16xf32>
    %601 = arith.mulf %600, %599 : vector<1x16x16xf32>
    %c0_664 = arith.constant 0 : index
    %c0_665 = arith.constant 0 : index
    %c4_666 = arith.constant 4 : index
    %c1_667 = arith.constant 1 : index
    %602 = vector.load %arg9[%c0_664, %c0_665, %c4_666, %c1_667] : memref<2x1x22x22xf32, #tpu.memory_space<vmem>>, vector<1x1x16x16xf32>
    %603 = vector.shape_cast %602 : vector<1x1x16x16xf32> to vector<1x16x16xf32>
    %604 = vector.broadcast %249 : f32 to vector<1x16x16xf32>
    %605 = arith.mulf %604, %603 : vector<1x16x16xf32>
    %c1_668 = arith.constant 1 : index
    %c0_669 = arith.constant 0 : index
    %c4_670 = arith.constant 4 : index
    %c1_671 = arith.constant 1 : index
    %606 = vector.load %arg9[%c1_668, %c0_669, %c4_670, %c1_671] : memref<2x1x22x22xf32, #tpu.memory_space<vmem>>, vector<1x1x16x16xf32>
    %607 = vector.shape_cast %606 : vector<1x1x16x16xf32> to vector<1x16x16xf32>
    %608 = vector.broadcast %298 : f32 to vector<1x16x16xf32>
    %609 = arith.mulf %608, %607 : vector<1x16x16xf32>
    %610 = arith.addf %597, %605 : vector<1x16x16xf32>
    %611 = arith.addf %601, %609 : vector<1x16x16xf32>
    %c0_672 = arith.constant 0 : index
    %c0_673 = arith.constant 0 : index
    %c4_674 = arith.constant 4 : index
    %c2_675 = arith.constant 2 : index
    %612 = vector.load %arg9[%c0_672, %c0_673, %c4_674, %c2_675] : memref<2x1x22x22xf32, #tpu.memory_space<vmem>>, vector<1x1x16x16xf32>
    %613 = vector.shape_cast %612 : vector<1x1x16x16xf32> to vector<1x16x16xf32>
    %614 = vector.broadcast %250 : f32 to vector<1x16x16xf32>
    %615 = arith.mulf %614, %613 : vector<1x16x16xf32>
    %c1_676 = arith.constant 1 : index
    %c0_677 = arith.constant 0 : index
    %c4_678 = arith.constant 4 : index
    %c2_679 = arith.constant 2 : index
    %616 = vector.load %arg9[%c1_676, %c0_677, %c4_678, %c2_679] : memref<2x1x22x22xf32, #tpu.memory_space<vmem>>, vector<1x1x16x16xf32>
    %617 = vector.shape_cast %616 : vector<1x1x16x16xf32> to vector<1x16x16xf32>
    %618 = vector.broadcast %299 : f32 to vector<1x16x16xf32>
    %619 = arith.mulf %618, %617 : vector<1x16x16xf32>
    %620 = arith.addf %610, %615 : vector<1x16x16xf32>
    %621 = arith.addf %611, %619 : vector<1x16x16xf32>
    %c0_680 = arith.constant 0 : index
    %c0_681 = arith.constant 0 : index
    %c4_682 = arith.constant 4 : index
    %c3_683 = arith.constant 3 : index
    %622 = vector.load %arg9[%c0_680, %c0_681, %c4_682, %c3_683] : memref<2x1x22x22xf32, #tpu.memory_space<vmem>>, vector<1x1x16x16xf32>
    %623 = vector.shape_cast %622 : vector<1x1x16x16xf32> to vector<1x16x16xf32>
    %624 = vector.broadcast %251 : f32 to vector<1x16x16xf32>
    %625 = arith.mulf %624, %623 : vector<1x16x16xf32>
    %c1_684 = arith.constant 1 : index
    %c0_685 = arith.constant 0 : index
    %c4_686 = arith.constant 4 : index
    %c3_687 = arith.constant 3 : index
    %626 = vector.load %arg9[%c1_684, %c0_685, %c4_686, %c3_687] : memref<2x1x22x22xf32, #tpu.memory_space<vmem>>, vector<1x1x16x16xf32>
    %627 = vector.shape_cast %626 : vector<1x1x16x16xf32> to vector<1x16x16xf32>
    %628 = vector.broadcast %300 : f32 to vector<1x16x16xf32>
    %629 = arith.mulf %628, %627 : vector<1x16x16xf32>
    %630 = arith.addf %620, %625 : vector<1x16x16xf32>
    %631 = arith.addf %621, %629 : vector<1x16x16xf32>
    %c0_688 = arith.constant 0 : index
    %c0_689 = arith.constant 0 : index
    %c4_690 = arith.constant 4 : index
    %c4_691 = arith.constant 4 : index
    %632 = vector.load %arg9[%c0_688, %c0_689, %c4_690, %c4_691] : memref<2x1x22x22xf32, #tpu.memory_space<vmem>>, vector<1x1x16x16xf32>
    %633 = vector.shape_cast %632 : vector<1x1x16x16xf32> to vector<1x16x16xf32>
    %634 = vector.broadcast %252 : f32 to vector<1x16x16xf32>
    %635 = arith.mulf %634, %633 : vector<1x16x16xf32>
    %c1_692 = arith.constant 1 : index
    %c0_693 = arith.constant 0 : index
    %c4_694 = arith.constant 4 : index
    %c4_695 = arith.constant 4 : index
    %636 = vector.load %arg9[%c1_692, %c0_693, %c4_694, %c4_695] : memref<2x1x22x22xf32, #tpu.memory_space<vmem>>, vector<1x1x16x16xf32>
    %637 = vector.shape_cast %636 : vector<1x1x16x16xf32> to vector<1x16x16xf32>
    %638 = vector.broadcast %301 : f32 to vector<1x16x16xf32>
    %639 = arith.mulf %638, %637 : vector<1x16x16xf32>
    %640 = arith.addf %630, %635 : vector<1x16x16xf32>
    %641 = arith.addf %631, %639 : vector<1x16x16xf32>
    %c0_696 = arith.constant 0 : index
    %c0_697 = arith.constant 0 : index
    %c4_698 = arith.constant 4 : index
    %c5_699 = arith.constant 5 : index
    %642 = vector.load %arg9[%c0_696, %c0_697, %c4_698, %c5_699] : memref<2x1x22x22xf32, #tpu.memory_space<vmem>>, vector<1x1x16x16xf32>
    %643 = vector.shape_cast %642 : vector<1x1x16x16xf32> to vector<1x16x16xf32>
    %644 = vector.broadcast %253 : f32 to vector<1x16x16xf32>
    %645 = arith.mulf %644, %643 : vector<1x16x16xf32>
    %c1_700 = arith.constant 1 : index
    %c0_701 = arith.constant 0 : index
    %c4_702 = arith.constant 4 : index
    %c5_703 = arith.constant 5 : index
    %646 = vector.load %arg9[%c1_700, %c0_701, %c4_702, %c5_703] : memref<2x1x22x22xf32, #tpu.memory_space<vmem>>, vector<1x1x16x16xf32>
    %647 = vector.shape_cast %646 : vector<1x1x16x16xf32> to vector<1x16x16xf32>
    %648 = vector.broadcast %302 : f32 to vector<1x16x16xf32>
    %649 = arith.mulf %648, %647 : vector<1x16x16xf32>
    %650 = arith.addf %640, %645 : vector<1x16x16xf32>
    %651 = arith.addf %641, %649 : vector<1x16x16xf32>
    %c0_704 = arith.constant 0 : index
    %c0_705 = arith.constant 0 : index
    %c4_706 = arith.constant 4 : index
    %c6_707 = arith.constant 6 : index
    %652 = vector.load %arg9[%c0_704, %c0_705, %c4_706, %c6_707] : memref<2x1x22x22xf32, #tpu.memory_space<vmem>>, vector<1x1x16x16xf32>
    %653 = vector.shape_cast %652 : vector<1x1x16x16xf32> to vector<1x16x16xf32>
    %654 = vector.broadcast %254 : f32 to vector<1x16x16xf32>
    %655 = arith.mulf %654, %653 : vector<1x16x16xf32>
    %c1_708 = arith.constant 1 : index
    %c0_709 = arith.constant 0 : index
    %c4_710 = arith.constant 4 : index
    %c6_711 = arith.constant 6 : index
    %656 = vector.load %arg9[%c1_708, %c0_709, %c4_710, %c6_711] : memref<2x1x22x22xf32, #tpu.memory_space<vmem>>, vector<1x1x16x16xf32>
    %657 = vector.shape_cast %656 : vector<1x1x16x16xf32> to vector<1x16x16xf32>
    %658 = vector.broadcast %303 : f32 to vector<1x16x16xf32>
    %659 = arith.mulf %658, %657 : vector<1x16x16xf32>
    %660 = arith.addf %650, %655 : vector<1x16x16xf32>
    %661 = arith.addf %651, %659 : vector<1x16x16xf32>
    %662 = arith.addf %660, %661 : vector<1x16x16xf32>
    %c0_712 = arith.constant 0 : index
    %c0_713 = arith.constant 0 : index
    %c5_714 = arith.constant 5 : index
    %c0_715 = arith.constant 0 : index
    %663 = vector.load %arg9[%c0_712, %c0_713, %c5_714, %c0_715] : memref<2x1x22x22xf32, #tpu.memory_space<vmem>>, vector<1x1x16x16xf32>
    %664 = vector.shape_cast %663 : vector<1x1x16x16xf32> to vector<1x16x16xf32>
    %665 = vector.broadcast %255 : f32 to vector<1x16x16xf32>
    %666 = arith.mulf %665, %664 : vector<1x16x16xf32>
    %c1_716 = arith.constant 1 : index
    %c0_717 = arith.constant 0 : index
    %c5_718 = arith.constant 5 : index
    %c0_719 = arith.constant 0 : index
    %667 = vector.load %arg9[%c1_716, %c0_717, %c5_718, %c0_719] : memref<2x1x22x22xf32, #tpu.memory_space<vmem>>, vector<1x1x16x16xf32>
    %668 = vector.shape_cast %667 : vector<1x1x16x16xf32> to vector<1x16x16xf32>
    %669 = vector.broadcast %304 : f32 to vector<1x16x16xf32>
    %670 = arith.mulf %669, %668 : vector<1x16x16xf32>
    %c0_720 = arith.constant 0 : index
    %c0_721 = arith.constant 0 : index
    %c5_722 = arith.constant 5 : index
    %c1_723 = arith.constant 1 : index
    %671 = vector.load %arg9[%c0_720, %c0_721, %c5_722, %c1_723] : memref<2x1x22x22xf32, #tpu.memory_space<vmem>>, vector<1x1x16x16xf32>
    %672 = vector.shape_cast %671 : vector<1x1x16x16xf32> to vector<1x16x16xf32>
    %673 = vector.broadcast %256 : f32 to vector<1x16x16xf32>
    %674 = arith.mulf %673, %672 : vector<1x16x16xf32>
    %c1_724 = arith.constant 1 : index
    %c0_725 = arith.constant 0 : index
    %c5_726 = arith.constant 5 : index
    %c1_727 = arith.constant 1 : index
    %675 = vector.load %arg9[%c1_724, %c0_725, %c5_726, %c1_727] : memref<2x1x22x22xf32, #tpu.memory_space<vmem>>, vector<1x1x16x16xf32>
    %676 = vector.shape_cast %675 : vector<1x1x16x16xf32> to vector<1x16x16xf32>
    %677 = vector.broadcast %305 : f32 to vector<1x16x16xf32>
    %678 = arith.mulf %677, %676 : vector<1x16x16xf32>
    %679 = arith.addf %666, %674 : vector<1x16x16xf32>
    %680 = arith.addf %670, %678 : vector<1x16x16xf32>
    %c0_728 = arith.constant 0 : index
    %c0_729 = arith.constant 0 : index
    %c5_730 = arith.constant 5 : index
    %c2_731 = arith.constant 2 : index
    %681 = vector.load %arg9[%c0_728, %c0_729, %c5_730, %c2_731] : memref<2x1x22x22xf32, #tpu.memory_space<vmem>>, vector<1x1x16x16xf32>
    %682 = vector.shape_cast %681 : vector<1x1x16x16xf32> to vector<1x16x16xf32>
    %683 = vector.broadcast %257 : f32 to vector<1x16x16xf32>
    %684 = arith.mulf %683, %682 : vector<1x16x16xf32>
    %c1_732 = arith.constant 1 : index
    %c0_733 = arith.constant 0 : index
    %c5_734 = arith.constant 5 : index
    %c2_735 = arith.constant 2 : index
    %685 = vector.load %arg9[%c1_732, %c0_733, %c5_734, %c2_735] : memref<2x1x22x22xf32, #tpu.memory_space<vmem>>, vector<1x1x16x16xf32>
    %686 = vector.shape_cast %685 : vector<1x1x16x16xf32> to vector<1x16x16xf32>
    %687 = vector.broadcast %306 : f32 to vector<1x16x16xf32>
    %688 = arith.mulf %687, %686 : vector<1x16x16xf32>
    %689 = arith.addf %679, %684 : vector<1x16x16xf32>
    %690 = arith.addf %680, %688 : vector<1x16x16xf32>
    %c0_736 = arith.constant 0 : index
    %c0_737 = arith.constant 0 : index
    %c5_738 = arith.constant 5 : index
    %c3_739 = arith.constant 3 : index
    %691 = vector.load %arg9[%c0_736, %c0_737, %c5_738, %c3_739] : memref<2x1x22x22xf32, #tpu.memory_space<vmem>>, vector<1x1x16x16xf32>
    %692 = vector.shape_cast %691 : vector<1x1x16x16xf32> to vector<1x16x16xf32>
    %693 = vector.broadcast %258 : f32 to vector<1x16x16xf32>
    %694 = arith.mulf %693, %692 : vector<1x16x16xf32>
    %c1_740 = arith.constant 1 : index
    %c0_741 = arith.constant 0 : index
    %c5_742 = arith.constant 5 : index
    %c3_743 = arith.constant 3 : index
    %695 = vector.load %arg9[%c1_740, %c0_741, %c5_742, %c3_743] : memref<2x1x22x22xf32, #tpu.memory_space<vmem>>, vector<1x1x16x16xf32>
    %696 = vector.shape_cast %695 : vector<1x1x16x16xf32> to vector<1x16x16xf32>
    %697 = vector.broadcast %307 : f32 to vector<1x16x16xf32>
    %698 = arith.mulf %697, %696 : vector<1x16x16xf32>
    %699 = arith.addf %689, %694 : vector<1x16x16xf32>
    %700 = arith.addf %690, %698 : vector<1x16x16xf32>
    %c0_744 = arith.constant 0 : index
    %c0_745 = arith.constant 0 : index
    %c5_746 = arith.constant 5 : index
    %c4_747 = arith.constant 4 : index
    %701 = vector.load %arg9[%c0_744, %c0_745, %c5_746, %c4_747] : memref<2x1x22x22xf32, #tpu.memory_space<vmem>>, vector<1x1x16x16xf32>
    %702 = vector.shape_cast %701 : vector<1x1x16x16xf32> to vector<1x16x16xf32>
    %703 = vector.broadcast %259 : f32 to vector<1x16x16xf32>
    %704 = arith.mulf %703, %702 : vector<1x16x16xf32>
    %c1_748 = arith.constant 1 : index
    %c0_749 = arith.constant 0 : index
    %c5_750 = arith.constant 5 : index
    %c4_751 = arith.constant 4 : index
    %705 = vector.load %arg9[%c1_748, %c0_749, %c5_750, %c4_751] : memref<2x1x22x22xf32, #tpu.memory_space<vmem>>, vector<1x1x16x16xf32>
    %706 = vector.shape_cast %705 : vector<1x1x16x16xf32> to vector<1x16x16xf32>
    %707 = vector.broadcast %308 : f32 to vector<1x16x16xf32>
    %708 = arith.mulf %707, %706 : vector<1x16x16xf32>
    %709 = arith.addf %699, %704 : vector<1x16x16xf32>
    %710 = arith.addf %700, %708 : vector<1x16x16xf32>
    %c0_752 = arith.constant 0 : index
    %c0_753 = arith.constant 0 : index
    %c5_754 = arith.constant 5 : index
    %c5_755 = arith.constant 5 : index
    %711 = vector.load %arg9[%c0_752, %c0_753, %c5_754, %c5_755] : memref<2x1x22x22xf32, #tpu.memory_space<vmem>>, vector<1x1x16x16xf32>
    %712 = vector.shape_cast %711 : vector<1x1x16x16xf32> to vector<1x16x16xf32>
    %713 = vector.broadcast %260 : f32 to vector<1x16x16xf32>
    %714 = arith.mulf %713, %712 : vector<1x16x16xf32>
    %c1_756 = arith.constant 1 : index
    %c0_757 = arith.constant 0 : index
    %c5_758 = arith.constant 5 : index
    %c5_759 = arith.constant 5 : index
    %715 = vector.load %arg9[%c1_756, %c0_757, %c5_758, %c5_759] : memref<2x1x22x22xf32, #tpu.memory_space<vmem>>, vector<1x1x16x16xf32>
    %716 = vector.shape_cast %715 : vector<1x1x16x16xf32> to vector<1x16x16xf32>
    %717 = vector.broadcast %309 : f32 to vector<1x16x16xf32>
    %718 = arith.mulf %717, %716 : vector<1x16x16xf32>
    %719 = arith.addf %709, %714 : vector<1x16x16xf32>
    %720 = arith.addf %710, %718 : vector<1x16x16xf32>
    %c0_760 = arith.constant 0 : index
    %c0_761 = arith.constant 0 : index
    %c5_762 = arith.constant 5 : index
    %c6_763 = arith.constant 6 : index
    %721 = vector.load %arg9[%c0_760, %c0_761, %c5_762, %c6_763] : memref<2x1x22x22xf32, #tpu.memory_space<vmem>>, vector<1x1x16x16xf32>
    %722 = vector.shape_cast %721 : vector<1x1x16x16xf32> to vector<1x16x16xf32>
    %723 = vector.broadcast %261 : f32 to vector<1x16x16xf32>
    %724 = arith.mulf %723, %722 : vector<1x16x16xf32>
    %c1_764 = arith.constant 1 : index
    %c0_765 = arith.constant 0 : index
    %c5_766 = arith.constant 5 : index
    %c6_767 = arith.constant 6 : index
    %725 = vector.load %arg9[%c1_764, %c0_765, %c5_766, %c6_767] : memref<2x1x22x22xf32, #tpu.memory_space<vmem>>, vector<1x1x16x16xf32>
    %726 = vector.shape_cast %725 : vector<1x1x16x16xf32> to vector<1x16x16xf32>
    %727 = vector.broadcast %310 : f32 to vector<1x16x16xf32>
    %728 = arith.mulf %727, %726 : vector<1x16x16xf32>
    %729 = arith.addf %719, %724 : vector<1x16x16xf32>
    %730 = arith.addf %720, %728 : vector<1x16x16xf32>
    %731 = arith.addf %729, %730 : vector<1x16x16xf32>
    %c0_768 = arith.constant 0 : index
    %c0_769 = arith.constant 0 : index
    %c6_770 = arith.constant 6 : index
    %c0_771 = arith.constant 0 : index
    %732 = vector.load %arg9[%c0_768, %c0_769, %c6_770, %c0_771] : memref<2x1x22x22xf32, #tpu.memory_space<vmem>>, vector<1x1x16x16xf32>
    %733 = vector.shape_cast %732 : vector<1x1x16x16xf32> to vector<1x16x16xf32>
    %734 = vector.broadcast %262 : f32 to vector<1x16x16xf32>
    %735 = arith.mulf %734, %733 : vector<1x16x16xf32>
    %c1_772 = arith.constant 1 : index
    %c0_773 = arith.constant 0 : index
    %c6_774 = arith.constant 6 : index
    %c0_775 = arith.constant 0 : index
    %736 = vector.load %arg9[%c1_772, %c0_773, %c6_774, %c0_775] : memref<2x1x22x22xf32, #tpu.memory_space<vmem>>, vector<1x1x16x16xf32>
    %737 = vector.shape_cast %736 : vector<1x1x16x16xf32> to vector<1x16x16xf32>
    %738 = vector.broadcast %311 : f32 to vector<1x16x16xf32>
    %739 = arith.mulf %738, %737 : vector<1x16x16xf32>
    %c0_776 = arith.constant 0 : index
    %c0_777 = arith.constant 0 : index
    %c6_778 = arith.constant 6 : index
    %c1_779 = arith.constant 1 : index
    %740 = vector.load %arg9[%c0_776, %c0_777, %c6_778, %c1_779] : memref<2x1x22x22xf32, #tpu.memory_space<vmem>>, vector<1x1x16x16xf32>
    %741 = vector.shape_cast %740 : vector<1x1x16x16xf32> to vector<1x16x16xf32>
    %742 = vector.broadcast %263 : f32 to vector<1x16x16xf32>
    %743 = arith.mulf %742, %741 : vector<1x16x16xf32>
    %c1_780 = arith.constant 1 : index
    %c0_781 = arith.constant 0 : index
    %c6_782 = arith.constant 6 : index
    %c1_783 = arith.constant 1 : index
    %744 = vector.load %arg9[%c1_780, %c0_781, %c6_782, %c1_783] : memref<2x1x22x22xf32, #tpu.memory_space<vmem>>, vector<1x1x16x16xf32>
    %745 = vector.shape_cast %744 : vector<1x1x16x16xf32> to vector<1x16x16xf32>
    %746 = vector.broadcast %312 : f32 to vector<1x16x16xf32>
    %747 = arith.mulf %746, %745 : vector<1x16x16xf32>
    %748 = arith.addf %735, %743 : vector<1x16x16xf32>
    %749 = arith.addf %739, %747 : vector<1x16x16xf32>
    %c0_784 = arith.constant 0 : index
    %c0_785 = arith.constant 0 : index
    %c6_786 = arith.constant 6 : index
    %c2_787 = arith.constant 2 : index
    %750 = vector.load %arg9[%c0_784, %c0_785, %c6_786, %c2_787] : memref<2x1x22x22xf32, #tpu.memory_space<vmem>>, vector<1x1x16x16xf32>
    %751 = vector.shape_cast %750 : vector<1x1x16x16xf32> to vector<1x16x16xf32>
    %752 = vector.broadcast %264 : f32 to vector<1x16x16xf32>
    %753 = arith.mulf %752, %751 : vector<1x16x16xf32>
    %c1_788 = arith.constant 1 : index
    %c0_789 = arith.constant 0 : index
    %c6_790 = arith.constant 6 : index
    %c2_791 = arith.constant 2 : index
    %754 = vector.load %arg9[%c1_788, %c0_789, %c6_790, %c2_791] : memref<2x1x22x22xf32, #tpu.memory_space<vmem>>, vector<1x1x16x16xf32>
    %755 = vector.shape_cast %754 : vector<1x1x16x16xf32> to vector<1x16x16xf32>
    %756 = vector.broadcast %313 : f32 to vector<1x16x16xf32>
    %757 = arith.mulf %756, %755 : vector<1x16x16xf32>
    %758 = arith.addf %748, %753 : vector<1x16x16xf32>
    %759 = arith.addf %749, %757 : vector<1x16x16xf32>
    %c0_792 = arith.constant 0 : index
    %c0_793 = arith.constant 0 : index
    %c6_794 = arith.constant 6 : index
    %c3_795 = arith.constant 3 : index
    %760 = vector.load %arg9[%c0_792, %c0_793, %c6_794, %c3_795] : memref<2x1x22x22xf32, #tpu.memory_space<vmem>>, vector<1x1x16x16xf32>
    %761 = vector.shape_cast %760 : vector<1x1x16x16xf32> to vector<1x16x16xf32>
    %762 = vector.broadcast %265 : f32 to vector<1x16x16xf32>
    %763 = arith.mulf %762, %761 : vector<1x16x16xf32>
    %c1_796 = arith.constant 1 : index
    %c0_797 = arith.constant 0 : index
    %c6_798 = arith.constant 6 : index
    %c3_799 = arith.constant 3 : index
    %764 = vector.load %arg9[%c1_796, %c0_797, %c6_798, %c3_799] : memref<2x1x22x22xf32, #tpu.memory_space<vmem>>, vector<1x1x16x16xf32>
    %765 = vector.shape_cast %764 : vector<1x1x16x16xf32> to vector<1x16x16xf32>
    %766 = vector.broadcast %314 : f32 to vector<1x16x16xf32>
    %767 = arith.mulf %766, %765 : vector<1x16x16xf32>
    %768 = arith.addf %758, %763 : vector<1x16x16xf32>
    %769 = arith.addf %759, %767 : vector<1x16x16xf32>
    %c0_800 = arith.constant 0 : index
    %c0_801 = arith.constant 0 : index
    %c6_802 = arith.constant 6 : index
    %c4_803 = arith.constant 4 : index
    %770 = vector.load %arg9[%c0_800, %c0_801, %c6_802, %c4_803] : memref<2x1x22x22xf32, #tpu.memory_space<vmem>>, vector<1x1x16x16xf32>
    %771 = vector.shape_cast %770 : vector<1x1x16x16xf32> to vector<1x16x16xf32>
    %772 = vector.broadcast %266 : f32 to vector<1x16x16xf32>
    %773 = arith.mulf %772, %771 : vector<1x16x16xf32>
    %c1_804 = arith.constant 1 : index
    %c0_805 = arith.constant 0 : index
    %c6_806 = arith.constant 6 : index
    %c4_807 = arith.constant 4 : index
    %774 = vector.load %arg9[%c1_804, %c0_805, %c6_806, %c4_807] : memref<2x1x22x22xf32, #tpu.memory_space<vmem>>, vector<1x1x16x16xf32>
    %775 = vector.shape_cast %774 : vector<1x1x16x16xf32> to vector<1x16x16xf32>
    %776 = vector.broadcast %315 : f32 to vector<1x16x16xf32>
    %777 = arith.mulf %776, %775 : vector<1x16x16xf32>
    %778 = arith.addf %768, %773 : vector<1x16x16xf32>
    %779 = arith.addf %769, %777 : vector<1x16x16xf32>
    %c0_808 = arith.constant 0 : index
    %c0_809 = arith.constant 0 : index
    %c6_810 = arith.constant 6 : index
    %c5_811 = arith.constant 5 : index
    %780 = vector.load %arg9[%c0_808, %c0_809, %c6_810, %c5_811] : memref<2x1x22x22xf32, #tpu.memory_space<vmem>>, vector<1x1x16x16xf32>
    %781 = vector.shape_cast %780 : vector<1x1x16x16xf32> to vector<1x16x16xf32>
    %782 = vector.broadcast %267 : f32 to vector<1x16x16xf32>
    %783 = arith.mulf %782, %781 : vector<1x16x16xf32>
    %c1_812 = arith.constant 1 : index
    %c0_813 = arith.constant 0 : index
    %c6_814 = arith.constant 6 : index
    %c5_815 = arith.constant 5 : index
    %784 = vector.load %arg9[%c1_812, %c0_813, %c6_814, %c5_815] : memref<2x1x22x22xf32, #tpu.memory_space<vmem>>, vector<1x1x16x16xf32>
    %785 = vector.shape_cast %784 : vector<1x1x16x16xf32> to vector<1x16x16xf32>
    %786 = vector.broadcast %316 : f32 to vector<1x16x16xf32>
    %787 = arith.mulf %786, %785 : vector<1x16x16xf32>
    %788 = arith.addf %778, %783 : vector<1x16x16xf32>
    %789 = arith.addf %779, %787 : vector<1x16x16xf32>
    %c0_816 = arith.constant 0 : index
    %c0_817 = arith.constant 0 : index
    %c6_818 = arith.constant 6 : index
    %c6_819 = arith.constant 6 : index
    %790 = vector.load %arg9[%c0_816, %c0_817, %c6_818, %c6_819] : memref<2x1x22x22xf32, #tpu.memory_space<vmem>>, vector<1x1x16x16xf32>
    %791 = vector.shape_cast %790 : vector<1x1x16x16xf32> to vector<1x16x16xf32>
    %792 = vector.broadcast %268 : f32 to vector<1x16x16xf32>
    %793 = arith.mulf %792, %791 : vector<1x16x16xf32>
    %c1_820 = arith.constant 1 : index
    %c0_821 = arith.constant 0 : index
    %c6_822 = arith.constant 6 : index
    %c6_823 = arith.constant 6 : index
    %794 = vector.load %arg9[%c1_820, %c0_821, %c6_822, %c6_823] : memref<2x1x22x22xf32, #tpu.memory_space<vmem>>, vector<1x1x16x16xf32>
    %795 = vector.shape_cast %794 : vector<1x1x16x16xf32> to vector<1x16x16xf32>
    %796 = vector.broadcast %317 : f32 to vector<1x16x16xf32>
    %797 = arith.mulf %796, %795 : vector<1x16x16xf32>
    %798 = arith.addf %788, %793 : vector<1x16x16xf32>
    %799 = arith.addf %789, %797 : vector<1x16x16xf32>
    %800 = arith.addf %798, %799 : vector<1x16x16xf32>
    %801 = arith.addf %386, %455 : vector<1x16x16xf32>
    %802 = arith.addf %524, %593 : vector<1x16x16xf32>
    %803 = arith.addf %662, %731 : vector<1x16x16xf32>
    %804 = arith.addf %801, %802 : vector<1x16x16xf32>
    %805 = arith.addf %803, %800 : vector<1x16x16xf32>
    %806 = arith.addf %804, %805 : vector<1x16x16xf32>
    %c0_824 = arith.constant 0 : index
    %807 = memref.load %arg7[%c0_824] : memref<1xf32, #tpu.memory_space<smem>>
    %808 = vector.broadcast %807 : f32 to vector<1x16x16xf32>
    %809 = arith.addf %806, %808 : vector<1x16x16xf32>
    %810 = arith.negf %809 : vector<1x16x16xf32>
    %811 = math.exp %810 : vector<1x16x16xf32>
    %cst_825 = arith.constant 1.000000e+00 : f32
    %812 = vector.broadcast %cst_825 : f32 to vector<1x16x16xf32>
    %813 = arith.addf %812, %811 : vector<1x16x16xf32>
    %814 = arith.divf %812, %813 : vector<1x16x16xf32>
    %c0_826 = arith.constant 0 : index
    %c0_827 = arith.constant 0 : index
    %c0_828 = arith.constant 0 : index
    %815 = vector.load %arg11[%c0_826, %c0_827, %c0_828] : memref<1x16x16xf32, #tpu.memory_space<vmem>>, vector<1x16x16xf32>
    tpu.vector_store %arg11[%c0_826, %c0_827, %c0_828], %814 {strides = array<i32>} : memref<1x16x16xf32, #tpu.memory_space<vmem>>, vector<1x16x16xf32>,
    %c0_829 = arith.constant 0 : index
    %c0_830 = arith.constant 0 : index
    %c0_831 = arith.constant 0 : index
    %816 = vector.load %arg11[%c0_829, %c0_830, %c0_831] : memref<1x16x16xf32, #tpu.memory_space<vmem>>, vector<1x1x16xf32>
    %817 = vector.shape_cast %816 : vector<1x1x16xf32> to vector<1x16xf32>
    %c0_832 = arith.constant 0 : index
    %c0_833 = arith.constant 0 : index
    %c0_834 = arith.constant 0 : index
    %818 = vector.load %arg12[%c0_832, %c0_833, %c0_834] : memref<1x1x256xf32, #tpu.memory_space<vmem>>, vector<1x1x16xf32>
    %819 = vector.shape_cast %818 : vector<1x1x16xf32> to vector<1x16xf32>
    %820 = vector.shape_cast %817 : vector<1x16xf32> to vector<1x1x16xf32>
    tpu.vector_store %arg12[%c0_832, %c0_833, %c0_834], %820 {strides = array<i32>} : memref<1x1x256xf32, #tpu.memory_space<vmem>>, vector<1x1x16xf32>,
    %c0_835 = arith.constant 0 : index
    %c1_836 = arith.constant 1 : index
    %c0_837 = arith.constant 0 : index
    %821 = vector.load %arg11[%c0_835, %c1_836, %c0_837] : memref<1x16x16xf32, #tpu.memory_space<vmem>>, vector<1x1x16xf32>
    %822 = vector.shape_cast %821 : vector<1x1x16xf32> to vector<1x16xf32>
    %c0_838 = arith.constant 0 : index
    %c0_839 = arith.constant 0 : index
    %c16_840 = arith.constant 16 : index
    %823 = vector.load %arg12[%c0_838, %c0_839, %c16_840] : memref<1x1x256xf32, #tpu.memory_space<vmem>>, vector<1x1x16xf32>
    %824 = vector.shape_cast %823 : vector<1x1x16xf32> to vector<1x16xf32>
    %825 = vector.shape_cast %822 : vector<1x16xf32> to vector<1x1x16xf32>
    tpu.vector_store %arg12[%c0_838, %c0_839, %c16_840], %825 {strides = array<i32>} : memref<1x1x256xf32, #tpu.memory_space<vmem>>, vector<1x1x16xf32>,
    %c0_841 = arith.constant 0 : index
    %c2_842 = arith.constant 2 : index
    %c0_843 = arith.constant 0 : index
    %826 = vector.load %arg11[%c0_841, %c2_842, %c0_843] : memref<1x16x16xf32, #tpu.memory_space<vmem>>, vector<1x1x16xf32>
    %827 = vector.shape_cast %826 : vector<1x1x16xf32> to vector<1x16xf32>
    %c0_844 = arith.constant 0 : index
    %c0_845 = arith.constant 0 : index
    %c32_846 = arith.constant 32 : index
    %828 = vector.load %arg12[%c0_844, %c0_845, %c32_846] : memref<1x1x256xf32, #tpu.memory_space<vmem>>, vector<1x1x16xf32>
    %829 = vector.shape_cast %828 : vector<1x1x16xf32> to vector<1x16xf32>
    %830 = vector.shape_cast %827 : vector<1x16xf32> to vector<1x1x16xf32>
    tpu.vector_store %arg12[%c0_844, %c0_845, %c32_846], %830 {strides = array<i32>} : memref<1x1x256xf32, #tpu.memory_space<vmem>>, vector<1x1x16xf32>,
    %c0_847 = arith.constant 0 : index
    %c3_848 = arith.constant 3 : index
    %c0_849 = arith.constant 0 : index
    %831 = vector.load %arg11[%c0_847, %c3_848, %c0_849] : memref<1x16x16xf32, #tpu.memory_space<vmem>>, vector<1x1x16xf32>
    %832 = vector.shape_cast %831 : vector<1x1x16xf32> to vector<1x16xf32>
    %c0_850 = arith.constant 0 : index
    %c0_851 = arith.constant 0 : index
    %c48_852 = arith.constant 48 : index
    %833 = vector.load %arg12[%c0_850, %c0_851, %c48_852] : memref<1x1x256xf32, #tpu.memory_space<vmem>>, vector<1x1x16xf32>
    %834 = vector.shape_cast %833 : vector<1x1x16xf32> to vector<1x16xf32>
    %835 = vector.shape_cast %832 : vector<1x16xf32> to vector<1x1x16xf32>
    tpu.vector_store %arg12[%c0_850, %c0_851, %c48_852], %835 {strides = array<i32>} : memref<1x1x256xf32, #tpu.memory_space<vmem>>, vector<1x1x16xf32>,
    %c0_853 = arith.constant 0 : index
    %c4_854 = arith.constant 4 : index
    %c0_855 = arith.constant 0 : index
    %836 = vector.load %arg11[%c0_853, %c4_854, %c0_855] : memref<1x16x16xf32, #tpu.memory_space<vmem>>, vector<1x1x16xf32>
    %837 = vector.shape_cast %836 : vector<1x1x16xf32> to vector<1x16xf32>
    %c0_856 = arith.constant 0 : index
    %c0_857 = arith.constant 0 : index
    %c64_858 = arith.constant 64 : index
    %838 = vector.load %arg12[%c0_856, %c0_857, %c64_858] : memref<1x1x256xf32, #tpu.memory_space<vmem>>, vector<1x1x16xf32>
    %839 = vector.shape_cast %838 : vector<1x1x16xf32> to vector<1x16xf32>
    %840 = vector.shape_cast %837 : vector<1x16xf32> to vector<1x1x16xf32>
    tpu.vector_store %arg12[%c0_856, %c0_857, %c64_858], %840 {strides = array<i32>} : memref<1x1x256xf32, #tpu.memory_space<vmem>>, vector<1x1x16xf32>,
    %c0_859 = arith.constant 0 : index
    %c5_860 = arith.constant 5 : index
    %c0_861 = arith.constant 0 : index
    %841 = vector.load %arg11[%c0_859, %c5_860, %c0_861] : memref<1x16x16xf32, #tpu.memory_space<vmem>>, vector<1x1x16xf32>
    %842 = vector.shape_cast %841 : vector<1x1x16xf32> to vector<1x16xf32>
    %c0_862 = arith.constant 0 : index
    %c0_863 = arith.constant 0 : index
    %c80_864 = arith.constant 80 : index
    %843 = vector.load %arg12[%c0_862, %c0_863, %c80_864] : memref<1x1x256xf32, #tpu.memory_space<vmem>>, vector<1x1x16xf32>
    %844 = vector.shape_cast %843 : vector<1x1x16xf32> to vector<1x16xf32>
    %845 = vector.shape_cast %842 : vector<1x16xf32> to vector<1x1x16xf32>
    tpu.vector_store %arg12[%c0_862, %c0_863, %c80_864], %845 {strides = array<i32>} : memref<1x1x256xf32, #tpu.memory_space<vmem>>, vector<1x1x16xf32>,
    %c0_865 = arith.constant 0 : index
    %c6_866 = arith.constant 6 : index
    %c0_867 = arith.constant 0 : index
    %846 = vector.load %arg11[%c0_865, %c6_866, %c0_867] : memref<1x16x16xf32, #tpu.memory_space<vmem>>, vector<1x1x16xf32>
    %847 = vector.shape_cast %846 : vector<1x1x16xf32> to vector<1x16xf32>
    %c0_868 = arith.constant 0 : index
    %c0_869 = arith.constant 0 : index
    %c96_870 = arith.constant 96 : index
    %848 = vector.load %arg12[%c0_868, %c0_869, %c96_870] : memref<1x1x256xf32, #tpu.memory_space<vmem>>, vector<1x1x16xf32>
    %849 = vector.shape_cast %848 : vector<1x1x16xf32> to vector<1x16xf32>
    %850 = vector.shape_cast %847 : vector<1x16xf32> to vector<1x1x16xf32>
    tpu.vector_store %arg12[%c0_868, %c0_869, %c96_870], %850 {strides = array<i32>} : memref<1x1x256xf32, #tpu.memory_space<vmem>>, vector<1x1x16xf32>,
    %c0_871 = arith.constant 0 : index
    %c7_872 = arith.constant 7 : index
    %c0_873 = arith.constant 0 : index
    %851 = vector.load %arg11[%c0_871, %c7_872, %c0_873] : memref<1x16x16xf32, #tpu.memory_space<vmem>>, vector<1x1x16xf32>
    %852 = vector.shape_cast %851 : vector<1x1x16xf32> to vector<1x16xf32>
    %c0_874 = arith.constant 0 : index
    %c0_875 = arith.constant 0 : index
    %c112_876 = arith.constant 112 : index
    %853 = vector.load %arg12[%c0_874, %c0_875, %c112_876] : memref<1x1x256xf32, #tpu.memory_space<vmem>>, vector<1x1x16xf32>
    %854 = vector.shape_cast %853 : vector<1x1x16xf32> to vector<1x16xf32>
    %855 = vector.shape_cast %852 : vector<1x16xf32> to vector<1x1x16xf32>
    tpu.vector_store %arg12[%c0_874, %c0_875, %c112_876], %855 {strides = array<i32>} : memref<1x1x256xf32, #tpu.memory_space<vmem>>, vector<1x1x16xf32>,
    %c0_877 = arith.constant 0 : index
    %c8_878 = arith.constant 8 : index
    %c0_879 = arith.constant 0 : index
    %856 = vector.load %arg11[%c0_877, %c8_878, %c0_879] : memref<1x16x16xf32, #tpu.memory_space<vmem>>, vector<1x1x16xf32>
    %857 = vector.shape_cast %856 : vector<1x1x16xf32> to vector<1x16xf32>
    %c0_880 = arith.constant 0 : index
    %c0_881 = arith.constant 0 : index
    %c128_882 = arith.constant 128 : index
    %858 = vector.load %arg12[%c0_880, %c0_881, %c128_882] : memref<1x1x256xf32, #tpu.memory_space<vmem>>, vector<1x1x16xf32>
    %859 = vector.shape_cast %858 : vector<1x1x16xf32> to vector<1x16xf32>
    %860 = vector.shape_cast %857 : vector<1x16xf32> to vector<1x1x16xf32>
    tpu.vector_store %arg12[%c0_880, %c0_881, %c128_882], %860 {strides = array<i32>} : memref<1x1x256xf32, #tpu.memory_space<vmem>>, vector<1x1x16xf32>,
    %c0_883 = arith.constant 0 : index
    %c9_884 = arith.constant 9 : index
    %c0_885 = arith.constant 0 : index
    %861 = vector.load %arg11[%c0_883, %c9_884, %c0_885] : memref<1x16x16xf32, #tpu.memory_space<vmem>>, vector<1x1x16xf32>
    %862 = vector.shape_cast %861 : vector<1x1x16xf32> to vector<1x16xf32>
    %c0_886 = arith.constant 0 : index
    %c0_887 = arith.constant 0 : index
    %c144_888 = arith.constant 144 : index
    %863 = vector.load %arg12[%c0_886, %c0_887, %c144_888] : memref<1x1x256xf32, #tpu.memory_space<vmem>>, vector<1x1x16xf32>
    %864 = vector.shape_cast %863 : vector<1x1x16xf32> to vector<1x16xf32>
    %865 = vector.shape_cast %862 : vector<1x16xf32> to vector<1x1x16xf32>
    tpu.vector_store %arg12[%c0_886, %c0_887, %c144_888], %865 {strides = array<i32>} : memref<1x1x256xf32, #tpu.memory_space<vmem>>, vector<1x1x16xf32>,
    %c0_889 = arith.constant 0 : index
    %c10_890 = arith.constant 10 : index
    %c0_891 = arith.constant 0 : index
    %866 = vector.load %arg11[%c0_889, %c10_890, %c0_891] : memref<1x16x16xf32, #tpu.memory_space<vmem>>, vector<1x1x16xf32>
    %867 = vector.shape_cast %866 : vector<1x1x16xf32> to vector<1x16xf32>
    %c0_892 = arith.constant 0 : index
    %c0_893 = arith.constant 0 : index
    %c160_894 = arith.constant 160 : index
    %868 = vector.load %arg12[%c0_892, %c0_893, %c160_894] : memref<1x1x256xf32, #tpu.memory_space<vmem>>, vector<1x1x16xf32>
    %869 = vector.shape_cast %868 : vector<1x1x16xf32> to vector<1x16xf32>
    %870 = vector.shape_cast %867 : vector<1x16xf32> to vector<1x1x16xf32>
    tpu.vector_store %arg12[%c0_892, %c0_893, %c160_894], %870 {strides = array<i32>} : memref<1x1x256xf32, #tpu.memory_space<vmem>>, vector<1x1x16xf32>,
    %c0_895 = arith.constant 0 : index
    %c11_896 = arith.constant 11 : index
    %c0_897 = arith.constant 0 : index
    %871 = vector.load %arg11[%c0_895, %c11_896, %c0_897] : memref<1x16x16xf32, #tpu.memory_space<vmem>>, vector<1x1x16xf32>
    %872 = vector.shape_cast %871 : vector<1x1x16xf32> to vector<1x16xf32>
    %c0_898 = arith.constant 0 : index
    %c0_899 = arith.constant 0 : index
    %c176_900 = arith.constant 176 : index
    %873 = vector.load %arg12[%c0_898, %c0_899, %c176_900] : memref<1x1x256xf32, #tpu.memory_space<vmem>>, vector<1x1x16xf32>
    %874 = vector.shape_cast %873 : vector<1x1x16xf32> to vector<1x16xf32>
    %875 = vector.shape_cast %872 : vector<1x16xf32> to vector<1x1x16xf32>
    tpu.vector_store %arg12[%c0_898, %c0_899, %c176_900], %875 {strides = array<i32>} : memref<1x1x256xf32, #tpu.memory_space<vmem>>, vector<1x1x16xf32>,
    %c0_901 = arith.constant 0 : index
    %c12_902 = arith.constant 12 : index
    %c0_903 = arith.constant 0 : index
    %876 = vector.load %arg11[%c0_901, %c12_902, %c0_903] : memref<1x16x16xf32, #tpu.memory_space<vmem>>, vector<1x1x16xf32>
    %877 = vector.shape_cast %876 : vector<1x1x16xf32> to vector<1x16xf32>
    %c0_904 = arith.constant 0 : index
    %c0_905 = arith.constant 0 : index
    %c192_906 = arith.constant 192 : index
    %878 = vector.load %arg12[%c0_904, %c0_905, %c192_906] : memref<1x1x256xf32, #tpu.memory_space<vmem>>, vector<1x1x16xf32>
    %879 = vector.shape_cast %878 : vector<1x1x16xf32> to vector<1x16xf32>
    %880 = vector.shape_cast %877 : vector<1x16xf32> to vector<1x1x16xf32>
    tpu.vector_store %arg12[%c0_904, %c0_905, %c192_906], %880 {strides = array<i32>} : memref<1x1x256xf32, #tpu.memory_space<vmem>>, vector<1x1x16xf32>,
    %c0_907 = arith.constant 0 : index
    %c13_908 = arith.constant 13 : index
    %c0_909 = arith.constant 0 : index
    %881 = vector.load %arg11[%c0_907, %c13_908, %c0_909] : memref<1x16x16xf32, #tpu.memory_space<vmem>>, vector<1x1x16xf32>
    %882 = vector.shape_cast %881 : vector<1x1x16xf32> to vector<1x16xf32>
    %c0_910 = arith.constant 0 : index
    %c0_911 = arith.constant 0 : index
    %c208_912 = arith.constant 208 : index
    %883 = vector.load %arg12[%c0_910, %c0_911, %c208_912] : memref<1x1x256xf32, #tpu.memory_space<vmem>>, vector<1x1x16xf32>
    %884 = vector.shape_cast %883 : vector<1x1x16xf32> to vector<1x16xf32>
    %885 = vector.shape_cast %882 : vector<1x16xf32> to vector<1x1x16xf32>
    tpu.vector_store %arg12[%c0_910, %c0_911, %c208_912], %885 {strides = array<i32>} : memref<1x1x256xf32, #tpu.memory_space<vmem>>, vector<1x1x16xf32>,
    %c0_913 = arith.constant 0 : index
    %c14_914 = arith.constant 14 : index
    %c0_915 = arith.constant 0 : index
    %886 = vector.load %arg11[%c0_913, %c14_914, %c0_915] : memref<1x16x16xf32, #tpu.memory_space<vmem>>, vector<1x1x16xf32>
    %887 = vector.shape_cast %886 : vector<1x1x16xf32> to vector<1x16xf32>
    %c0_916 = arith.constant 0 : index
    %c0_917 = arith.constant 0 : index
    %c224_918 = arith.constant 224 : index
    %888 = vector.load %arg12[%c0_916, %c0_917, %c224_918] : memref<1x1x256xf32, #tpu.memory_space<vmem>>, vector<1x1x16xf32>
    %889 = vector.shape_cast %888 : vector<1x1x16xf32> to vector<1x16xf32>
    %890 = vector.shape_cast %887 : vector<1x16xf32> to vector<1x1x16xf32>
    tpu.vector_store %arg12[%c0_916, %c0_917, %c224_918], %890 {strides = array<i32>} : memref<1x1x256xf32, #tpu.memory_space<vmem>>, vector<1x1x16xf32>,
    %c0_919 = arith.constant 0 : index
    %c15_920 = arith.constant 15 : index
    %c0_921 = arith.constant 0 : index
    %891 = vector.load %arg11[%c0_919, %c15_920, %c0_921] : memref<1x16x16xf32, #tpu.memory_space<vmem>>, vector<1x1x16xf32>
    %892 = vector.shape_cast %891 : vector<1x1x16xf32> to vector<1x16xf32>
    %c0_922 = arith.constant 0 : index
    %c0_923 = arith.constant 0 : index
    %c240_924 = arith.constant 240 : index
    %893 = vector.load %arg12[%c0_922, %c0_923, %c240_924] : memref<1x1x256xf32, #tpu.memory_space<vmem>>, vector<1x1x16xf32>
    %894 = vector.shape_cast %893 : vector<1x1x16xf32> to vector<1x16xf32>
    %895 = vector.shape_cast %892 : vector<1x16xf32> to vector<1x1x16xf32>
    tpu.vector_store %arg12[%c0_922, %c0_923, %c240_924], %895 {strides = array<i32>} : memref<1x1x256xf32, #tpu.memory_space<vmem>>, vector<1x1x16xf32>,
    %c0_925 = arith.constant 0 : index
    %c0_926 = arith.constant 0 : index
    %c0_927 = arith.constant 0 : index
    %896 = vector.load %arg12[%c0_925, %c0_926, %c0_927] : memref<1x1x256xf32, #tpu.memory_space<vmem>>, vector<1x1x256xf32>
    %897 = vector.broadcast %45 : vector<1x32x1xf32> to vector<1x32x256xf32>
    %898 = arith.mulf %0, %897 : vector<1x32x256xf32>
    %899 = vector.broadcast %896 : vector<1x1x256xf32> to vector<1x32x256xf32>
    %900 = arith.mulf %898, %899 : vector<1x32x256xf32>
    %c0_928 = arith.constant 0 : index
    %c0_929 = arith.constant 0 : index
    %c0_930 = arith.constant 0 : index
    %901 = vector.load %arg8[%c0_928, %c0_929, %c0_930] : memref<1x32x256xf32, #tpu.memory_space<vmem>>, vector<1x32x256xf32>
    tpu.vector_store %arg8[%c0_928, %c0_929, %c0_930], %900 {strides = array<i32>} : memref<1x32x256xf32, #tpu.memory_space<vmem>>, vector<1x32x256xf32>,
    return
  }
  func.func @transform_0(%arg0: i32) -> (i32, i32, i32) {
    %c0_i32 = arith.constant 0 : i32
    %c0_i32_0 = arith.constant 0 : i32
    %c0_i32_1 = arith.constant 0 : i32
    return %arg0, %c0_i32, %c0_i32_0 : i32, i32, i32
  }
  func.func @transform_1(%arg0: i32) -> (i32, i32, i32) {
    %c0_i32 = arith.constant 0 : i32
    %c0_i32_0 = arith.constant 0 : i32
    %c0_i32_1 = arith.constant 0 : i32
    %c0_i32_2 = arith.constant 0 : i32
    return %c0_i32, %c0_i32_0, %c0_i32_1 : i32, i32, i32
  }
  func.func @transform_2(%arg0: i32) -> i32 {
    %c0_i32 = arith.constant 0 : i32
    %c0_i32_0 = arith.constant 0 : i32
    return %c0_i32 : i32
  }
  func.func @transform_3(%arg0: i32) -> (i32, i32, i32) {
    %c0_i32 = arith.constant 0 : i32
    %c0_i32_0 = arith.constant 0 : i32
    %c0_i32_1 = arith.constant 0 : i32
    %c0_i32_2 = arith.constant 0 : i32
    return %c0_i32, %c0_i32_0, %c0_i32_1 : i32, i32, i32
  }
  func.func @transform_4(%arg0: i32) -> (i32, i32) {
    %c0_i32 = arith.constant 0 : i32
    %c0_i32_0 = arith.constant 0 : i32
    %c0_i32_1 = arith.constant 0 : i32
    return %c0_i32, %c0_i32_0 : i32, i32
  }
  func.func @transform_5(%arg0: i32) -> (i32, i32) {
    %c0_i32 = arith.constant 0 : i32
    %c0_i32_0 = arith.constant 0 : i32
    %c0_i32_1 = arith.constant 0 : i32
    return %c0_i32, %c0_i32_0 : i32, i32
  }
  func.func @transform_6(%arg0: i32) -> i32 {
    %c0_i32 = arith.constant 0 : i32
    %c0_i32_0 = arith.constant 0 : i32
    return %c0_i32 : i32
  }
  func.func @transform_7(%arg0: i32) -> (i32, i32, i32) {
    %c0_i32 = arith.constant 0 : i32
    %c0_i32_0 = arith.constant 0 : i32
    %c0_i32_1 = arith.constant 0 : i32
    return %arg0, %c0_i32, %c0_i32_0 : i32, i32, i32
  }
}

</mosaic_0001>

<bundles_post_ra>
// kernel: tpu_custom_call.1
= control target key start
LH: loop header
LB: loop body
LE: loop exit
PB: predicated region body
PF: predicated region fallthrough
CT: control target
= control target key end

     0   :  { %s4819_s0 = inlined_call_operand.vmem [shape: f32[2,32,256], index: 0, kind: input, shape index: {}]   ;;  %s4820_s1 = inlined_call_operand.vmem [shape: f32[2,32,1], index: 1, kind: input, shape index: {}]   ;;  %s4821_s2 = inlined_call_operand.vmem [shape: f32[2], index: 2, kind: input, shape index: {}]   ;;  %s4822_s3 = inlined_call_operand.vmem [shape: f32[2,32,1], index: 3, kind: input, shape index: {}]   ;;  %s4823_s4 = inlined_call_operand.vmem [shape: f32[32,1], index: 4, kind: input, shape index: {}]   ;;  %s4824_s5 = inlined_call_operand.vmem [shape: f32[2,49], index: 5, kind: input, shape index: {}]   ;;  %s4825_s6 = inlined_call_operand.<no memory space> [shape: f32[1], index: 6, kind: input, shape index: {}]   ;;  %s4826_s7 = inlined_call_operand.hbm [shape: f32[2,32,256], index: 7, kind: output, shape index: {}]  }
   0x1   :  { %4864 = sst [smem:[#allocation21_spill]] %s4819_s0 }
   0x2   :  { %4865 = sst [smem:[#allocation22_spill]] %s4821_s2 }
   0x3   :  { %4866 = sst [smem:[#allocation23_spill]] %s4824_s5 }
   0x4   :  { %12 = sst [smem:[#allocation6]] %s4825_s6 }
   0x5   :  { %13 = vsyncpa [#allocation9], 0 }
   0x6   :  { %14 = vsyncpa [#allocation11], 0 }
   0x7   :  { %15 = vsyncpa [#allocation8], 0 }
   0x8   :  { %17 = vsyncpa [#allocation8 + $0x1], 0  ;;  %s3079_s26 = smov 0   ;;  %s3081_s27 = smov 0  }
   0x9   :  { %s3083_s28 = smov 0   ;;  %s3085_s29 = smov 0  }
   0xa LB: > { %4867 = sst [smem:[#allocation16_spill]] %s2994_s26  ;;  %s3100_s6 = sadd.s32 4294967295, %s3006_s29   ;;  %s3006_s29 = sphi %s3085_s29, %s4940_s29   ;;  %s3002_s28 = sphi %s3083_s28, %s4942_s28   ;;  %s2998_s27 = sphi %s3081_s27, %s4944_s27   ;;  %s2994_s26 = sphi %s3079_s26, %s4943_s26  }
   0xb   : > { %4868 = sst [smem:[#allocation17_spill]] %s3002_s28  ;;  %s2611_s30 = sadd.s32 4294967294, %s3006_s29  }
   0xc   : > { %s3104_s8 = sadd.s32 1, %s3006_s29   ;;  %s182_s9 = sadd.s32 1, %s3002_s28 }
   0xd   : > { %4869 = sst [smem:[#allocation18_spill]] %s3104_s8  ;;  %s179_s10 = ssub.s32 %s3006_s29, %s3104_s8 }
   0xe   : > { %p192_p0 = scmp.ne.s32.totalorder %s3002_s28, %s2998_s27  ;;  %p180_p1 = scmp.eq.s32.totalorder %s179_s10, 0 }
   0xf   : > { %p193_p2 = scmp.eq.s32.totalorder %s3100_s6, 1  ;;  %p198_p3 = scmp.ne.s32.totalorder %s2998_s27, %s2994_s26 }
  0x10   : > { %p199_p4 = scmp.eq.s32.totalorder %s2611_s30, 1  ;;  %p2612_p7 = scmp.ge.s32.totalorder %s3006_s29, 1 }
  0x11   : > { %s3115_s11 = scalar_select %p180_p1, %s3002_s28, %s182_s9  }
  0x12   : > { %p3117_p5 = por %p193_p2, %p192_p0  ;;  %p3121_p6 = por %p199_p4, %p198_p3 }
  0x13   : > { %4870 = sst [smem:[#allocation19_spill]] %s3115_s11  ;;  %p206_p8 = scmp.lt.s32.totalorder %s3006_s29, 3 }
  0x14   : > { %s4871_s12 = scalar_select %p3117_p5, 1, 0 }
  0x15   : > { %s4872_s13 = scalar_select %p3121_p6, 1, 0 }
  0x16   : > { %p4827_p9 = scmp.eq.s32.totalorder %s3100_s6, 0  ;;  %p3128_p10 = pnand %p2612_p7, %p206_p8 }
  0x17   : > { %4873 = sst [smem:[#allocation20_spill]] %s4872_s13  ;;  %s4875_s2 = sld [smem:[#allocation22_spill]] }
  0x18   : > { %s4874_s14 = scalar_select %p3128_p10, 1, 0 }
  0x19   : > { %p2797_p11 = pneg %p3128_p10  ;;  %s4876_s5 = sld [smem:[#allocation23_spill]] }
  0x1b   : > { %p3142_p12 = pnand %p4827_p9, %p2797_p11 }
  0x1d   : > { %s222_s17 = sshll.u32 %s4875_s2, 4  ;;  %p2908_p0 = pneg %p3142_p12  ;;  %s223_s17 = int_to_ptr.vmem [resolvable:$true] %s222_s17 }
  0x1e   : > { %s2906_s22 = scalar_lea.vmem %s223_s17, 16  ;;  %p2914_p3 = scmp.lt.s32.totalorder %s223_s17, %s223_s17 }
  0x1f   : > { %s239_s20 = sshll.u32 %s4876_s5, 4  ;;  %p2907_p13 = scmp.ne.s32.totalorder %s223_s17, %s2906_s22  ;;  %s240_s20 = int_to_ptr.vmem [resolvable:$true] %s239_s20 }
  0x20   : > { %p2915_p4 = scmp.lt.s32.totalorder %s2906_s22, %s2906_s22 }
  0x21   : > { %p2909_p1 = pnand %p2908_p0, %p2907_p13 }
  0x22   : > { %p2916_p7 = por %p2915_p4, %p2914_p3 }
  0x23   : > { %p2910_p2 = pneg %p2909_p1 }
  0x25   : > { %p2917_p8 = pnand %p2916_p7, %p2910_p2 }
  0x27   : > { %2920 = shalt.err (!%p2917_p8)
}
  0x28   : > { %s3008_s23 = smov [#allocation7]   ;;  %s2921_s24 = scalar_lea.vmem %s240_s20, 32 }
  0x29   : > { %2800 = dma.vmem_to_smem (!%p3142_p12), %s223_s17, 16, %s3008_s23, [#allocation9]  }
  0x2a   : > { %p2922_p11 = scmp.ne.s32.totalorder %s240_s20, %s2921_s24  ;;  %p2929_p5 = scmp.lt.s32.totalorder %s240_s20, %s240_s20 }
  0x2b   : > { %p2930_p10 = scmp.lt.s32.totalorder %s2921_s24, %s2921_s24 }
  0x2c   : > { %p2924_p9 = pnand %p2922_p11, %p2908_p0 }
  0x2d   : > { %p2931_p13 = por %p2930_p10, %p2929_p5 }
  0x2e   : > { %p2925_p6 = pneg %p2924_p9 }
  0x30   : > { %p2932_p1 = pnand %p2931_p13, %p2925_p6 }
  0x32   : > { %2935 = shalt.err (!%p2932_p1)
}
  0x33   : > { %s3009_s25 = smov [#allocation10]   ;;  %p4878_p2 = scmp.ne.s32.totalorder %s4874_s14, 0 }
  0x34   : > { %2803 = dma.vmem_to_smem (!%p3142_p12), %s240_s20, 32, %s3009_s25, [#allocation11]  }
  0x35   : > { %263 = sbr.rel (%p4878_p2) target bundleno = 961 (0x3c1), region = 48  ;;  %p4879_p3 = scmp.eq.s32.totalorder (!%p4878_p2), %s3100_s6, 0 }
  0x3c   : > { %2981 = dma.done.wait (%p4879_p3), [#allocation9], 16   ;;  %p4880_p4 = pmov %p4879_p3 }
  0x3d   : > { %p4881_p9 = pmov %p4879_p3 }
  0x3e   : > { %2983 = vsyncadd (%p4880_p4), [#allocation9], 4294967280 }
  0x3f   : > { %2985 = dma.done.wait (%p4881_p9), [#allocation11], 32   ;;  %p4882_p5 = pmov %p4879_p3 }
  0x41   : > { %2987 = vsyncadd (%p4882_p5), [#allocation11], 4294967264 }
  0x42   : > { %273 = sfence }
  0x43   : > { %p300_p6 = scmp.lt.s32.totalorder %s3100_s6, 1  ;;  %s4883_s0 = sld [smem:[#allocation21_spill]]  ;;  %v3010_v30 = vmov 1966171168   ;;  %v4847_v32 = vlaneseq  ;;  %vm515_vm1 = vcmask 179200   ;;  %v3011_v62 = vmov 0.0  }
  0x44   : > { %v476_v31 = vunpack.c.l.s4 %v3010_v30  ;;  %520 = vst.msk [vmem:[#allocation2 + $0x18] sm:$0xff] %vm515_vm1, %v3011_v62  ;;  %516 = vst.msk [vmem:[#allocation2] sm:$0xff] %vm515_vm1, %v3011_v62  ;;  %s3012_s16 = smov 3   ;;  %s3013_s17 = smov 115   ;;  %vm518_vm2 = vcmask 177152   ;;  %vm532_vm3 = vcmask 147480  }
  0x45   : > { %s301_s30 = scalar_select %p300_p6, %s3100_s6, 1  ;;  %v3178_v42 = vshrl.u32 %v4847_v32, 7  ;;  %vm492_vm0 = vcmp.lt.s32.totalorder %v4847_v32, 256  ;;  %517 = vst.msk [vmem:[#allocation2 + $0x8] sm:$0xff] %vm515_vm1, %v3011_v62  ;;  %521 = vst.msk [vmem:[#allocation2 + $0x20] sm:$0xff] %vm515_vm1, %v3011_v62  ;;  %vm341_vm4 = vcmask 7168  }
  0x46   : > { %v477_v41 = vunpack.c.0.s8 %v476_v31  ;;  %s3014_s18 = smov 99   ;;  %s3015_s19 = smov 83   ;;  %522 = vst.msk [vmem:[#allocation2 + $0x28] sm:$0x3f] %vm518_vm2, %v3011_v62  ;;  %519 = vst.msk [vmem:[#allocation2 + $0x10] sm:$0x3f] %vm518_vm2, %v3011_v62 }
  0x47   : > { %s2785_s9 = sshll.u32 %s301_s30, 6  ;;  %s3016_s20 = smov 67   ;;  %vm2147_vm5 = vcmask 130048  }
  0x48   : > { %v3181_v51 = vsub.s32 %v477_v41, %v3178_v42  ;;  %s3017_s21 = smov 51   ;;  %s3018_s22 = smov 35  }
  0x49   : > { %s3167_s15 = scalar_lea.vmem %s4883_s0, %s2785_s9  ;;  %s3019_s23 = smov 19  }
  0x4a   : > { %v309_v0 = vld [vmem:[%s3167_s15 + $0x20] sm:$0xff]  ;;  %v310_v1 = vld [vmem:[%s3167_s15 + $0x28] sm:$0xff]  ;;  %v311_v6 = vld [vmem:[%s3167_s15 + $0x30] sm:$0xff]  ;;  %s3205_s24 = sld [smem:[#allocation10 + $0x81]]  ;;  %s3209_s25 = sld [smem:[#allocation10 + $0x82]] }
  0x4b   : > { %v305_v2 = vld [vmem:[%s3167_s15] sm:$0xff]  ;;  %v319_v3 = vadd.f32 %v310_v1, %v309_v0  ;;  %v306_v4 = vld [vmem:[%s3167_s15 + $0x8] sm:$0xff]  ;;  %v312_v7 = vld [vmem:[%s3167_s15 + $0x38] sm:$0xff]  ;;  %s3216_s30 = sld [smem:[#allocation10 + $0x83]]  ;;  %s3224_s9 = sld [smem:[#allocation10 + $0x84]] }
  0x4c   : > { %v454_v5 = vmax.f32 %v305_v2, %v309_v0  ;;  %v313_v8 = vadd.f32 %v306_v4, %v305_v2  ;;  %v463_v9 = vmax.f32 %v306_v4, %v310_v1  ;;  %v307_v10 = vld [vmem:[%s3167_s15 + $0x10] sm:$0xff]  ;;  %v308_v11 = vld [vmem:[%s3167_s15 + $0x18] sm:$0xff]  ;;  %v322_v12 = vadd.f32 %v312_v7, %v311_v6  ;;  %s4840_s10 = smov 127   ;;  %s3233_s14 = sld [smem:[#allocation10 + $0x85]] }
  0x4d   : > { %320 = vadd.xlane.f32.xlu1 %v319_v3  ;;  %v434_v13 = vadd.f32 %v307_v10, %v305_v2  ;;  %v443_v14 = vadd.f32 %v308_v11, %v306_v4  ;;  %v455_v15 = vmax.f32 %v307_v10, %v311_v6  ;;  %v316_v16 = vadd.f32 %v308_v11, %v307_v10  ;;  %s4888_s0 = smov 127   ;;  %s3535_s2 = sld [smem:[#allocation10 + $0x16]] }
  0x4e   : > { %314 = vadd.xlane.f32.xlu0 %v313_v8  ;;  %v464_v17 = vmax.f32 %v308_v11, %v312_v7  ;;  %s3548_s5 = sld [smem:[#allocation10 + $0x96]]  ;;  %s4889_s11 = smov 126  }
  0x4f   : > { %v435_v18 = vadd.f32 %v434_v13, %v309_v0  ;;  %v444_v19 = vadd.f32 %v443_v14, %v310_v1  ;;  %v456_v20 = vmax.f32 %v454_v5, %v455_v15  ;;  %s3610_s28 = sld [smem:[#allocation10 + $0x80]]  ;;  %s3740_s13 = sld [smem:[#allocation10 + $0x87]] }
  0x50   : > { %v465_v21 = vmax.f32 %v463_v9, %v464_v17  ;;  %s3613_s8 = sld [smem:[#allocation10]]  ;;  %s3742_s26 = sld [smem:[#allocation10 + $0x7]] }
  0x51   : > { %323 = vadd.xlane.f32.xlu1 %v322_v12  ;;  %v436_v22 = vadd.f32 %v435_v18, %v311_v6  ;;  %v445_v23 = vadd.f32 %v444_v19, %v312_v7  ;;  %v457_v24 = vrot.slane %v456_v20, 4  ;;  %p4936_p12 = scmp.ne.s32.totalorder %s4871_s12, 0 }
  0x52   : > { %v466_v25 = vrot.slane %v465_v21, 4  ;;  %317 = vadd.xlane.f32.xlu0 %v316_v16 }
  0x53   : > { %v437_v26 = vrot.slane %v436_v22, 4  ;;  %v446_v27 = vrot.slane %v445_v23, 4  ;;  %v458_v28 = vmax.f32 %v456_v20, %v457_v24 }
  0x54   : > { %v467_v29 = vmax.f32 %v465_v21, %v466_v25 }
  0x55   : > { %v438_v33 = vadd.f32 %v437_v26, %v436_v22  ;;  %v447_v34 = vadd.f32 %v446_v27, %v445_v23  ;;  %v459_v35 = vrot.slane %v458_v28, 2  ;;  %v956_v22 = vstv %s3205_s24  ;;  %s3313_s24 = sld [smem:[#allocation10 + $0x3]] }
  0x56   : > { %v468_v36 = vrot.slane %v467_v29, 2  ;;  %v982_v26 = vstv %s3209_s25  ;;  %s4885_s25 = smov 125  }
  0x57   : > { %v439_v37 = vrot.slane %v438_v33, 2  ;;  %v448_v38 = vrot.slane %v447_v34, 2  ;;  %v460_v39 = vmax.f32 %v458_v28, %v459_v35 }
  0x58   : > { %v469_v40 = vmax.f32 %v467_v29, %v468_v36  ;;  %v1008_v29 = vstv %s3216_s30  ;;  %s3340_s30 = sld [smem:[#allocation10 + $0x6]] }
  0x59   : > { %v440_v43 = vadd.f32 %v439_v37, %v438_v33  ;;  %v449_v44 = vadd.f32 %v448_v38, %v447_v34  ;;  %v461_v45 = vrot.slane %v460_v39, 1  ;;  %v1034_v34 = vstv %s3224_s9  ;;  %s4886_s9 = smov 123  }
  0x5a   : > { %v470_v46 = vrot.slane %v469_v40, 1  ;;  %v1060_v38 = vstv %s3233_s14  ;;  %s4887_s14 = smov 122  }
  0x5b   : > { %v441_v47 = vrot.slane %v440_v43, 1  ;;  %v450_v48 = vrot.slane %v449_v44, 1  ;;  %v462_v49 = vmax.f32 %v460_v39, %v461_v45 }
  0x5c   : > { %v471_v50 = vmax.f32 %v469_v40, %v470_v46 }
  0x5d   : > { %v442_v52 = vadd.f32 %v441_v47, %v440_v43  ;;  %v451_v53 = vadd.f32 %v450_v48, %v449_v44 }
  0x5e   : > { %v497_v54 = vcombine.low %v462_v49, %v471_v50 }
  0x5f   : > { %v452_v55 = vmul.f32 0.03125, %v442_v52  ;;  %v453_v56 = vmul.f32 0.03125, %v451_v53 }
  0x60   : > { %v504_v57 = vrot.slane %v497_v54, %v3181_v51 }
  0x61   : > { %v474_v58 = vcombine.low %v452_v55, %v453_v56 }
  0x62   : > { %v511_v59 = vrot.slane %v504_v57, %v3181_v51 }
  0x63   : > { %v481_v60 = vrot.slane %v474_v58, %v3181_v51 }
  0x64   : > { %514 = vst.msk [vmem:[#allocation3 + $0x2] sm:$0x3] %vm492_vm0, %v511_v59 }
  0x65   : > { %v488_v61 = vrot.slane %v481_v60, %v3181_v51 }
  0x67   : > { %494 = vst.msk [vmem:[#allocation3] sm:$0x3] %vm492_vm0, %v488_v61 }
  0x6b   : > { %v2636_v63 = vld [vmem:[#allocation3 + $0x2] ss:$0 sm:$0xff]  ;;  %v2652_v2 = vld [vmem:[#allocation3 + $0x3] ss:$0 sm:$0xff] }
  0x6c   : > { %540 = vrot.lane.b32.xlu1 %v2636_v63, %s3012_s16 }
  0x6e   : > { %v2635_v0 = vld [vmem:[#allocation3] ss:$0 sm:$0xff]  ;;  %v2651_v1 = vld [vmem:[#allocation3 + $0x1] ss:$0 sm:$0xff] }
  0x6f   : > { %529 = vrot.lane.b32.xlu0 %v2635_v0, %s3012_s16 }
  0x70   : > { %561 = vrot.lane.b32.xlu1 %v2636_v63, %s3013_s17 }
  0x73   : > { %571 = vrot.lane.b32.xlu0 %v2635_v0, %s3014_s18 }
  0x74   : > { %581 = vrot.lane.b32.xlu1 %v2636_v63, %s3014_s18 }
  0x77   : > { %591 = vrot.lane.b32.xlu0 %v2635_v0, %s3015_s19 }
  0x78   : > { %601 = vrot.lane.b32.xlu1 %v2636_v63, %s3015_s19 }
  0x7b   : > { %611 = vrot.lane.b32.xlu0 %v2635_v0, %s3016_s20 }
  0x7c   : > { %621 = vrot.lane.b32.xlu1 %v2636_v63, %s3016_s20 }
  0x7f   : > { %631 = vrot.lane.b32.xlu0 %v2635_v0, %s3017_s21 }
  0x80   : > { %551 = vrot.lane.b32.xlu1 %v2635_v0, %s3013_s17 }
  0x83   : > { %651 = vrot.lane.b32.xlu0 %v2635_v0, %s3018_s22 }
  0x84   : > { %641 = vrot.lane.b32.xlu1 %v2636_v63, %s3017_s21 }
  0x87   : > { %671 = vrot.lane.b32.xlu0 %v2635_v0, %s3019_s23 }
  0x88   : > { %661 = vrot.lane.b32.xlu1 %v2636_v63, %s3018_s22 }
  0x8b   : > { %691 = vrot.lane.b32.xlu0 %v2651_v1, %s3012_s16 }
  0x8c   : > { %681 = vrot.lane.b32.xlu1 %v2636_v63, %s3019_s23 }
  0x8f   : > { %711 = vrot.lane.b32.xlu0 %v2651_v1, %s3013_s17 }
  0x90   : > { %701 = vrot.lane.b32.xlu1 %v2652_v2, %s3012_s16  ;;  %s4838_s16 = smov 126  }
  0x93   : > { %731 = vrot.lane.b32.xlu0 %v2651_v1, %s3014_s18 }
  0x94   : > { %721 = vrot.lane.b32.xlu1 %v2652_v2, %s3013_s17  ;;  %s3242_s17 = sld [smem:[#allocation10 + $0x86]] }
  0x97   : > { %751 = vrot.lane.b32.xlu0 %v2651_v1, %s3015_s19 }
  0x98   : > { %741 = vrot.lane.b32.xlu1 %v2652_v2, %s3014_s18  ;;  %s4836_s18 = smov 125  }
  0x9a   : > { %v1086_v43 = vstv %s3242_s17  ;;  %s3371_s17 = sld [smem:[#allocation10 + $0xa]] }
  0x9b   : > { %771 = vrot.lane.b32.xlu0 %v2651_v1, %s3016_s20 }
  0x9c   : > { %761 = vrot.lane.b32.xlu1 %v2652_v2, %s3015_s19  ;;  %s3251_s19 = sld [smem:[#allocation10 + $0x88]] }
  0x9f   : > { %791 = vrot.lane.b32.xlu0 %v2651_v1, %s3017_s21 }
  0xa0   : > { %781 = vrot.lane.b32.xlu1 %v2652_v2, %s3016_s20  ;;  %s4830_s20 = smov 124  }
  0xa2   : > { %v1124_v48 = vstv %s3251_s19  ;;  %s3378_s19 = sld [smem:[#allocation10 + $0xb]] }
  0xa3   : > { %811 = vrot.lane.b32.xlu0 %v2651_v1, %s3018_s22 }
  0xa4   : > { %801 = vrot.lane.b32.xlu1 %v2652_v2, %s3017_s21  ;;  %s3260_s21 = sld [smem:[#allocation10 + $0x89]] }
  0xa7   : > { %831 = vrot.lane.b32.xlu0 %v2651_v1, %s3019_s23 }
  0xa8   : > { %821 = vrot.lane.b32.xlu1 %v2652_v2, %s3018_s22  ;;  %s4832_s22 = smov 123  }
  0xaa   : > { %v1150_v53 = vstv %s3260_s21  ;;  %s3385_s21 = sld [smem:[#allocation10 + $0xc]] }
  0xac   : > { %841 = vrot.lane.b32.xlu1 %v2652_v2, %s3019_s23  ;;  %s3271_s23 = sld [smem:[#allocation10 + $0x8a]] }
  0xb2   : > { %v1176_v57 = vstv %s3271_s23  ;;  %s3301_s23 = sld [smem:[#allocation10 + $0x2]] }
  0xda   : > { %v3188_v3 = vpop.xlane.xlu1 %320 }
  0xdb   : > { %v3190_v4 = vpop.xlane.xlu0 %314 }
  0xde   : > { %v3192_v5 = vpop.xlane.xlu1 %323 }
  0xdf   : > { %v3194_v6 = vpop.xlane.xlu0 %317 }
  0xe2   : > { %v541_v7 = vpop.permute.xlu1 %540 }
  0xe3   : > { %544 = vst.msk [vmem:[#allocation2 + $0x1b] sm:$0x1] %vm532_vm3, %v541_v7  ;;  %v530_v8 = vpop.permute.xlu0 %529 }
  0xe4   : > { %533 = vst.msk [vmem:[#allocation2 + $0x3] sm:$0x1] %vm532_vm3, %v530_v8 }
  0xe6   : > { %v562_v9 = vpop.permute.xlu1 %561 }
  0xe7   : > { %564 = vst.msk [vmem:[#allocation2 + $0x1c] sm:$0x1] %vm532_vm3, %v562_v9  ;;  %v572_v10 = vpop.permute.xlu0 %571 }
  0xe8   : > { %574 = vst.msk [vmem:[#allocation2 + $0x5] sm:$0x1] %vm532_vm3, %v572_v10 }
  0xea   : > { %v582_v11 = vpop.permute.xlu1 %581 }
  0xeb   : > { %584 = vst.msk [vmem:[#allocation2 + $0x1d] sm:$0x1] %vm532_vm3, %v582_v11  ;;  %v592_v12 = vpop.permute.xlu0 %591  ;;  %v979_v11 = vstv %s3301_s23  ;;  %s3349_s23 = sld [smem:[#allocation10 + $0x8]] }
  0xec   : > { %594 = vst.msk [vmem:[#allocation2 + $0x6] sm:$0x1] %vm532_vm3, %v592_v12 }
  0xee   : > { %v602_v13 = vpop.permute.xlu1 %601 }
  0xef   : > { %604 = vst.msk [vmem:[#allocation2 + $0x1e] sm:$0x1] %vm532_vm3, %v602_v13  ;;  %v612_v14 = vpop.permute.xlu0 %611 }
  0xf0   : > { %614 = vst.msk [vmem:[#allocation2 + $0x7] sm:$0x1] %vm532_vm3, %v612_v14  ;;  %v1005_v14 = vstv %s3313_s24  ;;  %s3394_s24 = sld [smem:[#allocation10 + $0x8c]] }
  0xf2   : > { %v622_v15 = vpop.permute.xlu1 %621 }
  0xf3   : > { %624 = vst.msk [vmem:[#allocation2 + $0x1f] sm:$0x1] %vm532_vm3, %v622_v15  ;;  %v632_v16 = vpop.permute.xlu0 %631 }
  0xf4   : > { %634 = vst.msk [vmem:[#allocation2 + $0x8] sm:$0x1] %vm532_vm3, %v632_v16 }
  0xf6   : > { %v552_v17 = vpop.permute.xlu1 %551 }
  0xf7   : > { %554 = vst.msk [vmem:[#allocation2 + $0x4] sm:$0x1] %vm532_vm3, %v552_v17  ;;  %v652_v18 = vpop.permute.xlu0 %651 }
  0xf8   : > { %654 = vst.msk [vmem:[#allocation2 + $0x9] sm:$0x1] %vm532_vm3, %v652_v18 }
  0xfa   : > { %v642_v19 = vpop.permute.xlu1 %641  ;;  %v3213_v21 = vld [vmem:[#allocation2 + $0x18] sm:$0xff] }
  0xfb   : > { %644 = vst.msk [vmem:[#allocation2 + $0x20] sm:$0x1] %vm532_vm3, %v642_v19  ;;  %v672_v20 = vpop.permute.xlu0 %671  ;;  %v957_v23 = vmul.f32 %v956_v22, %v3213_v21  ;;  %v983_v27 = vmul.f32 %v982_v26, %v3213_v21  ;;  %v1009_v31 = vmul.f32 %v1008_v29, %v3213_v21  ;;  %v1035_v36 = vmul.f32 %v1034_v34, %v3213_v21 }
  0xfc   : > { %674 = vst.msk [vmem:[#allocation2 + $0xa] sm:$0x1] %vm532_vm3, %v672_v20  ;;  %v1061_v40 = vmul.f32 %v1060_v38, %v3213_v21  ;;  %v1087_v45 = vmul.f32 %v1086_v43, %v3213_v21 }
  0xfd   : > { %971 = vrot.lane.b32.xlu0 %v957_v23, %s4840_s10 }
  0xfe   : > { %v662_v24 = vpop.permute.xlu1 %661  ;;  %v3310_v7 = vld [vmem:[#allocation2] sm:$0xff] }
  0xff   : > { %664 = vst.msk [vmem:[#allocation2 + $0x21] sm:$0x1] %vm532_vm3, %v662_v24  ;;  %v692_v25 = vpop.permute.xlu0 %691  ;;  %v980_v12 = vmul.f32 %v979_v11, %v3310_v7  ;;  %v1006_v15 = vmul.f32 %v1005_v14, %v3310_v7 }
 0x100   : > { %694 = vst.msk [vmem:[#allocation2 + $0xb] sm:$0x1] %vm532_vm3, %v692_v25  ;;  %v1083_v25 = vstv %s3340_s30  ;;  %s3408_s30 = sld [smem:[#allocation10 + $0x8d]] }
 0x101   : > { %997 = vrot.lane.b32.xlu0 %v983_v27, %s4838_s16 }
 0x102   : > { %v682_v28 = vpop.permute.xlu1 %681  ;;  %v3268_v47 = vld [vmem:[#allocation2 + $0x19] sm:$0xff] }
 0x103   : > { %684 = vst.msk [vmem:[#allocation2 + $0x22] sm:$0x1] %vm532_vm3, %v682_v28  ;;  %v712_v30 = vpop.permute.xlu0 %711  ;;  %v1125_v50 = vmul.f32 %v1124_v48, %v3268_v47  ;;  %v1151_v55 = vmul.f32 %v1150_v53, %v3268_v47  ;;  %v1177_v59 = vmul.f32 %v1176_v57, %v3268_v47  ;;  %v3368_v28 = vld [vmem:[#allocation2 + $0x1] sm:$0xff] }
 0x104   : > { %714 = vst.msk [vmem:[#allocation2 + $0xc] sm:$0x1] %vm532_vm3, %v712_v30 }
 0x105   : > { %1023 = vrot.lane.b32.xlu0 %v1009_v31, %s4836_s18 }
 0x106   : > { %v702_v33 = vpop.permute.xlu1 %701 }
 0x107   : > { %704 = vst.msk [vmem:[#allocation2 + $0x23] sm:$0x1] %vm532_vm3, %v702_v33  ;;  %v732_v35 = vpop.permute.xlu0 %731 }
 0x108   : > { %734 = vst.msk [vmem:[#allocation2 + $0xd] sm:$0x1] %vm532_vm3, %v732_v35 }
 0x109   : > { %1049 = vrot.lane.b32.xlu0 %v1035_v36, %s4830_s20  ;;  %s4834_s20 = smov 122   ;;  %v1173_v36 = vstv %s3371_s17  ;;  %s3431_s17 = sld [smem:[#allocation10 + $0x10]] }
 0x10a   : > { %v722_v37 = vpop.permute.xlu1 %721 }
 0x10b   : > { %724 = vst.msk [vmem:[#allocation2 + $0x24] sm:$0x1] %vm532_vm3, %v722_v37  ;;  %v752_v39 = vpop.permute.xlu0 %751 }
 0x10c   : > { %754 = vst.msk [vmem:[#allocation2 + $0xe] sm:$0x1] %vm532_vm3, %v752_v39  ;;  %v1199_v39 = vstv %s3378_s19  ;;  %s3442_s19 = sld [smem:[#allocation10 + $0x90]] }
 0x10d   : > { %1075 = vrot.lane.b32.xlu0 %v1061_v40, %s4832_s22  ;;  %s3280_s22 = sld [smem:[#allocation10 + $0x8b]] }
 0x10e   : > { %v742_v41 = vpop.permute.xlu1 %741 }
 0x10f   : > { %744 = vst.msk [vmem:[#allocation2 + $0x25] sm:$0x1] %vm532_vm3, %v742_v41  ;;  %v772_v44 = vpop.permute.xlu0 %771  ;;  %v1200_v41 = vmul.f32 %v1199_v39, %v3368_v28 }
 0x110   : > { %774 = vst.msk [vmem:[#allocation2 + $0xf] sm:$0x1] %vm532_vm3, %v772_v44 }
 0x111   : > { %1101 = vrot.lane.b32.xlu0 %v1087_v45, %s4834_s20  ;;  %s3289_s20 = sld [smem:[#allocation10 + $0x1]] }
 0x112   : > { %v762_v46 = vpop.permute.xlu1 %761 }
 0x113   : > { %764 = vst.msk [vmem:[#allocation2 + $0x26] sm:$0x1] %vm532_vm3, %v762_v46  ;;  %v792_v49 = vpop.permute.xlu0 %791  ;;  %v1202_v63 = vstv %s3280_s22  ;;  %s4884_s22 = smov 124   ;;  %v1228_v46 = vstv %s3394_s24  ;;  %s3458_s24 = sld [smem:[#allocation10 + $0x91]] }
 0x114   : > { %794 = vst.msk [vmem:[#allocation2 + $0x10] sm:$0x1] %vm532_vm3, %v792_v49  ;;  %v1203_v0 = vmul.f32 %v1202_v63, %v3268_v47  ;;  %v1229_v49 = vmul.f32 %v1228_v46, %v3268_v47 }
 0x115   : > { %1139 = vrot.lane.b32.xlu0 %v1125_v50, %s4840_s10 }
 0x116   : > { %v782_v52 = vpop.permute.xlu1 %781 }
 0x117   : > { %784 = vst.msk [vmem:[#allocation2 + $0x27] sm:$0x1] %vm532_vm3, %v782_v52  ;;  %v812_v54 = vpop.permute.xlu0 %811  ;;  %v953_v8 = vstv %s3289_s20  ;;  %s3331_s20 = sld [smem:[#allocation10 + $0x5]]  ;;  %v3388_v37 = vld [vmem:[#allocation2 + $0x8] sm:$0xff] }
 0x118   : > { %814 = vst.msk [vmem:[#allocation2 + $0x11] sm:$0x1] %vm532_vm3, %v812_v54  ;;  %v954_v9 = vmul.f32 %v953_v8, %v3310_v7  ;;  %v955_v40 = vmul.f32 %v953_v8, %v3388_v37  ;;  %v981_v44 = vmul.f32 %v979_v11, %v3388_v37  ;;  %v1254_v54 = vstv %s3408_s30  ;;  %s3476_s30 = sld [smem:[#allocation10 + $0x92]] }
 0x119   : > { %1165 = vrot.lane.b32.xlu0 %v1151_v55, %s4838_s16  ;;  %v1315_v8 = vstv %s3431_s17  ;;  %v1318_v11 = vstv %s3442_s19  ;;  %s3563_s17 = sld [smem:[#allocation10 + $0x17]] }
 0x11a   : > { %v802_v56 = vpop.permute.xlu1 %801  ;;  %s3578_s19 = sld [smem:[#allocation10 + $0x97]] }
 0x11b   : > { %804 = vst.msk [vmem:[#allocation2 + $0x28] sm:$0x1] %vm532_vm3, %v802_v56  ;;  %v832_v58 = vpop.permute.xlu0 %831  ;;  %v1255_v56 = vmul.f32 %v1254_v54, %v3268_v47 }
 0x11c   : > { %834 = vst.msk [vmem:[#allocation2 + $0x12] sm:$0x1] %vm532_vm3, %v832_v58 }
 0x11d   : > { %1191 = vrot.lane.b32.xlu0 %v1177_v59, %s4836_s18  ;;  %s3322_s18 = sld [smem:[#allocation10 + $0x4]]  ;;  %v1057_v20 = vstv %s3331_s20  ;;  %s3401_s20 = sld [smem:[#allocation10 + $0xd]]  ;;  %v1085_v59 = vmul.f32 %v1083_v25, %v3388_v37 }
 0x11e   : > { %v822_v60 = vpop.permute.xlu1 %821  ;;  %v3294_v61 = vld [vmem:[#allocation2 + $0x20] sm:$0xff]  ;;  %v1058_v23 = vmul.f32 %v1057_v20, %v3310_v7  ;;  %v1059_v55 = vmul.f32 %v1057_v20, %v3388_v37 }
 0x11f   : > { %824 = vst.msk [vmem:[#allocation2 + $0x29] sm:$0x1] %vm532_vm3, %v822_v60  ;;  %v958_v62 = vmul.f32 %v956_v22, %v3294_v61  ;;  %v984_v2 = vmul.f32 %v982_v26, %v3294_v61  ;;  %v1010_v10 = vmul.f32 %v1008_v29, %v3294_v61  ;;  %v1036_v13 = vmul.f32 %v1034_v34, %v3294_v61  ;;  %v3434_v60 = vld [vmem:[#allocation2 + $0x9] sm:$0xff] }
 0x120   : > { %v1062_v16 = vmul.f32 %v1060_v38, %v3294_v61  ;;  %v1088_v19 = vmul.f32 %v1086_v43, %v3294_v61  ;;  %v1084_v26 = vmul.f32 %v1083_v25, %v3310_v7  ;;  %v1121_v29 = vstv %s3349_s23  ;;  %s3415_s23 = sld [smem:[#allocation10 + $0xf]] }
 0x121   : > { %973 = vrot.lane.b32.xlu1 %v958_v62, %s4840_s10  ;;  %1217 = vrot.lane.b32.xlu0 %v1203_v0, %s4884_s22  ;;  %v1122_v30 = vmul.f32 %v1121_v29, %v3368_v28  ;;  %v1174_v38 = vmul.f32 %v1173_v36, %v3368_v28  ;;  %v1225_v43 = vstv %s3385_s21  ;;  %s3449_s21 = sld [smem:[#allocation10 + $0x11]] }
 0x122   : > { %v842_v1 = vpop.permute.xlu1 %841  ;;  %v3352_v22 = vld [vmem:[#allocation2 + $0x21] sm:$0xff]  ;;  %v1226_v45 = vmul.f32 %v1225_v43, %v3368_v28 }
 0x123   : > { %844 = vst.msk [vmem:[#allocation2 + $0x2a] sm:$0x1] %vm532_vm3, %v842_v1  ;;  %v1031_v17 = vstv %s3322_s18  ;;  %v1126_v24 = vmul.f32 %v1124_v48, %v3352_v22  ;;  %s3360_s18 = sld [smem:[#allocation10 + $0x9]]  ;;  %v1152_v27 = vmul.f32 %v1150_v53, %v3352_v22  ;;  %v1178_v31 = vmul.f32 %v1176_v57, %v3352_v22  ;;  %v3427_v57 = vld [vmem:[#allocation2 + $0x2] sm:$0xff] }
 0x124   : > { %v1032_v18 = vmul.f32 %v1031_v17, %v3310_v7  ;;  %v1204_v35 = vmul.f32 %v1202_v63, %v3352_v22  ;;  %v1007_v48 = vmul.f32 %v1005_v14, %v3388_v37  ;;  %v1251_v50 = vstv %s3401_s20  ;;  %v3438_v63 = vld [vmem:[#allocation2 + $0x1a] sm:$0xff]  ;;  %s3467_s20 = sld [smem:[#allocation10 + $0x12]] }
 0x125   : > { %999 = vrot.lane.b32.xlu1 %v984_v2, %s4838_s16  ;;  %961 = vrot.lane.b32.xlu0 %v954_v9, %s4840_s10  ;;  %v1033_v52 = vmul.f32 %v1031_v17, %v3388_v37  ;;  %v1252_v53 = vmul.f32 %v1251_v50, %v3368_v28  ;;  %v1123_v1 = vmul.f32 %v1121_v29, %v3434_v60  ;;  %v1344_v17 = vstv %s3458_s24  ;;  %s3608_s24 = sld [smem:[#allocation10 + $0x98]] }
 0x126   : > { %v1289_v58 = vstv %s3415_s23  ;;  %v1345_v20 = vmul.f32 %v1344_v17, %v3438_v63  ;;  %s3487_s23 = sld [smem:[#allocation10 + $0x13]]  ;;  %v1253_v29 = vmul.f32 %v1251_v50, %v3434_v60 }
 0x127   : > { %v1290_v62 = vmul.f32 %v1289_v58, %v3427_v57  ;;  %v1341_v14 = vstv %s3449_s21  ;;  %s3593_s21 = sld [smem:[#allocation10 + $0x18]] }
 0x129   : > { %1025 = vrot.lane.b32.xlu1 %v1010_v10, %s4885_s25  ;;  %987 = vrot.lane.b32.xlu0 %v980_v12, %s4838_s16  ;;  %v1147_v33 = vstv %s3360_s18  ;;  %s3422_s18 = sld [smem:[#allocation10 + $0x8f]]  ;;  %v1316_v10 = vmul.f32 %v1315_v8, %v3427_v57  ;;  %v1175_v12 = vmul.f32 %v1173_v36, %v3434_v60 }
 0x12a   : > { %v1148_v34 = vmul.f32 %v1147_v33, %v3368_v28  ;;  %v1149_v9 = vmul.f32 %v1147_v33, %v3434_v60 }
 0x12c   : > { %v1393_v33 = vstv %s3487_s23  ;;  %s3659_s23 = sld [smem:[#allocation10 + $0x1a]] }
 0x12d   : > { %1051 = vrot.lane.b32.xlu1 %v1036_v13, %s4884_s22  ;;  %1013 = vrot.lane.b32.xlu0 %v1006_v15, %s4885_s25  ;;  %v1319_v13 = vmul.f32 %v1318_v11, %v3438_v63  ;;  %v1201_v15 = vmul.f32 %v1199_v39, %v3434_v60 }
 0x12f   : > { %v1292_v0 = vstv %s3422_s18  ;;  %s3498_s18 = sld [smem:[#allocation10 + $0x93]] }
 0x130   : > { %v1293_v2 = vmul.f32 %v1292_v0, %v3438_v63 }
 0x131   : > { %1077 = vrot.lane.b32.xlu1 %v1062_v16, %s4886_s9  ;;  %1039 = vrot.lane.b32.xlu0 %v1032_v18, %s4884_s22  ;;  %v1342_v16 = vmul.f32 %v1341_v14, %v3427_v57  ;;  %v1227_v18 = vmul.f32 %v1225_v43, %v3434_v60 }
 0x135   : > { %1103 = vrot.lane.b32.xlu1 %v1088_v19, %s4887_s14  ;;  %1065 = vrot.lane.b32.xlu0 %v1058_v23, %s4886_s9  ;;  %v1367_v23 = vstv %s3467_s20  ;;  %v1396_v39 = vstv %s3498_s18  ;;  %s3625_s20 = sld [smem:[#allocation10 + $0x19]]  ;;  %s3674_s18 = sld [smem:[#allocation10 + $0x9a]] }
 0x139   : > { %1141 = vrot.lane.b32.xlu1 %v1126_v24, %s4840_s10  ;;  %1091 = vrot.lane.b32.xlu0 %v1084_v26, %s4887_s14  ;;  %v1230_v24 = vmul.f32 %v1228_v46, %v3352_v22  ;;  %v1368_v26 = vmul.f32 %v1367_v23, %v3427_v57 }
 0x13d   : > { %1167 = vrot.lane.b32.xlu1 %v1152_v27, %s4838_s16  ;;  %1129 = vrot.lane.b32.xlu0 %v1122_v30, %s4840_s10  ;;  %v1370_v27 = vstv %s3476_s30  ;;  %s3638_s30 = sld [smem:[#allocation10 + $0x99]] }
 0x141   : > { %1193 = vrot.lane.b32.xlu1 %v1178_v31, %s4885_s25  ;;  %1155 = vrot.lane.b32.xlu0 %v1148_v34, %s4838_s16  ;;  %v1371_v31 = vmul.f32 %v1370_v27, %v3438_v63  ;;  %v1256_v34 = vmul.f32 %v1254_v54, %v3352_v22 }
 0x145   : > { %1219 = vrot.lane.b32.xlu1 %v1204_v35, %s4884_s22  ;;  %1181 = vrot.lane.b32.xlu0 %v1174_v38, %s4885_s25  ;;  %v3511_v35 = vld [vmem:[#allocation2 + $0xa] sm:$0xff]  ;;  %v1394_v38 = vmul.f32 %v1393_v33, %v3427_v57 }
 0x149   : > { %963 = vrot.lane.b32.xlu1 %v955_v40, %s4840_s10  ;;  %1207 = vrot.lane.b32.xlu0 %v1200_v41, %s4884_s22  ;;  %v1291_v40 = vmul.f32 %v1289_v58, %v3511_v35  ;;  %v3524_v41 = vld [vmem:[#allocation2 + $0x22] sm:$0xff] }
 0x14a   : > { %v1294_v46 = vmul.f32 %v1292_v0, %v3524_v41  ;;  %v1320_v58 = vmul.f32 %v1318_v11, %v3524_v41  ;;  %v3572_v0 = vld [vmem:[#allocation2 + $0x1b] sm:$0xff]  ;;  %v1483_v11 = vstv %s3563_s17  ;;  %s3755_s17 = sld [smem:[#allocation10 + $0xa4]] }
 0x14d   : > { %989 = vrot.lane.b32.xlu1 %v981_v44, %s4838_s16  ;;  %1233 = vrot.lane.b32.xlu0 %v1226_v45, %s4886_s9  ;;  %v1397_v44 = vmul.f32 %v1396_v39, %v3438_v63 }
 0x151   : > { %1015 = vrot.lane.b32.xlu1 %v1007_v48, %s4885_s25  ;;  %1243 = vrot.lane.b32.xlu0 %v1229_v49, %s4886_s9 }
 0x155   : > { %1041 = vrot.lane.b32.xlu1 %v1033_v52, %s4884_s22  ;;  %1259 = vrot.lane.b32.xlu0 %v1252_v53, %s4887_s14  ;;  %v1317_v52 = vmul.f32 %v1315_v8, %v3511_v35 }
 0x159   : > { %1067 = vrot.lane.b32.xlu1 %v1059_v55, %s4886_s9  ;;  %1269 = vrot.lane.b32.xlu0 %v1255_v56, %s4887_s14  ;;  %v3557_v55 = vld [vmem:[#allocation2 + $0x3] sm:$0xff]  ;;  %v1457_v56 = vstv %s3535_s2  ;;  %s3723_s2 = sld [smem:[#allocation10 + $0x9d]] }
 0x15d   : > { %1093 = vrot.lane.b32.xlu1 %v1085_v59, %s4887_s14  ;;  %1297 = vrot.lane.b32.xlu0 %v1290_v62, %s4840_s10  ;;  %v1458_v62 = vmul.f32 %v1457_v56, %v3557_v55 }
 0x161   : > { %1131 = vrot.lane.b32.xlu1 %v1123_v1, %s4840_s10  ;;  %1307 = vrot.lane.b32.xlu0 %v1293_v2, %s4840_s10  ;;  %s3522_s10 = sld [smem:[#allocation10 + $0x94]]  ;;  %v1460_v1 = vstv %s3548_s5  ;;  %v1343_v2 = vmul.f32 %v1341_v14, %v3511_v35  ;;  %v1484_v14 = vmul.f32 %v1483_v11, %v3557_v55 }
 0x162   : > { %s3738_s5 = sld [smem:[#allocation10 + $0x24]] }
 0x165   : > { %1157 = vrot.lane.b32.xlu1 %v1149_v9, %s4838_s16  ;;  %1323 = vrot.lane.b32.xlu0 %v1316_v10, %s4838_s16  ;;  %v1461_v9 = vmul.f32 %v1460_v1, %v3572_v0 }
 0x167   : > { %v1422_v50 = vstv %s3522_s10  ;;  %s3706_s10 = sld [smem:[#allocation10 + $0x1d]] }
 0x168   : > { %v1423_v54 = vmul.f32 %v1422_v50, %v3438_v63 }
 0x169   : > { %1183 = vrot.lane.b32.xlu1 %v1175_v12, %s4885_s25  ;;  %1333 = vrot.lane.b32.xlu0 %v1319_v13, %s4838_s16  ;;  %s3509_s16 = sld [smem:[#allocation10 + $0x14]]  ;;  %v1346_v12 = vmul.f32 %v1344_v17, %v3524_v41  ;;  %v1486_v17 = vstv %s3578_s19  ;;  %s3768_s19 = sld [smem:[#allocation10 + $0x1e]] }
 0x16d   : > { %1209 = vrot.lane.b32.xlu1 %v1201_v15, %s4884_s22  ;;  %1349 = vrot.lane.b32.xlu0 %v1342_v16, %s4885_s25  ;;  %v1369_v15 = vmul.f32 %v1367_v23, %v3511_v35  ;;  %v1372_v23 = vmul.f32 %v1370_v27, %v3524_v41  ;;  %v1512_v27 = vstv %s3608_s24  ;;  %s3837_s24 = sld [smem:[#allocation10 + $0x2b]] }
 0x16f   : > { %v3480_v19 = vpop.permute.xlu0 %971  ;;  %v1419_v45 = vstv %s3509_s16  ;;  %s3689_s16 = sld [smem:[#allocation10 + $0x1b]] }
 0x170   : > { %v1420_v49 = vmul.f32 %v1419_v45, %v3427_v57 }
 0x171   : > { %1235 = vrot.lane.b32.xlu1 %v1227_v18, %s4886_s9  ;;  %1359 = vrot.lane.b32.xlu0 %v1345_v20, %s4885_s25  ;;  %v1487_v20 = vmul.f32 %v1486_v17, %v3572_v0 }
 0x173   : > { %v3491_v25 = vpop.permute.xlu0 %997 }
 0x175   : > { %1245 = vrot.lane.b32.xlu1 %v1230_v24, %s4886_s9  ;;  %1375 = vrot.lane.b32.xlu0 %v1368_v26, %s4884_s22  ;;  %v1509_v26 = vstv %s3593_s21  ;;  %s3789_s21 = sld [smem:[#allocation10 + $0x9e]] }
 0x177   : > { %v3502_v30 = vpop.permute.xlu0 %1023 }
 0x179   : > { %1261 = vrot.lane.b32.xlu1 %v1253_v29, %s4887_s14  ;;  %1385 = vrot.lane.b32.xlu0 %v1371_v31, %s4884_s22  ;;  %v1510_v31 = vmul.f32 %v1509_v26, %v3557_v55 }
 0x17b   : > { %v3515_v36 = vpop.permute.xlu0 %1049 }
 0x17d   : > { %1271 = vrot.lane.b32.xlu1 %v1256_v34, %s4887_s14  ;;  %1401 = vrot.lane.b32.xlu0 %v1394_v38, %s4886_s9  ;;  %v1395_v38 = vmul.f32 %v1393_v33, %v3511_v35 }
 0x17f   : > { %v3528_v43 = vpop.permute.xlu0 %1075 }
 0x181   : > { %1299 = vrot.lane.b32.xlu1 %v1291_v40, %s4888_s0  ;;  %1411 = vrot.lane.b32.xlu0 %v1397_v44, %s4886_s9  ;;  %v950_v40 = vstv %s3610_s28  ;;  %v945_v44 = vstv %s3613_s8  ;;  %s3809_s28 = sld [smem:[#allocation10 + $0x25]] }
 0x182   : > { %v946_v33 = vmul.f32 %v945_v44, %v3310_v7  ;;  %s3824_s8 = sld [smem:[#allocation10 + $0xa5]] }
 0x183   : > { %v3539_v48 = vpop.permute.xlu0 %1101 }
 0x185   : > { %1309 = vrot.lane.b32.xlu1 %v1294_v46, %s4888_s0  ;;  %1427 = vrot.lane.b32.xlu0 %v1420_v49, %s4887_s14  ;;  %v1513_v49 = vmul.f32 %v1512_v27, %v3572_v0 }
 0x187   : > { %v3552_v53 = vpop.permute.xlu0 %1139 }
 0x189   : > { %1325 = vrot.lane.b32.xlu1 %v1317_v52, %s4889_s11  ;;  %1437 = vrot.lane.b32.xlu0 %v1423_v54, %s4887_s14  ;;  %v951_v52 = vmul.f32 %v950_v40, %v3213_v21 }
 0x18b   : > { %v3567_v59 = vpop.permute.xlu0 %1165 }
 0x18d   : > { %1335 = vrot.lane.b32.xlu1 %v1320_v58, %s4889_s11  ;;  %1465 = vrot.lane.b32.xlu0 %v1458_v62, %s4888_s0  ;;  %v1535_v58 = vstv %s3625_s20  ;;  %v1398_v62 = vmul.f32 %v1396_v39, %v3524_v41  ;;  %s3856_s20 = sld [smem:[#allocation10 + $0xab]] }
 0x18e   : > { %v1536_v7 = vmul.f32 %v1535_v58, %v3557_v55 }
 0x18f   : > { %v3582_v8 = vpop.permute.xlu0 %1191 }
 0x191   : > { %1351 = vrot.lane.b32.xlu1 %v1343_v2, %s4885_s25  ;;  %1475 = vrot.lane.b32.xlu0 %v1461_v9, %s4888_s0  ;;  %v977_v2 = vadd.f32 %v3480_v19, %v951_v52 }
 0x193   : > { %v3587_v10 = vpop.permute.xlu1 %973  ;;  %v3597_v13 = vpop.permute.xlu0 %1217 }
 0x195   : > { %1361 = vrot.lane.b32.xlu1 %v1346_v12, %s4885_s25  ;;  %1491 = vrot.lane.b32.xlu0 %v1484_v14, %s4889_s11  ;;  %v1003_v12 = vadd.f32 %v3491_v25, %v977_v2 }
 0x197   : > { %v3605_v16 = vpop.permute.xlu1 %999  ;;  %v962_v18 = vpop.permute.xlu0 %961  ;;  %v1029_v19 = vadd.f32 %v3502_v30, %v1003_v12  ;;  %v3692_v30 = vld [vmem:[#allocation2 + $0xb] sm:$0xff] }
 0x198   : > { %v967_v9 = vadd.f32 %v962_v18, %v946_v33 }
 0x199   : > { %1377 = vrot.lane.b32.xlu1 %v1369_v15, %s4884_s22  ;;  %1501 = vrot.lane.b32.xlu0 %v1487_v20, %s4889_s11  ;;  %v1538_v15 = vstv %s3638_s30  ;;  %v1421_v20 = vmul.f32 %v1419_v45, %v3511_v35  ;;  %s3871_s30 = sld [smem:[#allocation10 + $0x1f]] }
 0x19a   : > { %v1539_v25 = vmul.f32 %v1538_v15, %v3572_v0 }
 0x19b   : > { %v3622_v24 = vpop.permute.xlu1 %1025  ;;  %v988_v29 = vpop.permute.xlu0 %987 }
 0x19c   : > { %v993_v14 = vadd.f32 %v988_v29, %v967_v9  ;;  %v1055_v29 = vadd.f32 %v3515_v36, %v1029_v19  ;;  %v4855_v9 = vstv %s3674_s18 }
 0x19d   : > { %1387 = vrot.lane.b32.xlu1 %v1372_v23, %s4884_s22  ;;  %1517 = vrot.lane.b32.xlu0 %v1510_v31, %s4885_s25  ;;  %v1565_v12 = vmul.f32 %v4855_v9, %v3572_v0 }
 0x19f   : > { %v3632_v34 = vpop.permute.xlu1 %1051  ;;  %v1014_v46 = vpop.permute.xlu0 %1013 }
 0x1a0   : > { %v1019_v18 = vadd.f32 %v1014_v46, %v993_v14  ;;  %v1081_v46 = vadd.f32 %v3528_v43, %v1055_v29  ;;  %v1459_v43 = vmul.f32 %v1457_v56, %v3692_v30  ;;  %v4850_v29 = vstv %s3706_s10 }
 0x1a1   : > { %1403 = vrot.lane.b32.xlu1 %v1395_v38, %s4886_s9  ;;  %1527 = vrot.lane.b32.xlu0 %v1513_v49, %s4885_s25  ;;  %v1561_v38 = vstv %s3659_s23  ;;  %v1424_v49 = vmul.f32 %v1422_v50, %v3524_v41  ;;  %s3888_s23 = sld [smem:[#allocation10 + $0x9f]] }
 0x1a2   : > { %v1562_v33 = vmul.f32 %v1561_v38, %v3557_v55  ;;  %v1107_v50 = vadd.f32 %v3539_v48, %v1081_v46 }
 0x1a3   : > { %v3653_v54 = vpop.permute.xlu1 %1077  ;;  %v1040_v21 = vpop.permute.xlu0 %1039 }
 0x1a4   : > { %v1045_v31 = vadd.f32 %v1040_v21, %v1019_v18  ;;  %v3709_v21 = vld [vmem:[#allocation2 + $0x23] sm:$0xff] }
 0x1a5   : > { %1413 = vrot.lane.b32.xlu1 %v1398_v62, %s4886_s9  ;;  %1543 = vrot.lane.b32.xlu0 %v1536_v7, %s4884_s22  ;;  %v1462_v56 = vmul.f32 %v1460_v1, %v3709_v21  ;;  %v1485_v1 = vmul.f32 %v1483_v11, %v3692_v30  ;;  %v1488_v46 = vmul.f32 %v1486_v17, %v3709_v21 }
 0x1a6   : > { %v1511_v17 = vmul.f32 %v1509_v26, %v3692_v30 }
 0x1a7   : > { %v3668_v39 = vpop.permute.xlu1 %1103  ;;  %v1066_v23 = vpop.permute.xlu0 %1065 }
 0x1a8   : > { %v1071_v52 = vadd.f32 %v1066_v23, %v1045_v31 }
 0x1a9   : > { %1429 = vrot.lane.b32.xlu1 %v1421_v20, %s4887_s14  ;;  %1553 = vrot.lane.b32.xlu0 %v1539_v25, %s4884_s22  ;;  %v4854_v20 = vstv %s3689_s16  ;;  %v3732_v25 = vld [vmem:[#allocation2 + $0x4] sm:$0xff] }
 0x1aa   : > { %v1588_v18 = vmul.f32 %v4854_v20, %v3557_v55 }
 0x1ab   : > { %v3683_v45 = vpop.permute.xlu1 %1141  ;;  %v1092_v36 = vpop.permute.xlu0 %1091 }
 0x1ac   : > { %v1097_v62 = vadd.f32 %v1092_v36, %v1071_v52  ;;  %v3752_v52 = vld [vmem:[#allocation2 + $0x1c] sm:$0xff]  ;;  %v4849_v36 = vstv %s3723_s2 }
 0x1ad   : > { %1439 = vrot.lane.b32.xlu1 %v1424_v49, %s4887_s14  ;;  %1569 = vrot.lane.b32.xlu0 %v1562_v33, %s4886_s9  ;;  %v1626_v49 = vmul.f32 %v4850_v29, %v3732_v25  ;;  %v3786_v29 = vld [vmem:[#allocation2 + $0x1d] sm:$0xff] }
 0x1ae   : > { %v3711_v7 = vadd.f32 %v1107_v50, %v1097_v62  ;;  %v1629_v50 = vmul.f32 %v4849_v36, %v3752_v52  ;;  %v1514_v36 = vmul.f32 %v1512_v27, %v3709_v21 }
 0x1af   : > { %v3700_v2 = vpop.permute.xlu1 %1167  ;;  %v1130_v48 = vpop.permute.xlu0 %1129 }
 0x1b1   : > { %1467 = vrot.lane.b32.xlu1 %v1459_v43, %s4888_s0  ;;  %1579 = vrot.lane.b32.xlu0 %v1565_v12, %s4886_s9  ;;  %v3765_v43 = vld [vmem:[#allocation2 + $0x5] sm:$0xff]  ;;  %v4853_v12 = vstv %s3738_s5 }
 0x1b3   : > { %v3717_v14 = vpop.permute.xlu1 %1193  ;;  %v1156_v19 = vpop.permute.xlu0 %1155 }
 0x1b5   : > { %1477 = vrot.lane.b32.xlu1 %v1462_v56, %s4888_s0  ;;  %1595 = vrot.lane.b32.xlu0 %v1588_v18, %s4887_s14  ;;  %v4852_v56 = vstv %s3740_s13  ;;  %v4851_v18 = vstv %s3742_s26 }
 0x1b6   : > { %v1119_v26 = vmul.f32 %v4852_v56, %v3268_v47  ;;  %v947_v47 = vmul.f32 %v945_v44, %v3388_v37  ;;  %v1537_v37 = vmul.f32 %v1535_v58, %v3692_v30 }
 0x1b7   : > { %v3730_v23 = vpop.permute.xlu1 %1219  ;;  %v1182_v31 = vpop.permute.xlu0 %1181 }
 0x1b9   : > { %1493 = vrot.lane.b32.xlu1 %v1485_v1, %s4889_s11  ;;  %1633 = vrot.lane.b32.xlu0 %v1626_v49, %s4888_s0  ;;  %v1794_v49 = vmul.f32 %v4853_v12, %v3765_v43 }
 0x1bb   : > { %v964_v11 = vpop.permute.xlu1 %963  ;;  %v1208_v33 = vpop.permute.xlu0 %1207 }
 0x1bc   : > { %v968_v56 = vadd.f32 %v964_v11, %v947_v47 }
 0x1bd   : > { %1503 = vrot.lane.b32.xlu1 %v1488_v46, %s4889_s11  ;;  %1643 = vrot.lane.b32.xlu0 %v1629_v50, %s4888_s0  ;;  %v1114_v46 = vmul.f32 %v4851_v18, %v3368_v28  ;;  %v1796_v50 = vstv %s3755_s17  ;;  %v1145_v28 = vadd.f32 %v3552_v53, %v1119_v26  ;;  %v1651_v53 = vstv %s3768_s19  ;;  %s3990_s17 = sld [smem:[#allocation10 + $0xa0]]  ;;  %s4010_s19 = sld [smem:[#allocation10 + $0x27]] }
 0x1be   : > { %v1797_v20 = vmul.f32 %v1796_v50, %v3786_v29  ;;  %v1652_v58 = vmul.f32 %v1651_v53, %v3732_v25 }
 0x1bf   : > { %v990_v62 = vpop.permute.xlu1 %989  ;;  %v1234_v1 = vpop.permute.xlu0 %1233  ;;  %v1135_v18 = vadd.f32 %v1130_v48, %v1114_v46 }
 0x1c0   : > { %v994_v44 = vadd.f32 %v990_v62, %v968_v56 }
 0x1c1   : > { %1519 = vrot.lane.b32.xlu1 %v1511_v17, %s4885_s25  ;;  %v952_v17 = vmul.f32 %v950_v40, %v3294_v61  ;;  %1801 = vrot.lane.b32.xlu0 %v1794_v49, %s4888_s0  ;;  %v1171_v61 = vadd.f32 %v3567_v59, %v1145_v28  ;;  %v1161_v40 = vadd.f32 %v1156_v19, %v1135_v18 }
 0x1c3   : > { %v1016_v32 = vpop.permute.xlu1 %1015  ;;  %v978_v27 = vadd.f32 %v3587_v10, %v952_v17  ;;  %v1244_v12 = vpop.permute.xlu0 %1243  ;;  %v1197_v48 = vadd.f32 %v3582_v8, %v1171_v61  ;;  %v1187_v11 = vadd.f32 %v1182_v31, %v1161_v40  ;;  %v1654_v8 = vstv %s3789_s21  ;;  %s4027_s21 = sld [smem:[#allocation10 + $0xa7]] }
 0x1c4   : > { %v1020_v19 = vadd.f32 %v1016_v32, %v994_v44  ;;  %v4890_v61 = vstv %s3674_s18  ;;  %s3903_s18 = sld [smem:[#allocation10 + $0x26]] }
 0x1c5   : > { %1529 = vrot.lane.b32.xlu1 %v1514_v36, %s4885_s25  ;;  %v1004_v10 = vadd.f32 %v3605_v16, %v978_v27  ;;  %1811 = vrot.lane.b32.xlu0 %v1797_v20, %s4888_s0  ;;  %v1223_v18 = vadd.f32 %v3597_v13, %v1197_v48  ;;  %v1213_v49 = vadd.f32 %v1208_v33, %v1187_v11  ;;  %v4891_v48 = vstv %s3689_s16  ;;  %s3918_s16 = sld [smem:[#allocation10 + $0xa6]] }
 0x1c6   : > { %v1540_v20 = vmul.f32 %v1538_v15, %v3709_v21  ;;  %v1655_v15 = vmul.f32 %v1654_v8, %v3752_v52  ;;  %v1566_v40 = vmul.f32 %v4890_v61, %v3709_v21  ;;  %v1589_v11 = vmul.f32 %v4891_v48, %v3692_v30 }
 0x1c7   : > { %v1042_v9 = vpop.permute.xlu1 %1041  ;;  %v1030_v59 = vadd.f32 %v3622_v24, %v1004_v10  ;;  %v1260_v36 = vpop.permute.xlu0 %1259  ;;  %v1239_v31 = vadd.f32 %v1234_v1, %v1213_v49  ;;  %v1249_v62 = vadd.f32 %v1244_v12, %v1223_v18  ;;  %v1819_v1 = vstv %s3809_s28  ;;  %s4040_s28 = sld [smem:[#allocation10 + $0x2d]] }
 0x1c8   : > { %v1046_v32 = vadd.f32 %v1042_v9, %v1020_v19  ;;  %v1563_v9 = vmul.f32 %v1561_v38, %v3692_v30  ;;  %v1820_v38 = vmul.f32 %v1819_v1, %v3765_v43  ;;  %v1961_v19 = vstv %s3837_s24  ;;  %s4079_s24 = sld [smem:[#allocation10 + $0xa1]] }
 0x1c9   : > { %1545 = vrot.lane.b32.xlu1 %v1537_v37, %s4884_s22  ;;  %v1056_v24 = vadd.f32 %v3632_v34, %v1030_v59  ;;  %1659 = vrot.lane.b32.xlu0 %v1652_v58, %s4889_s11  ;;  %v1265_v26 = vadd.f32 %v1260_v36, %v1239_v31  ;;  %v1822_v37 = vstv %s3824_s8  ;;  %v3868_v59 = vld [vmem:[#allocation2 + $0x6] sm:$0xff]  ;;  %v4895_v61 = vstv %s3740_s13  ;;  %s3943_s13 = sld [smem:[#allocation10 + $0xe]]  ;;  %s4055_s8 = sld [smem:[#allocation10 + $0xad]] }
 0x1ca   : > { %v3874_v36 = vld [vmem:[#allocation2 + $0xc] sm:$0xff]  ;;  %v1962_v18 = vmul.f32 %v1961_v19, %v3868_v59  ;;  %v3891_v31 = vld [vmem:[#allocation2 + $0x24] sm:$0xff] }
 0x1cb   : > { %v1068_v16 = vpop.permute.xlu1 %1067  ;;  %v1082_v13 = vadd.f32 %v3653_v54, %v1056_v24  ;;  %v1270_v56 = vpop.permute.xlu0 %1269  ;;  %v3885_v24 = vld [vmem:[#allocation2 + $0x1e] sm:$0xff] }
 0x1cc   : > { %v1072_v33 = vadd.f32 %v1068_v16, %v1046_v32  ;;  %v1275_v46 = vadd.f32 %v1270_v56, %v1249_v62  ;;  %v4892_v16 = vstv %s3706_s10  ;;  %v1964_v32 = vstv %s3856_s20  ;;  %s3945_s10 = sld [smem:[#allocation10 + $0x8e]]  ;;  %s4083_s20 = sld [smem:[#allocation10 + $0x15]] }
 0x1cd   : > { %1555 = vrot.lane.b32.xlu1 %v1540_v20, %s4884_s22  ;;  %v1108_v12 = vadd.f32 %v3668_v39, %v1082_v13  ;;  %1669 = vrot.lane.b32.xlu0 %v1655_v15, %s4889_s11  ;;  %v1627_v20 = vmul.f32 %v4892_v16, %v3874_v36  ;;  %v1965_v13 = vmul.f32 %v1964_v32, %v3885_v24  ;;  %v4893_v56 = vstv %s3723_s2  ;;  %s3957_s2 = sld [smem:[#allocation10 + $0xac]] }
 0x1ce   : > { %v1277_v17 = vadd.f32 %v1275_v46, %v1265_v26  ;;  %v1630_v15 = vmul.f32 %v4893_v56, %v3891_v31  ;;  %v1677_v26 = vstv %s3871_s30  ;;  %v3906_v46 = vld [vmem:[#allocation2 + $0xd] sm:$0xff]  ;;  %v1845_v56 = vstv %s3903_s18  ;;  %s4092_s30 = sld [smem:[#allocation10 + $0x28]] }
 0x1cf   : > { %v1094_v34 = vpop.permute.xlu1 %1093  ;;  %v3844_v28 = vpop.permute.xlu0 %1297  ;;  %s4105_s18 = sld [smem:[#allocation10 + $0xa8]] }
 0x1d0   : > { %v1098_v54 = vadd.f32 %v1094_v34, %v1072_v33  ;;  %v3850_v27 = vadd.f32 %v1277_v17, %v3711_v7  ;;  %v1823_v7 = vmul.f32 %v1822_v37, %v3786_v29 }
 0x1d1   : > { %1571 = vrot.lane.b32.xlu1 %v1563_v9, %s4886_s9  ;;  %1827 = vrot.lane.b32.xlu0 %v1820_v38, %s4889_s11  ;;  %v1678_v9 = vmul.f32 %v1677_v26, %v3732_v25  ;;  %v1680_v38 = vstv %s3888_s23  ;;  %s4096_s23 = sld [smem:[#allocation10 + $0x95]] }
 0x1d2   : > { %v3842_v47 = vadd.f32 %v1108_v12, %v1098_v54  ;;  %v4894_v54 = vstv %s3738_s5  ;;  %s3969_s5 = sld [smem:[#allocation10 + $0x20]] }
 0x1d3   : > { %v1132_v39 = vpop.permute.xlu1 %1131  ;;  %v3860_v10 = vpop.permute.xlu0 %1307  ;;  %v1795_v17 = vmul.f32 %v4894_v54, %v3906_v46  ;;  %v1846_v54 = vmul.f32 %v1845_v56, %v3765_v43 }
 0x1d5   : > { %1581 = vrot.lane.b32.xlu1 %v1566_v40, %s4886_s9  ;;  %1837 = vrot.lane.b32.xlu0 %v1823_v7, %s4889_s11  ;;  %v1120_v40 = vmul.f32 %v4895_v61, %v3352_v22  ;;  %v4896_v7 = vstv %s3742_s26  ;;  %s3940_s26 = sld [smem:[#allocation10 + $0x2c]] }
 0x1d6   : > { %v1115_v48 = vmul.f32 %v4896_v7, %v3434_v60 }
 0x1d7   : > { %v1158_v44 = vpop.permute.xlu1 %1157  ;;  %v3877_v58 = vpop.permute.xlu0 %1323 }
 0x1d8   : > { %v1136_v16 = vadd.f32 %v1132_v39, %v1115_v48 }
 0x1d9   : > { %1597 = vrot.lane.b32.xlu1 %v1589_v11, %s4887_s14  ;;  %1969 = vrot.lane.b32.xlu0 %v1962_v18, %s4888_s0  ;;  %v3927_v11 = vld [vmem:[#allocation2 + $0x25] sm:$0xff]  ;;  %v1146_v18 = vadd.f32 %v3683_v45, %v1120_v40 }
 0x1da   : > { %v1798_v60 = vmul.f32 %v1796_v50, %v3927_v11  ;;  %v1162_v45 = vadd.f32 %v1158_v44, %v1136_v16  ;;  %v1848_v44 = vstv %s3918_s16  ;;  %v1286_v16 = vstv %s3945_s10  ;;  %s4125_s16 = sld [smem:[#allocation10 + $0x2e]]  ;;  %s4174_s10 = sld [smem:[#allocation10 + $0x22]] }
 0x1db   : > { %v1184_v49 = vpop.permute.xlu1 %1183  ;;  %v3894_v62 = vpop.permute.xlu0 %1333 }
 0x1dd   : > { %1635 = vrot.lane.b32.xlu1 %v1627_v20, %s4888_s0  ;;  %1979 = vrot.lane.b32.xlu0 %v1965_v13, %s4888_s0  ;;  %v1681_v13 = vmul.f32 %v1680_v38, %v3752_v52 }
 0x1df   : > { %v1210_v33 = vpop.permute.xlu1 %1209  ;;  %v3909_v34 = vpop.permute.xlu0 %1349 }
 0x1e1   : > { %1645 = vrot.lane.b32.xlu1 %v1630_v15, %s4888_s0  ;;  %1685 = vrot.lane.b32.xlu0 %v1678_v9, %s4885_s25  ;;  %v1172_v15 = vadd.f32 %v3700_v2, %v1146_v18  ;;  %v1188_v9 = vadd.f32 %v1184_v49, %v1162_v45  ;;  %v1656_v18 = vmul.f32 %v1654_v8, %v3891_v31 }
 0x1e2   : > { %v1287_v45 = vmul.f32 %v1286_v16, %v3438_v63 }
 0x1e3   : > { %v1236_v12 = vpop.permute.xlu1 %1235  ;;  %v3931_v20 = vpop.permute.xlu0 %1359  ;;  %v1198_v39 = vadd.f32 %v3717_v14, %v1172_v15  ;;  %v1214_v40 = vadd.f32 %v1210_v33, %v1188_v9  ;;  %v1281_v33 = vstv %s3943_s13  ;;  %v1821_v9 = vmul.f32 %v1819_v1, %v3906_v46  ;;  %s4166_s13 = sld [smem:[#allocation10 + $0x1c]] }
 0x1e4   : > { %v1282_v8 = vmul.f32 %v1281_v33, %v3427_v57 }
 0x1e5   : > { %1803 = vrot.lane.b32.xlu1 %v1795_v17, %s4888_s0  ;;  %1695 = vrot.lane.b32.xlu0 %v1681_v13, %s4885_s25  ;;  %v1653_v17 = vmul.f32 %v1651_v53, %v3874_v36  ;;  %v1224_v61 = vadd.f32 %v3730_v23, %v1198_v39  ;;  %v1240_v14 = vadd.f32 %v1236_v12, %v1214_v40  ;;  %v1987_v23 = vstv %s3940_s26  ;;  %s4142_s26 = sld [smem:[#allocation10 + $0xae]] }
 0x1e6   : > { %v1849_v53 = vmul.f32 %v1848_v44, %v3786_v29  ;;  %v1988_v15 = vmul.f32 %v1987_v23, %v3868_v59  ;;  %v1303_v57 = vadd.f32 %v3844_v28, %v1282_v8  ;;  %v1824_v28 = vmul.f32 %v1822_v37, %v3927_v11 }
 0x1e7   : > { %v1246_v22 = vpop.permute.xlu1 %1245  ;;  %v1376_v50 = vpop.permute.xlu0 %1375 }
 0x1e8   : > { %v1250_v49 = vadd.f32 %v1246_v22, %v1224_v61  ;;  %v1329_v1 = vadd.f32 %v3877_v58, %v1303_v57 }
 0x1e9   : > { %1813 = vrot.lane.b32.xlu1 %v1798_v60, %s4888_s0  ;;  %1853 = vrot.lane.b32.xlu0 %v1846_v54, %s4885_s25  ;;  %v1990_v54 = vstv %s3957_s2  ;;  %s4181_s2 = sld [smem:[#allocation10 + $0x9c]] }
 0x1ea   : > { %v1991_v61 = vmul.f32 %v1990_v54, %v3885_v24 }
 0x1eb   : > { %v1262_v2 = vpop.permute.xlu1 %1261  ;;  %v1386_v7 = vpop.permute.xlu0 %1385 }
 0x1ec   : > { %v1266_v12 = vadd.f32 %v1262_v2, %v1240_v14  ;;  %v1703_v14 = vstv %s3969_s5  ;;  %s4191_s5 = sld [smem:[#allocation10 + $0xa2]] }
 0x1ed   : > { %1661 = vrot.lane.b32.xlu1 %v1653_v17, %s4889_s11  ;;  %1863 = vrot.lane.b32.xlu0 %v1849_v53, %s4885_s25  ;;  %v1313_v17 = vadd.f32 %v3860_v10, %v1287_v45  ;;  %v4013_v10 = vld [vmem:[#allocation2 + $0xe] sm:$0xff]  ;;  %v1704_v53 = vmul.f32 %v1703_v14, %v3732_v25 }
 0x1ef   : > { %v1272_v48 = vpop.permute.xlu1 %1271  ;;  %v1402_v60 = vpop.permute.xlu0 %1401  ;;  %v1339_v40 = vadd.f32 %v3894_v62, %v1313_v17 }
 0x1f0   : > { %v1276_v13 = vadd.f32 %v1272_v48, %v1250_v49  ;;  %v1355_v49 = vadd.f32 %v3909_v34, %v1329_v1  ;;  %v4030_v34 = vld [vmem:[#allocation2 + $0x26] sm:$0xff] }
 0x1f1   : > { %1671 = vrot.lane.b32.xlu1 %v1656_v18, %s4889_s11  ;;  %1995 = vrot.lane.b32.xlu0 %v1988_v15, %s4889_s11  ;;  %v1365_v58 = vadd.f32 %v3931_v20, %v1339_v40  ;;  %v1966_v45 = vmul.f32 %v1964_v32, %v4030_v34  ;;  %v1679_v32 = vmul.f32 %v1677_v26, %v3874_v36  ;;  %v2013_v26 = vstv %s4040_s28  ;;  %s4224_s28 = sld [smem:[#allocation10 + $0xa9]] }
 0x1f2   : > { %v1278_v22 = vadd.f32 %v1276_v13, %v1266_v12  ;;  %v1381_v48 = vadd.f32 %v1376_v50, %v1355_v49  ;;  %v1963_v12 = vmul.f32 %v1961_v19, %v4013_v10  ;;  %v1706_v13 = vstv %s3990_s17  ;;  %s4199_s17 = sld [smem:[#allocation10 + $0x23]] }
 0x1f3   : > { %v3984_v39 = vpop.permute.xlu1 %1299  ;;  %v1412_v63 = vpop.permute.xlu0 %1411  ;;  %v1391_v37 = vadd.f32 %v1386_v7, %v1365_v58  ;;  %v1707_v7 = vmul.f32 %v1706_v13, %v3752_v52  ;;  %v1682_v49 = vmul.f32 %v1680_v38, %v3891_v31 }
 0x1f4   : > { %v3993_v2 = vadd.f32 %v1278_v22, %v3842_v47  ;;  %v1407_v20 = vadd.f32 %v1402_v60, %v1381_v48  ;;  %v1847_v48 = vmul.f32 %v1845_v56, %v3906_v46  ;;  %v1850_v56 = vmul.f32 %v1848_v44, %v3927_v11 }
 0x1f5   : > { %1829 = vrot.lane.b32.xlu1 %v1821_v9, %s4889_s11  ;;  %2005 = vrot.lane.b32.xlu0 %v1991_v61, %s4889_s11  ;;  %v1417_v22 = vadd.f32 %v1412_v63, %v1391_v37  ;;  %v1871_v9 = vstv %s4010_s19  ;;  %v1874_v61 = vstv %s4027_s21  ;;  %v1989_v44 = vmul.f32 %v1987_v23, %v4013_v10  ;;  %s4207_s19 = sld [smem:[#allocation10 + $0x29]]  ;;  %s4218_s21 = sld [smem:[#allocation10 + $0xa3]] }
 0x1f6   : > { %v1872_v17 = vmul.f32 %v1871_v9, %v3765_v43  ;;  %v1875_v40 = vmul.f32 %v1874_v61, %v3786_v29  ;;  %v2016_v37 = vstv %s4055_s8  ;;  %v1449_v23 = vstv %s4083_s20  ;;  %s4239_s8 = sld [smem:[#allocation10 + $0x2f]]  ;;  %s4294_s20 = sld [smem:[#allocation10 + $0x2a]] }
 0x1f7   : > { %v4004_v47 = vpop.permute.xlu1 %1309  ;;  %v1428_v62 = vpop.permute.xlu0 %1427 }
 0x1f8   : > { %v1433_v15 = vadd.f32 %v1428_v62, %v1407_v20  ;;  %v2014_v62 = vmul.f32 %v2013_v26, %v3868_v59 }
 0x1f9   : > { %1839 = vrot.lane.b32.xlu1 %v1824_v28, %s4889_s11  ;;  %1711 = vrot.lane.b32.xlu0 %v1704_v53, %s4884_s22 }
 0x1fb   : > { %v4021_v18 = vpop.permute.xlu1 %1325  ;;  %v1438_v50 = vpop.permute.xlu0 %1437 }
 0x1fc   : > { %v1443_v19 = vadd.f32 %v1438_v50, %v1417_v22 }
 0x1fd   : > { %1971 = vrot.lane.b32.xlu1 %v1963_v12, %s4888_s0  ;;  %1721 = vrot.lane.b32.xlu0 %v1707_v7, %s4884_s22  ;;  %v2017_v12 = vmul.f32 %v2016_v37, %v3885_v24 }
 0x1fe   : > { %v4043_v60 = vadd.f32 %v1443_v19, %v1433_v15  ;;  %v1732_v19 = vstv %s4079_s24  ;;  %s4286_s24 = sld [smem:[#allocation10 + $0xb0]] }
 0x1ff   : > { %v1336_v8 = vpop.permute.xlu1 %1335  ;;  %v4046_v57 = vpop.permute.xlu0 %1465 }
 0x201   : > { %1981 = vrot.lane.b32.xlu1 %v1966_v45, %s4888_s0  ;;  %1879 = vrot.lane.b32.xlu0 %v1872_v17, %s4884_s22  ;;  %s4068_s0 = sld [smem:[#allocation10 + $0x21]]  ;;  %v1283_v45 = vmul.f32 %v1281_v33, %v3511_v35  ;;  %v1288_v17 = vmul.f32 %v1286_v16, %v3524_v41  ;;  %v1992_v41 = vmul.f32 %v1990_v54, %v4030_v34  ;;  %v1897_v33 = vstv %s4092_s30  ;;  %s4305_s30 = sld [smem:[#allocation10 + $0xaa]] }
 0x202   : > { %v1898_v54 = vmul.f32 %v1897_v33, %v3765_v43 }
 0x203   : > { %v1352_v63 = vpop.permute.xlu1 %1351  ;;  %v4059_v1 = vpop.permute.xlu0 %1475 }
 0x205   : > { %1687 = vrot.lane.b32.xlu1 %v1679_v32, %s4885_s25  ;;  %1889 = vrot.lane.b32.xlu0 %v1875_v40, %s4884_s22  ;;  %v1304_v32 = vadd.f32 %v3984_v39, %v1283_v45  ;;  %v1314_v40 = vadd.f32 %v4004_v47, %v1288_v17  ;;  %v1450_v47 = vmul.f32 %v1449_v23, %v3557_v55  ;;  %v1900_v45 = vstv %s4105_s18 }
 0x207   : > { %v1362_v28 = vpop.permute.xlu1 %1361  ;;  %v1492_v58 = vpop.permute.xlu0 %1491  ;;  %v1729_v22 = vstv %s4068_s0  ;;  %v1330_v16 = vadd.f32 %v4021_v18, %v1304_v32  ;;  %v1340_v39 = vadd.f32 %v1336_v8, %v1314_v40  ;;  %v1705_v8 = vmul.f32 %v1703_v14, %v3874_v36  ;;  %s4271_s0 = sld [smem:[#allocation10 + $0x30]] }
 0x208   : > { %v1730_v7 = vmul.f32 %v1729_v22, %v3732_v25  ;;  %v1901_v14 = vmul.f32 %v1900_v45, %v3786_v29 }
 0x209   : > { %1697 = vrot.lane.b32.xlu1 %v1682_v49, %s4885_s25  ;;  %2021 = vrot.lane.b32.xlu0 %v2014_v62, %s4885_s25  ;;  %v1733_v62 = vmul.f32 %v1732_v19, %v3752_v52 }
 0x20b   : > { %v1378_v53 = vpop.permute.xlu1 %1377  ;;  %v1502_v38 = vpop.permute.xlu0 %1501 }
 0x20d   : > { %1855 = vrot.lane.b32.xlu1 %v1847_v48, %s4885_s25  ;;  %2031 = vrot.lane.b32.xlu0 %v2017_v12, %s4885_s25  ;;  %v1356_v48 = vadd.f32 %v1352_v63, %v1330_v16  ;;  %v1454_v12 = vstv %s4096_s23  ;;  %v2039_v16 = vstv %s4125_s16  ;;  %s3033_s16 = smov 112  }
 0x20f   : > { %v1388_v20 = vpop.permute.xlu1 %1387  ;;  %v1518_v50 = vpop.permute.xlu0 %1517  ;;  %v1382_v55 = vadd.f32 %v1378_v53, %v1356_v48 }
 0x211   : > { %1865 = vrot.lane.b32.xlu1 %v1850_v56, %s4885_s25  ;;  %1737 = vrot.lane.b32.xlu0 %v1730_v7, %s4886_s9  ;;  %v1366_v56 = vadd.f32 %v1362_v28, %v1340_v39  ;;  %v1455_v28 = vmul.f32 %v1454_v12, %v3572_v0 }
 0x213   : > { %v1404_v15 = vpop.permute.xlu1 %1403  ;;  %v1528_v49 = vpop.permute.xlu0 %1527  ;;  %v1392_v63 = vadd.f32 %v1388_v20, %v1366_v56  ;;  %v1708_v20 = vmul.f32 %v1706_v13, %v3891_v31  ;;  %v2040_v13 = vmul.f32 %v2039_v16, %v3868_v59 }
 0x215   : > { %1997 = vrot.lane.b32.xlu1 %v1989_v44, %s4889_s11  ;;  %1747 = vrot.lane.b32.xlu0 %v1733_v62, %s4886_s9  ;;  %v1471_v44 = vadd.f32 %v4046_v57, %v1450_v47  ;;  %v1408_v57 = vadd.f32 %v1404_v15, %v1382_v55  ;;  %v1481_v62 = vadd.f32 %v4059_v1, %v1455_v28 }
 0x217   : > { %v1414_v35 = vpop.permute.xlu1 %1413  ;;  %v1544_v7 = vpop.permute.xlu0 %1543  ;;  %v1497_v17 = vadd.f32 %v1492_v58, %v1471_v44 }
 0x218   : > { %v1418_v32 = vadd.f32 %v1414_v35, %v1392_v63  ;;  %v1507_v35 = vadd.f32 %v1502_v38, %v1481_v62  ;;  %v1873_v38 = vmul.f32 %v1871_v9, %v3906_v46 }
 0x219   : > { %2007 = vrot.lane.b32.xlu1 %v1992_v41, %s4889_s11  ;;  %1905 = vrot.lane.b32.xlu0 %v1898_v54, %s4886_s9  ;;  %v1523_v41 = vadd.f32 %v1518_v50, %v1497_v17  ;;  %s4157_s11 = sld [smem:[#allocation10 + $0x9b]]  ;;  %v1617_v17 = vstv %s4166_s13 }
 0x21a   : > { %v1533_v47 = vadd.f32 %v1528_v49, %v1507_v35 }
 0x21b   : > { %v1430_v18 = vpop.permute.xlu1 %1429  ;;  %v1554_v40 = vpop.permute.xlu0 %1553  ;;  %v1549_v39 = vadd.f32 %v1544_v7, %v1523_v41  ;;  %v2042_v7 = vstv %s4142_s26  ;;  %v1622_v41 = vstv %s4181_s2  ;;  %s3028_s2 = smov 32   ;;  %s297_s26 = sand.u32 1, %s2998_s27  }
 0x21c   : > { %v1434_v58 = vadd.f32 %v1430_v18, %v1408_v57  ;;  %v1559_v54 = vadd.f32 %v1554_v40, %v1533_v47  ;;  %v2043_v49 = vmul.f32 %v2042_v7, %v3885_v24  ;;  %v1755_v40 = vstv %s4174_s10  ;;  %s3027_s10 = smov 16  }
 0x21d   : > { %1713 = vrot.lane.b32.xlu1 %v1705_v8, %s4884_s22  ;;  %1915 = vrot.lane.b32.xlu0 %v1901_v14, %s4886_s9  ;;  %v1876_v8 = vmul.f32 %v1874_v61, %v3927_v11  ;;  %v1756_v62 = vmul.f32 %v1755_v40, %v3732_v25  ;;  %v1923_v47 = vstv %s4207_s19 }
 0x21f   : > { %v1440_v53 = vpop.permute.xlu1 %1439  ;;  %v1570_v50 = vpop.permute.xlu0 %1569  ;;  %v1590_v55 = vstv %s4157_s11  ;;  %s2619_s11 = sshll.u32 %s297_s26, 6 }
 0x220   : > { %v1444_v15 = vadd.f32 %v1440_v53, %v1418_v32  ;;  %v1575_v48 = vadd.f32 %v1570_v50, %v1549_v39  ;;  %v1591_v28 = vmul.f32 %v1590_v55, %v3572_v0  ;;  %v2015_v32 = vmul.f32 %v2013_v26, %v4013_v10  ;;  %s299_s13 = scalar_lea.vmem [#allocation12], %s2619_s11 }
 0x221   : > { %1723 = vrot.lane.b32.xlu1 %v1708_v20, %s4884_s22  ;;  %2047 = vrot.lane.b32.xlu0 %v2040_v13, %s4884_s22  ;;  %v1618_v0 = vmul.f32 %v1617_v17, %v3732_v25  ;;  %v2018_v20 = vmul.f32 %v2016_v37, %v4030_v34  ;;  %v1623_v25 = vmul.f32 %v1622_v41, %v3752_v52  ;;  %v1785_v39 = vstv %s4199_s17  ;;  %s3030_s17 = smov 64  }
 0x222   : > { %v4161_v1 = vadd.f32 %v1444_v15, %v1434_v58  ;;  %v1758_v58 = vstv %s4191_s5  ;;  %v1731_v13 = vmul.f32 %v1729_v22, %v3874_v36  ;;  %s3029_s5 = smov 48  }
 0x223   : > { %v4168_v56 = vpop.permute.xlu1 %1467  ;;  %v1580_v44 = vpop.permute.xlu0 %1579  ;;  %v1759_v35 = vmul.f32 %v1758_v58, %v3752_v52 }
 0x224   : > { %v4183_v18 = vadd.f32 %v1580_v44, %v1559_v54  ;;  %v1790_v54 = vstv %s4218_s21 }
 0x225   : > { %1881 = vrot.lane.b32.xlu1 %v1873_v38, %s4884_s22  ;;  %2057 = vrot.lane.b32.xlu0 %v2043_v49, %s4884_s22  ;;  %v1924_v38 = vmul.f32 %v1923_v47, %v3765_v43  ;;  %v1734_v49 = vmul.f32 %v1732_v19, %v3891_v31 }
 0x227   : > { %v4185_v9 = vpop.permute.xlu1 %1477  ;;  %v1596_v63 = vpop.permute.xlu0 %1595 }
 0x228   : > { %v4201_v57 = vadd.f32 %v1596_v63, %v1575_v48  ;;  %v1786_v48 = vmul.f32 %v1785_v39, %v3765_v43  ;;  %v1791_v63 = vmul.f32 %v1790_v54, %v3786_v29  ;;  %v1451_v43 = vmul.f32 %v1449_v23, %v3692_v30 }
 0x229   : > { %1891 = vrot.lane.b32.xlu1 %v1876_v8, %s4884_s22  ;;  %1605 = vrot.lane.b32.xlu0 %v1591_v28, %s4887_s14  ;;  %v1926_v8 = vstv %s4224_s28  ;;  %v1456_v30 = vmul.f32 %v1454_v12, %v3709_v21  ;;  %s3031_s28 = smov 80  }
 0x22a   : > { %v1927_v19 = vmul.f32 %v1926_v8, %v3786_v29 }
 0x22b   : > { %v1494_v61 = vpop.permute.xlu1 %1493  ;;  %v1634_v14 = vpop.permute.xlu0 %1633 }
 0x22c   : > { %v1639_v26 = vadd.f32 %v1634_v14, %v1618_v0  ;;  %v1899_v14 = vmul.f32 %v1897_v33, %v3906_v46 }
 0x22d   : > { %2023 = vrot.lane.b32.xlu1 %v2015_v32, %s4885_s25  ;;  %1763 = vrot.lane.b32.xlu0 %v1756_v62, %s4887_s14  ;;  %v2065_v62 = vstv %s4239_s8  ;;  %s4469_s8 = sld [smem:[#allocation6]] }
 0x22f   : > { %v1504_v53 = vpop.permute.xlu1 %1503  ;;  %v1644_v15 = vpop.permute.xlu0 %1643 }
 0x230   : > { %v1649_v37 = vadd.f32 %v1644_v15, %v1623_v25  ;;  %v2066_v25 = vmul.f32 %v2065_v62, %v3868_v59 }
 0x231   : > { %2033 = vrot.lane.b32.xlu1 %v2018_v20, %s4885_s25  ;;  %1773 = vrot.lane.b32.xlu0 %v1759_v35, %s4887_s14  ;;  %s4254_s25 = sld [smem:[#allocation10 + $0xaf]]  ;;  %v1472_v20 = vadd.f32 %v4168_v56, %v1451_v43  ;;  %v1902_v56 = vmul.f32 %v1900_v45, %v3927_v11 }
 0x233   : > { %v1520_v50 = vpop.permute.xlu1 %1519  ;;  %v1802_v52 = vpop.permute.xlu0 %1801  ;;  %v1498_v29 = vadd.f32 %v1494_v61, %v1472_v20 }
 0x234   : > { %v1807_v22 = vadd.f32 %v1802_v52, %v1786_v48 }
 0x235   : > { %1739 = vrot.lane.b32.xlu1 %v1731_v13, %s4886_s9  ;;  %1931 = vrot.lane.b32.xlu0 %v1924_v38, %s4887_s14  ;;  %v1482_v13 = vadd.f32 %v4185_v9, %v1456_v30  ;;  %v1524_v48 = vadd.f32 %v1520_v50, %v1498_v29  ;;  %v2041_v9 = vmul.f32 %v2039_v16, %v4013_v10  ;;  %v2091_v50 = vstv %s4271_s0  ;;  %s2626_s0 = sld [smem:[#allocation7 + $0x1]] }
 0x236   : > { %v1953_v30 = vstv %s4294_s20 }
 0x237   : > { %v1530_v44 = vpop.permute.xlu1 %1529  ;;  %v1812_v28 = vpop.permute.xlu0 %1811  ;;  %v2068_v35 = vstv %s4254_s25  ;;  %v1508_v12 = vadd.f32 %v1504_v53, %v1482_v13  ;;  %s355_s25 = sld [smem:[#allocation7]] }
 0x238   : > { %v1817_v32 = vadd.f32 %v1812_v28, %v1791_v63  ;;  %v2069_v52 = vmul.f32 %v2068_v35, %v3885_v24  ;;  %v2092_v28 = vmul.f32 %v2091_v50, %v3868_v59 }
 0x239   : > { %1749 = vrot.lane.b32.xlu1 %v1734_v49, %s4886_s9  ;;  %1941 = vrot.lane.b32.xlu0 %v1927_v19, %s4887_s14  ;;  %v1534_v49 = vadd.f32 %v1530_v44, %v1508_v12  ;;  %v2044_v44 = vmul.f32 %v2042_v7, %v4030_v34  ;;  %v2094_v19 = vstv %s4286_s24  ;;  %v1592_v7 = vmul.f32 %v1590_v55, %v3709_v21 }
 0x23a   : > { %v2095_v20 = vmul.f32 %v2094_v19, %v3885_v24  ;;  %v1757_v21 = vmul.f32 %v1755_v40, %v3874_v36 }
 0x23b   : > { %v1546_v0 = vpop.permute.xlu1 %1545  ;;  %v1660_v23 = vpop.permute.xlu0 %1659 }
 0x23c   : > { %v1665_v15 = vadd.f32 %v1660_v23, %v1639_v26  ;;  %v1550_v61 = vadd.f32 %v1546_v0, %v1524_v48 }
 0x23d   : > { %1907 = vrot.lane.b32.xlu1 %v1899_v14, %s4886_s9  ;;  %2073 = vrot.lane.b32.xlu0 %v2066_v25, %s4886_s9  ;;  %v1954_v25 = vmul.f32 %v1953_v30, %v3868_v59 }
 0x23f   : > { %v1556_v33 = vpop.permute.xlu1 %1555  ;;  %v1670_v26 = vpop.permute.xlu0 %1669 }
 0x240   : > { %v1675_v45 = vadd.f32 %v1670_v26, %v1649_v37  ;;  %v1560_v63 = vadd.f32 %v1556_v33, %v1534_v49  ;;  %v1925_v49 = vmul.f32 %v1923_v47, %v3906_v46  ;;  %v2067_v47 = vmul.f32 %v2065_v62, %v4013_v10 }
 0x241   : > { %1917 = vrot.lane.b32.xlu1 %v1902_v56, %s4886_s9  ;;  %2083 = vrot.lane.b32.xlu0 %v2069_v52, %s4886_s9  ;;  %v1619_v56 = vmul.f32 %v1617_v17, %v3874_v36  ;;  %v1760_v52 = vmul.f32 %v1758_v58, %v3891_v31  ;;  %v2093_v62 = vmul.f32 %v2091_v50, %v4013_v10 }
 0x243   : > { %v1572_v38 = vpop.permute.xlu1 %1571  ;;  %v1828_v43 = vpop.permute.xlu0 %1827 }
 0x244   : > { %v1576_v53 = vadd.f32 %v1572_v38, %v1550_v61  ;;  %v1833_v37 = vadd.f32 %v1828_v43, %v1807_v22  ;;  %v1624_v61 = vmul.f32 %v1622_v41, %v3891_v31  ;;  %v1792_v31 = vmul.f32 %v1790_v54, %v3927_v11 }
 0x245   : > { %2049 = vrot.lane.b32.xlu1 %v2041_v9, %s4884_s22  ;;  %2099 = vrot.lane.b32.xlu0 %v2092_v28, %s4887_s14  ;;  %v1928_v43 = vmul.f32 %v1926_v8, %v3927_v11  ;;  %v2070_v11 = vmul.f32 %v2068_v35, %v4030_v34  ;;  %v2096_v35 = vmul.f32 %v2094_v19, %v4030_v34 }
 0x247   : > { %v1582_v16 = vpop.permute.xlu1 %1581  ;;  %v1838_v14 = vpop.permute.xlu0 %1837 }
 0x248   : > { %v4312_v0 = vadd.f32 %v1582_v16, %v1560_v63  ;;  %v1843_v22 = vadd.f32 %v1838_v14, %v1817_v32  ;;  %v1958_v32 = vstv %s4305_s30 }
 0x249   : > { %2059 = vrot.lane.b32.xlu1 %v2044_v44, %s4884_s22  ;;  %2109 = vrot.lane.b32.xlu0 %v2095_v20, %s4887_s14  ;;  %v1959_v12 = vmul.f32 %v1958_v32, %v3885_v24  ;;  %v1787_v24 = vmul.f32 %v1785_v39, %v3906_v46  ;;  %s3032_s22 = smov 96  }
 0x24b   : > { %v1598_v29 = vpop.permute.xlu1 %1597  ;;  %v1970_v33 = vpop.permute.xlu0 %1969 }
 0x24c   : > { %v4323_v23 = vadd.f32 %v1598_v29, %v1576_v53  ;;  %v1975_v13 = vadd.f32 %v1970_v33, %v1954_v25 }
 0x24d   : > { %1607 = vrot.lane.b32.xlu1 %v1592_v7, %s4887_s14 }
 0x24f   : > { %v1636_v48 = vpop.permute.xlu1 %1635  ;;  %v1980_v59 = vpop.permute.xlu0 %1979 }
 0x250   : > { %v1640_v55 = vadd.f32 %v1636_v48, %v1619_v56  ;;  %v1985_v26 = vadd.f32 %v1980_v59, %v1959_v12  ;;  %v1960_v12 = vmul.f32 %v1958_v32, %v4030_v34  ;;  %v3026_v32 = vmov 0  }
 0x251   : > { %1765 = vrot.lane.b32.xlu1 %v1757_v21, %s4887_s14  ;;  %2872 = vset.pattern.permute.xlu0 %v3026_v32 }
 0x252   : > { %2873 = vset.pattern.permute.xlu1 %v3026_v32 }
 0x253   : > { %v1646_v17 = vpop.permute.xlu1 %1645  ;;  %v1686_v36 = vpop.permute.xlu0 %1685 }
 0x254   : > { %v1650_v38 = vadd.f32 %v1646_v17, %v1624_v61  ;;  %v1691_v40 = vadd.f32 %v1686_v36, %v1665_v15 }
 0x255   : > { %1775 = vrot.lane.b32.xlu1 %v1760_v52, %s4887_s14 }
 0x257   : > { %v1804_v9 = vpop.permute.xlu1 %1803  ;;  %v1696_v53 = vpop.permute.xlu0 %1695 }
 0x258   : > { %v1808_v41 = vadd.f32 %v1804_v9, %v1787_v24  ;;  %v1701_v58 = vadd.f32 %v1696_v53, %v1675_v45 }
 0x259   : > { %1933 = vrot.lane.b32.xlu1 %v1925_v49, %s4887_s14 }
 0x25b   : > { %v1814_v63 = vpop.permute.xlu1 %1813  ;;  %v1854_v15 = vpop.permute.xlu0 %1853 }
 0x25c   : > { %v1818_v39 = vadd.f32 %v1814_v63, %v1792_v31  ;;  %v1859_v28 = vadd.f32 %v1854_v15, %v1833_v37 }
 0x25d   : > { %1943 = vrot.lane.b32.xlu1 %v1928_v43, %s4887_s14 }
 0x25f   : > { %v1662_v46 = vpop.permute.xlu1 %1661  ;;  %v1864_v54 = vpop.permute.xlu0 %1863 }
 0x260   : > { %v1666_v16 = vadd.f32 %v1662_v46, %v1640_v55  ;;  %v4363_v45 = vadd.f32 %v1864_v54, %v1843_v22 }
 0x261   : > { %2075 = vrot.lane.b32.xlu1 %v2067_v47, %s4886_s9 }
 0x263   : > { %v1672_v44 = vpop.permute.xlu1 %1671  ;;  %v1996_v37 = vpop.permute.xlu0 %1995 }
 0x264   : > { %v1676_v8 = vadd.f32 %v1672_v44, %v1650_v38  ;;  %v4369_v14 = vadd.f32 %v1996_v37, %v1975_v13  ;;  %v1955_v13 = vmul.f32 %v1953_v30, %v4013_v10 }
 0x265   : > { %2085 = vrot.lane.b32.xlu1 %v2070_v11, %s4886_s9 }
 0x267   : > { %v1830_v20 = vpop.permute.xlu1 %1829  ;;  %v2006_v22 = vpop.permute.xlu0 %2005 }
 0x268   : > { %v1834_v29 = vadd.f32 %v1830_v20, %v1808_v41  ;;  %v4375_v7 = vadd.f32 %v2006_v22, %v1985_v26 }
 0x269   : > { %2101 = vrot.lane.b32.xlu1 %v2093_v62, %s4887_s14 }
 0x26b   : > { %v1840_v25 = vpop.permute.xlu1 %1839  ;;  %v1712_v56 = vpop.permute.xlu0 %1711 }
 0x26c   : > { %v1844_v33 = vadd.f32 %v1840_v25, %v1818_v39  ;;  %v1717_v48 = vadd.f32 %v1712_v56, %v1691_v40 }
 0x26d   : > { %2111 = vrot.lane.b32.xlu1 %v2096_v35, %s4887_s14 }
 0x26f   : > { %v1972_v21 = vpop.permute.xlu1 %1971  ;;  %v1722_v55 = vpop.permute.xlu0 %1721 }
 0x270   : > { %v1976_v50 = vadd.f32 %v1972_v21, %v1955_v13  ;;  %v1727_v59 = vadd.f32 %v1722_v55, %v1701_v58  ;;  %v325_v55 = vmul.f32 0.00390625, %v3190_v4 }
 0x273   : > { %v1982_v61 = vpop.permute.xlu1 %1981  ;;  %v1880_v17 = vpop.permute.xlu0 %1879 }
 0x274   : > { %v1986_v26 = vadd.f32 %v1982_v61, %v1960_v12  ;;  %v1885_v52 = vadd.f32 %v1880_v17, %v1859_v28  ;;  %v326_v12 = vmul.f32 0.00390625, %v3194_v6 }
 0x277   : > { %v1688_v38 = vpop.permute.xlu1 %1687  ;;  %v1890_v36 = vpop.permute.xlu0 %1889 }
 0x278   : > { %v1692_v19 = vadd.f32 %v1688_v38, %v1666_v16  ;;  %v1895_v4 = vadd.f32 %v1890_v36, %v4363_v45 }
 0x27b   : > { %v1698_v24 = vpop.permute.xlu1 %1697  ;;  %v4385_v49 = vpop.permute.xlu0 %2021 }
 0x27c   : > { %v1702_v9 = vadd.f32 %v1698_v24, %v1676_v8  ;;  %v335_v24 = vld [vmem:[%s4820_s1 + $0x10] sm:$0xff] }
 0x27f   : > { %v1856_v41 = vpop.permute.xlu1 %1855  ;;  %v4387_v30 = vpop.permute.xlu0 %2031 }
 0x280   : > { %v1860_v10 = vadd.f32 %v1856_v41, %v1834_v29  ;;  %v2623_v41 = vld [vmem:[%s4820_s1 + $0x28] sm:$0xff] }
 0x283   : > { %v1866_v40 = vpop.permute.xlu1 %1865  ;;  %v1738_v34 = vpop.permute.xlu0 %1737 }
 0x284   : > { %v4389_v53 = vadd.f32 %v1866_v40, %v1844_v33  ;;  %v1743_v13 = vadd.f32 %v1738_v34, %v1717_v48 }
 0x287   : > { %v1998_v31 = vpop.permute.xlu1 %1997  ;;  %v1748_v63 = vpop.permute.xlu0 %1747 }
 0x288   : > { %v4391_v58 = vadd.f32 %v1998_v31, %v1976_v50  ;;  %v1753_v21 = vadd.f32 %v1748_v63, %v1727_v59 }
 0x28b   : > { %v2008_v43 = vpop.permute.xlu1 %2007  ;;  %v1906_v15 = vpop.permute.xlu0 %1905 }
 0x28c   : > { %v4393_v39 = vadd.f32 %v2008_v43, %v1986_v26 }
 0x28f   : > { %v1714_v28 = vpop.permute.xlu1 %1713  ;;  %v1916_v47 = vpop.permute.xlu0 %1915 }
 0x290   : > { %v4395_v46 = vadd.f32 %v1714_v28, %v1692_v19  ;;  %v327_v19 = vmul.f32 0.00390625, %v3188_v3  ;;  %v1921_v40 = vadd.f32 %v1916_v47, %v1895_v4  ;;  %v328_v28 = vmul.f32 0.00390625, %v3192_v5 }
 0x292   : > { %v339_v63 = vmul.f32 %v335_v24, %v327_v19 }
 0x293   : > { %v1724_v16 = vpop.permute.xlu1 %1723  ;;  %v4399_v44 = vpop.permute.xlu0 %2047 }
 0x294   : > { %v4397_v54 = vadd.f32 %v1724_v16, %v1702_v9  ;;  %v2622_v9 = vld [vmem:[%s4820_s1 + $0x20] sm:$0xff]  ;;  %v377_v16 = vmul.f32 %v2623_v41, %v326_v12 }
 0x295   : > { %v376_v43 = vmul.f32 %v2622_v9, %v325_v55 }
 0x296   : > { %v381_v5 = vsel %vm341_vm4, %v377_v16, 0.0  ;;  %v2132_v16 = vstv %s4469_s8 }
 0x297   : > { %v1882_v11 = vpop.permute.xlu1 %1881  ;;  %v4403_v37 = vpop.permute.xlu0 %2057 }
 0x298   : > { %v4401_v8 = vadd.f32 %v1882_v11, %v1860_v10  ;;  %v1911_v10 = vadd.f32 %v1906_v15, %v1885_v52  ;;  %v336_v11 = vld [vmem:[%s4820_s1 + $0x18] sm:$0xff] }
 0x29b   : > { %v4405_v20 = vpop.permute.xlu1 %1891  ;;  %v1606_v62 = vpop.permute.xlu0 %1605 }
 0x29c   : > { %v1611_v29 = vadd.f32 %v1606_v62, %v4183_v18  ;;  %v333_v18 = vld [vmem:[%s4820_s1] sm:$0xff]  ;;  %v2624_v62 = vld [vmem:[%s4820_s1 + $0x30] sm:$0xff] }
 0x29e   : > { %v1613_v25 = vadd.f32 %v1611_v29, %v4201_v57 }
 0x29f   : > { %v4408_v22 = vpop.permute.xlu1 %2023  ;;  %v1764_v35 = vpop.permute.xlu0 %1763 }
 0x2a0   : > { %v2121_v33 = vadd.f32 %v1613_v25, %v4043_v60  ;;  %v334_v60 = vld [vmem:[%s4820_s1 + $0x8] sm:$0xff]  ;;  %v1769_v57 = vadd.f32 %v1764_v35, %v1743_v13  ;;  %v345_v35 = vsel %vm341_vm4, %v339_v63, 0.0  ;;  %v340_v13 = vmul.f32 %v336_v11, %v328_v28 }
 0x2a1   : > { %v338_v17 = vmul.f32 %v334_v60, %v326_v12 }
 0x2a2   : > { %v4415_v50 = vadd.f32 %v2121_v33, %v3850_v27  ;;  %v337_v27 = vmul.f32 %v333_v18, %v325_v55  ;;  %v380_v33 = vsel %vm341_vm4, %v376_v43, 0.0  ;;  %v378_v55 = vmul.f32 %v2624_v62, %v327_v19 }
 0x2a3   : > { %v4412_v56 = vpop.permute.xlu1 %2033  ;;  %v1774_v61 = vpop.permute.xlu0 %1773  ;;  %v343_v36 = vsel %vm341_vm4, %v338_v17, 0.0  ;;  %v382_v18 = vadd.f32 %v381_v5, %v380_v33 }
 0x2a4   : > { %v1779_v26 = vadd.f32 %v1774_v61, %v1753_v21  ;;  %v342_v45 = vsel %vm341_vm4, %v337_v27, 0.0  ;;  %v2625_v61 = vld [vmem:[%s4820_s1 + $0x38] sm:$0xff]  ;;  %v2037_v27 = vadd.f32 %v4387_v30, %v4375_v7  ;;  %v383_v17 = vsel %vm341_vm4, %v378_v55, 0.0 }
 0x2a5   : > { %v344_v52 = vadd.f32 %v343_v36, %v342_v45  ;;  %v384_v19 = vadd.f32 %v383_v17, %v382_v18 }
 0x2a6   : > { %v1781_v59 = vadd.f32 %v1779_v26, %v1769_v57  ;;  %v347_v57 = vsel %vm341_vm4, %v340_v13, 0.0  ;;  %v2063_v9 = vadd.f32 %v4403_v37, %v2037_v27 }
 0x2a7   : > { %v4425_v48 = vpop.permute.xlu1 %1739  ;;  %v1932_v38 = vpop.permute.xlu0 %1931  ;;  %v346_v21 = vadd.f32 %v345_v35, %v344_v52 }
 0x2a8   : > { %v1937_v34 = vadd.f32 %v1932_v38, %v1911_v10  ;;  %v379_v38 = vmul.f32 %v2625_v61, %v328_v28 }
 0x2a9   : > { %v348_v26 = vadd.f32 %v347_v57, %v346_v21 }
 0x2ab   : > { %v4428_v6 = vpop.permute.xlu1 %1749  ;;  %v1942_v3 = vpop.permute.xlu0 %1941  ;;  %v349_v10 = vrot.slane %v348_v26, 4 }
 0x2ac   : > { %v1947_v32 = vadd.f32 %v1942_v3, %v1921_v40  ;;  %v1754_v62 = vadd.f32 %v4428_v6, %v4397_v54 }
 0x2ae   : > { %v1949_v15 = vadd.f32 %v1947_v32, %v1937_v34  ;;  %v350_v34 = vadd.f32 %v349_v10, %v348_v26  ;;  %v356_v26 = vstv %s355_s25  ;;  %v2038_v10 = vadd.f32 %v4412_v56, %v4393_v39  ;;  %v2627_v56 = vld [vmem:[%s4822_s3 + $0x20] sm:$0xff] }
 0x2af   : > { %v4442_v31 = vpop.permute.xlu1 %1907  ;;  %v2074_v47 = vpop.permute.xlu0 %2073 }
 0x2b0   : > { %v2123_v29 = vadd.f32 %v1949_v15, %v1781_v59  ;;  %v2027_v59 = vadd.f32 %v4385_v49, %v4369_v14  ;;  %v385_v49 = vsel %vm341_vm4, %v379_v38, 0.0  ;;  %v351_v52 = vrot.slane %v350_v34, 2 }
 0x2b1   : > { %v386_v30 = vadd.f32 %v385_v49, %v384_v19 }
 0x2b2   : > { %v2053_v24 = vadd.f32 %v4399_v44, %v2027_v59  ;;  %v352_v5 = vadd.f32 %v351_v52, %v350_v34 }
 0x2b3   : > { %v1918_v25 = vpop.permute.xlu1 %1917  ;;  %v2084_v12 = vpop.permute.xlu0 %2083  ;;  %v387_v63 = vrot.slane %v386_v30, 4 }
 0x2b4   : > { %v2079_v40 = vadd.f32 %v2074_v47, %v2053_v24  ;;  %v2089_v14 = vadd.f32 %v2084_v12, %v2063_v9  ;;  %v1744_v47 = vadd.f32 %v4425_v48, %v4395_v46  ;;  %v1896_v46 = vadd.f32 %v4405_v20, %v4389_v53 }
 0x2b5   : > { %v388_v35 = vadd.f32 %v387_v63, %v386_v30  ;;  %v353_v54 = vrot.slane %v352_v5, 1  ;;  %v394_v9 = vstv %s2626_s0 }
 0x2b6   : > { %v1922_v48 = vadd.f32 %v1918_v25, %v1896_v46  ;;  %v2028_v25 = vadd.f32 %v4408_v22, %v4391_v58 }
 0x2b7   : > { %v4457_v60 = vpop.permute.xlu1 %2049  ;;  %v2100_v4 = vpop.permute.xlu0 %2099  ;;  %v354_v57 = vadd.f32 %v353_v54, %v352_v5 }
 0x2b8   : > { %v2105_v45 = vadd.f32 %v2100_v4, %v2079_v40  ;;  %v2054_v49 = vadd.f32 %v4457_v60, %v2028_v25 }
 0x2b9   : > { %v357_v19 = vadd.f32 %v356_v26, %v354_v57 }
 0x2bb   : > { %v4467_v41 = vpop.permute.xlu1 %2059  ;;  %v2110_v7 = vpop.permute.xlu0 %2109 }
 0x2bc   : > { %v2115_v36 = vadd.f32 %v2110_v7, %v2089_v14  ;;  %v2064_v7 = vadd.f32 %v4467_v41, %v2038_v10 }
 0x2be   : > { %v2117_v37 = vadd.f32 %v2115_v36, %v2105_v45  ;;  %v329_v45 = vld [vmem:[%s4823_s4] sm:$0xff]  ;;  %v362_v36 = vld [vmem:[%s4822_s3 + $0x18] sm:$0xff] }
 0x2bf   : > { %v1608_v3 = vpop.permute.xlu1 %1607 }
 0x2c0   : > { %v1612_v44 = vadd.f32 %v1608_v3, %v4312_v0  ;;  %v2127_v43 = vadd.f32 %v2123_v29, %v2117_v37 }
 0x2c2   : > { %v1614_v32 = vadd.f32 %v1612_v44, %v4323_v23  ;;  %v2129_v15 = vadd.f32 %v2127_v43, %v4415_v50  ;;  %v389_v50 = vrot.slane %v388_v35, 2 }
 0x2c3   : > { %v1766_v28 = vpop.permute.xlu1 %1765 }
 0x2c4   : > { %v2122_v11 = vadd.f32 %v1614_v32, %v4161_v1  ;;  %v2133_v23 = vadd.f32 %v2132_v16, %v2129_v15  ;;  %v1770_v33 = vadd.f32 %v1766_v28, %v1744_v47  ;;  %v390_v6 = vadd.f32 %v389_v50, %v388_v35  ;;  %v332_v32 = vld [vmem:[%s4823_s4 + $0x18] sm:$0xff] }
 0x2c5   : > { %v2630_v28 = vld [vmem:[%s4822_s3 + $0x38] sm:$0xff] }
 0x2c6   : > { %v4482_v0 = vadd.f32 %v2122_v11, %v3993_v2  ;;  %v2764_v1 = vmul.f32 -1.442695, %v2133_v23  ;;  %v1912_v2 = vadd.f32 %v4442_v31, %v4401_v8  ;;  %v391_v27 = vrot.slane %v390_v6, 1  ;;  %v359_v31 = vld [vmem:[%s4822_s3] sm:$0xff] }
 0x2c7   : > { %v1776_v29 = vpop.permute.xlu1 %1775  ;;  %v4490_v8 = vmax.f32 %v357_v19, 0.0  ;;  %v330_v19 = vld [vmem:[%s4823_s4 + $0x8] sm:$0xff] }
 0x2c8   : > { %v1780_v13 = vadd.f32 %v1776_v29, %v1754_v62  ;;  %2874 = vpow2.f32 %v2764_v1  ;;  %v392_v53 = vadd.f32 %v391_v27, %v390_v6 }
 0x2c9   : > { %v363_v30 = vmul.f32 %v359_v31, %v4490_v8  ;;  %v366_v44 = vmul.f32 %v362_v36, %v4490_v8 }
 0x2ca   : > { %v1782_v21 = vadd.f32 %v1780_v13, %v1770_v33  ;;  %v395_v40 = vadd.f32 %v394_v9, %v392_v53  ;;  %v4897_v33 = vlaneseq  ;;  %v2628_v9 = vld [vmem:[%s4822_s3 + $0x28] sm:$0xff] }
 0x2cb   : > { %v1934_v55 = vpop.permute.xlu1 %1933  ;;  %v367_v34 = vadd.f32 %v363_v30, %v329_v45  ;;  %v370_v52 = vadd.f32 %v366_v44, %v332_v32 }
 0x2cc   : > { %v1938_v61 = vadd.f32 %v1934_v55, %v1912_v2  ;;  %v4508_v3 = vmax.f32 %v395_v40, 0.0  ;;  %vm4527_vm6 = vcmp.lt.s32.totalorder %v4897_v33, 16  ;;  %v331_v40 = vld [vmem:[%s4823_s4 + $0x10] sm:$0xff]  ;;  %vm4587_vm7 = vcmp.ge.s32.totalorder %v4897_v33, 16 }
 0x2cd   : > { %vm4592_vm8 = vcmp.lt.s32.totalorder %v4897_v33, 32  ;;  %vm4601_vm10 = vcmp.ge.s32.totalorder %v4897_v33, 32  ;;  %vm4606_vm11 = vcmp.lt.s32.totalorder %v4897_v33, 48  ;;  %vm4620_vm13 = vcmp.ge.s32.totalorder %v4897_v33, 48 }
 0x2ce   : > { %v402_v43 = vmul.f32 %v2627_v56, %v4508_v3  ;;  %v405_v62 = vmul.f32 %v2630_v28, %v4508_v3  ;;  %vm4859_vm9 = vmand %vm4587_vm7, %vm4592_vm8  ;;  %vm4625_vm14 = vcmp.lt.s32.totalorder %v4897_v33, 64  ;;  %vm4639_vm0 = vcmp.ge.s32.totalorder %v4897_v33, 64 }
 0x2cf   : > { %v1944_v12 = vpop.permute.xlu1 %1943  ;;  %vm4858_vm12 = vmand %vm4601_vm10, %vm4606_vm11  ;;  %vm4644_vm1 = vcmp.lt.s32.totalorder %v4897_v33, 80  ;;  %vm4658_vm3 = vcmp.ge.s32.totalorder %v4897_v33, 80  ;;  %vm4663_vm4 = vcmp.lt.s32.totalorder %v4897_v33, 96 }
 0x2d0   : > { %v1948_v18 = vadd.f32 %v1944_v12, %v1922_v48  ;;  %v406_v15 = vadd.f32 %v402_v43, %v367_v34  ;;  %v409_v23 = vadd.f32 %v405_v62, %v370_v52  ;;  %vm4856_vm15 = vmand %vm4620_vm13, %vm4625_vm14 }
 0x2d1   : > { %vm4857_vm2 = vmand %vm4639_vm0, %vm4644_vm1 }
 0x2d2   : > { %v1950_v59 = vadd.f32 %v1948_v18, %v1938_v61  ;;  %v2875_v4 = vpop.eup %2874  ;;  %v2631_v29 = vmul.f32 -1.442695, %v406_v15 }
 0x2d3   : > { %v2076_v17 = vpop.permute.xlu1 %2075  ;;  %v2141_v24 = vadd.f32 1.0, %v2875_v4 }
 0x2d4   : > { %v2124_v38 = vadd.f32 %v1950_v59, %v1782_v21  ;;  %v2080_v58 = vadd.f32 %v2076_v17, %v2054_v49  ;;  %v360_v59 = vld [vmem:[%s4822_s3 + $0x8] sm:$0xff]  ;;  %v403_v49 = vmul.f32 %v2628_v9, %v4508_v3 }
 0x2d5   : > { %2876 = vrcp.f32 %v2141_v24  ;;  %v361_v24 = vld [vmem:[%s4822_s3 + $0x10] sm:$0xff] }
 0x2d6   : > { %v365_v31 = vmul.f32 %v361_v24, %v4490_v8 }
 0x2d7   : > { %v2086_v20 = vpop.permute.xlu1 %2085 }
 0x2d8   : > { %v2090_v22 = vadd.f32 %v2086_v20, %v2064_v7  ;;  %v2629_v7 = vld [vmem:[%s4822_s3 + $0x30] sm:$0xff] }
 0x2d9   : > { %v404_v36 = vmul.f32 %v2629_v7, %v4508_v3 }
 0x2db   : > { %v2102_v14 = vpop.permute.xlu1 %2101 }
 0x2dc   : > { %v2106_v60 = vadd.f32 %v2102_v14, %v2080_v58 }
 0x2df   : > { %v2112_v39 = vpop.permute.xlu1 %2111  ;;  %v2877_v37 = vpop.eup %2876 }
 0x2e0   : > { %v2116_v41 = vadd.f32 %v2112_v39, %v2090_v22  ;;  %2148 = vst.msk [vmem:[#allocation4] sm:$0xff] %vm2147_vm5, %v2877_v37 }
 0x2e2   : > { %v2118_v63 = vadd.f32 %v2116_v41, %v2106_v60 }
 0x2e4   : > { %v2128_v11 = vadd.f32 %v2124_v38, %v2118_v63  ;;  %v364_v38 = vmul.f32 %v360_v59, %v4490_v8  ;;  %v369_v8 = vadd.f32 %v365_v31, %v331_v40  ;;  %v2493_v40 = vsub.s32 1, %v3178_v42 }
 0x2e6   : > { %v2130_v47 = vadd.f32 %v2128_v11, %v4482_v0  ;;  %v2634_v0 = vmul.f32 -1.442695, %v409_v23  ;;  %v368_v25 = vadd.f32 %v364_v38, %v330_v19  ;;  %v408_v58 = vadd.f32 %v404_v36, %v369_v8  ;;  %v2899_v8 = vld [vmem:[%s3167_s15 + $0x8] sm:$0xff]  ;;  %v2900_v36 = vld [vmem:[%s3167_s15 + $0x30] sm:$0xff] }
 0x2e7   : > { %v2766_v1 = vld.sshfl [vmem:[#allocation4 + $0x1] sm:$0x1 pattern:$0x75316420]  ;;  %v2150_v50 = vld [vmem:[#allocation4] sm:$0x1] }
 0x2e8   : > { %v2134_v35 = vadd.f32 %v2132_v16, %v2130_v47  ;;  %v2169_v21 = vrot.slane %v2766_v1, %v3181_v51  ;;  %v2767_v55 = vld.sshfl [vmem:[#allocation4 + $0x2] sm:$0x1 pattern:$0x75316420]  ;;  %2153 = vst.msk [vmem:[#allocation5] sm:$0x1] %vm4527_vm6, %v2150_v50  ;;  %v407_v30 = vadd.f32 %v403_v49, %v368_v25 }
 0x2e9   : > { %v2192_v16 = vrot.slane %v2767_v55, %v3181_v51  ;;  %v2768_v46 = vld.sshfl [vmem:[#allocation4 + $0x3] sm:$0x1 pattern:$0x75316420]  ;;  %v2633_v34 = vmul.f32 -1.442695, %v408_v58 }
 0x2ea   : > { %v2765_v5 = vmul.f32 -1.442695, %v2134_v35  ;;  %2170 = vrot.lane.b32.xlu0 %v2169_v21, %s3027_s10  ;;  %v2215_v54 = vrot.slane %v2768_v46, %v3181_v51  ;;  %v2769_v2 = vld.sshfl [vmem:[#allocation4 + $0x4] sm:$0x1 pattern:$0x75316420] }
 0x2eb   : > { %v2238_v61 = vrot.slane %v2769_v2, %v3181_v51  ;;  %v2770_v18 = vld.sshfl [vmem:[#allocation4 + $0x5] sm:$0x1 pattern:$0x75316420]  ;;  %v2632_v22 = vmul.f32 -1.442695, %v407_v30 }
 0x2ec   : > { %2878 = vpow2.f32 %v2765_v5  ;;  %v2261_v27 = vrot.slane %v2770_v18, %v3181_v51  ;;  %v2771_v17 = vld.sshfl [vmem:[#allocation4 + $0x6] sm:$0x1 pattern:$0x75316420]  ;;  %v2898_v49 = vld [vmem:[%s3167_s15] sm:$0xff] }
 0x2ed   : > { %2880 = vpow2.f32 %v2631_v29  ;;  %v2284_v53 = vrot.slane %v2771_v17, %v3181_v51  ;;  %v2772_v20 = vld.sshfl [vmem:[#allocation4 + $0x7] sm:$0x1 pattern:$0x75316420] }
 0x2ee   : > { %2882 = vpow2.f32 %v2634_v0  ;;  %2193 = vrot.lane.b32.xlu0 %v2192_v16, %s3028_s2  ;;  %v2307_v14 = vrot.slane %v2772_v20, %v3181_v51 }
 0x2f2   : > { %2216 = vrot.lane.b32.xlu0 %v2215_v54, %s3029_s5 }
 0x2f6   : > { %v2879_v48 = vpop.eup %2878  ;;  %2239 = vrot.lane.b32.xlu0 %v2238_v61, %s3030_s17 }
 0x2f7   : > { %v2881_v6 = vpop.eup %2880  ;;  %v2142_v12 = vadd.f32 1.0, %v2879_v48 }
 0x2f8   : > { %v422_v57 = vadd.f32 1.0, %v2881_v6  ;;  %v2883_v26 = vpop.eup %2882 }
 0x2f9   : > { %2884 = vrcp.f32 %v2142_v12  ;;  %v425_v4 = vadd.f32 1.0, %v2883_v26  ;;  %v4922_v26 = vmov 0 }
 0x2fa   : > { %2262 = vrot.lane.b32.xlu0 %v2261_v27, %s3031_s28  ;;  %2886 = vrcp.f32 %v422_v57 }
 0x2fb   : > { %2888 = vrcp.f32 %v425_v4 }
 0x2fc   : > { %2890 = vpow2.f32 %v2632_v22  ;;  %v2901_v22 = vld [vmem:[%s3167_s15 + $0x38] sm:$0xff] }
 0x2fd   : > { %2892 = vpow2.f32 %v2633_v34 }
 0x2fe   : > { %2285 = vrot.lane.b32.xlu0 %v2284_v53, %s3032_s22 }
 0x302   : > { %2308 = vrot.lane.b32.xlu0 %v2307_v14, %s3033_s16 }
 0x303   : > { %v2885_v10 = vpop.eup %2884 }
 0x304   : > { %2149 = vst.msk [vmem:[#allocation4 + $0x8] sm:$0xff] %vm2147_vm5, %v2885_v10  ;;  %v2887_v45 = vpop.eup %2886  ;;  %vm4860_vm5 = vmand %vm4658_vm3, %vm4663_vm4  ;;  %v2489_v10 = vsub.s32 0, %v3178_v42 }
 0x305   : > { %v2889_v60 = vpop.eup %2888 }
 0x306   : > { %2460 = vperm.xlu0 %2872, %v2887_v45   ;;  %v2891_v43 = vpop.eup %2890 }
 0x307   : > { %v423_v52 = vadd.f32 1.0, %v2891_v43  ;;  %v2893_v15 = vpop.eup %2892 }
 0x308   : > { %v424_v35 = vadd.f32 1.0, %v2893_v15  ;;  %v2904_v15 = vld [vmem:[%s3167_s15 + $0x20] sm:$0xff] }
 0x309   : > { %2894 = vrcp.f32 %v423_v52 }
 0x30a   : > { %2475 = vperm.xlu0 %2872, %v2889_v60   ;;  %2896 = vrcp.f32 %v424_v35 }
 0x30b   : > { %v2773_v39 = vld.sshfl [vmem:[#allocation4 + $0x9] sm:$0x1 pattern:$0x75316420]  ;;  %v2315_v56 = vld [vmem:[#allocation4 + $0x8] sm:$0x1] }
 0x30c   : > { %v2332_v41 = vrot.slane %v2773_v39, %v3181_v51  ;;  %2316 = vst.msk [vmem:[#allocation5 + $0x1] sm:$0x1] %vm4527_vm6, %v2315_v56  ;;  %v2774_v44 = vld.sshfl [vmem:[#allocation4 + $0xa] sm:$0x1 pattern:$0x75316420] }
 0x30d   : > { %v2352_v37 = vrot.slane %v2774_v44, %v3181_v51  ;;  %v2775_v3 = vld.sshfl [vmem:[#allocation4 + $0xb] sm:$0x1 pattern:$0x75316420]  ;;  %vm4677_vm6 = vcmp.ge.s32.totalorder %v4897_v33, 96 }
 0x30e   : > { %2333 = vrot.lane.b32.xlu1 %v2332_v41, %s3027_s10  ;;  %v2372_v32 = vrot.slane %v2775_v3, %v3181_v51  ;;  %v2776_v63 = vld.sshfl [vmem:[#allocation4 + $0xc] sm:$0x1 pattern:$0x75316420]  ;;  %v2902_v3 = vld [vmem:[%s3167_s15 + $0x10] sm:$0xff] }
 0x30f   : > { %v2392_v28 = vrot.slane %v2776_v63, %v3181_v51  ;;  %v2777_v11 = vld.sshfl [vmem:[#allocation4 + $0xd] sm:$0x1 pattern:$0x75316420]  ;;  %v2903_v63 = vld [vmem:[%s3167_s15 + $0x18] sm:$0xff] }
 0x310   : > { %v2412_v47 = vrot.slane %v2777_v11, %v3181_v51  ;;  %v2778_v62 = vld.sshfl [vmem:[#allocation4 + $0xe] sm:$0x1 pattern:$0x75316420] }
 0x311   : > { %v2432_v23 = vrot.slane %v2778_v62, %v3181_v51  ;;  %v2779_v29 = vld.sshfl [vmem:[#allocation4 + $0xf] sm:$0x1 pattern:$0x75316420]  ;;  %v2905_v62 = vld [vmem:[%s3167_s15 + $0x28] sm:$0xff]  ;;  %s3034_s15 = smov [#allocation12]  }
 0x312   : > { %2353 = vrot.lane.b32.xlu1 %v2352_v37, %s3028_s2  ;;  %v2452_v13 = vrot.slane %v2779_v29, %v3181_v51  ;;  %s2786_s2 = sshll.u32 %s3100_s6, 10  ;;  %s4777_s6 = scalar_lea.sflag [#allocation8], %s297_s26 }
 0x313   : > { %v2895_v5 = vpop.eup %2894  ;;  %s4771_s21 = scalar_lea.hbm %s4826_s7, %s2786_s2  ;;  %s2940_s8 = sshll.u32 %s3034_s15, 4  ;;  %s2941_s8 = int_to_ptr.vmem [resolvable:$false] %s2940_s8 }
 0x314   : > { %v2897_v1 = vpop.eup %2896  ;;  %s2942_s25 = scalar_lea.vmem %s2941_s8, 2048 }
 0x316   : > { %2373 = vrot.lane.b32.xlu1 %v2372_v32, %s3029_s5  ;;  %s2527_s5 = sshll.u32 %s299_s13, 4  ;;  %s4773_s5 = int_to_ptr.vmem [resolvable:$true] %s2527_s5 }
 0x317   : > { %p2943_p8 = scmp.lt.s32.totalorder %s4773_s5, %s2941_s8 }
 0x31a   : > { %2393 = vrot.lane.b32.xlu1 %v2392_v28, %s3030_s17 }
 0x31e   : > { %2413 = vrot.lane.b32.xlu1 %v2412_v47, %s3031_s28  ;;  %s2936_s28 = scalar_lea.vmem %s4773_s5, 1024 }
 0x31f   : > { %p2937_p10 = scmp.ne.s32.totalorder %s4773_s5, %s2936_s28  ;;  %p2944_p11 = scmp.lt.s32.totalorder %s2942_s25, %s2936_s28 }
 0x321   : > { %p2938_p0 = pnand %p2937_p10, %p4936_p12  ;;  %p2945_p13 = por %p2944_p11, %p2943_p8 }
 0x322   : > { %2433 = vrot.lane.b32.xlu1 %v2432_v23, %s3032_s22 }
 0x323   : > { %p2939_p7 = pneg %p2938_p0 }
 0x325   : > { %p2946_p1 = pnand %p2945_p13, %p2939_p7 }
 0x326   : > { %2453 = vrot.lane.b32.xlu1 %v2452_v13, %s3033_s16 }
 0x32a   : > { %2465 = vperm.xlu1 %2873, %v2895_v5  }
 0x32e   : > { %2470 = vperm.xlu1 %2873, %v2897_v1  }
 0x35c   : > { %v2171_v0 = vpop.permute.xlu0 %2170 }
 0x35d   : > { %2176 = vst.msk [vmem:[#allocation5] sm:$0x1] %vm4859_vm9, %v2171_v0  ;;  %vm4701_vm9 = vcmp.lt.s32.totalorder %v4897_v33, 128 }
 0x360   : > { %v2194_v54 = vpop.permute.xlu0 %2193 }
 0x361   : > { %2199 = vst.msk [vmem:[#allocation5] sm:$0x1] %vm4858_vm12, %v2194_v54  ;;  %vm4696_vm12 = vcmp.ge.s32.totalorder %v4897_v33, 112 }
 0x364   : > { %v2217_v6 = vpop.permute.xlu0 %2216 }
 0x365   : > { %2222 = vst.msk [vmem:[#allocation5] sm:$0x1] %vm4856_vm15, %v2217_v6  ;;  %vm4682_vm15 = vcmp.lt.s32.totalorder %v4897_v33, 112 }
 0x366   : > { %v4923_v26 = vsel %vm4682_vm15, 4294967295, %v4922_v26 }
 0x368   : > { %v2240_v18 = vpop.permute.xlu0 %2239 }
 0x369   : > { %2245 = vst.msk [vmem:[#allocation5] sm:$0x1] %vm4857_vm2, %v2240_v18  ;;  %vm4862_vm2 = vmand %vm4677_vm6, %vm4682_vm15 }
 0x36a   : > { %vm4928_vm15 = vmand %vm4587_vm7, %vm4592_vm8 }
 0x36b   : > { %vm4931_vm7 = vmand %vm4639_vm0, %vm4644_vm1 }
 0x36c   : > { %v2263_v59 = vpop.permute.xlu0 %2262  ;;  %vm4932_vm8 = vmand %vm4658_vm3, %vm4663_vm4 }
 0x36d   : > { %2268 = vst.msk [vmem:[#allocation5] sm:$0x1] %vm4860_vm5, %v2263_v59  ;;  %vm4863_vm5 = vmand %vm4696_vm12, %vm4701_vm9 }
 0x370   : > { %v2286_v38 = vpop.permute.xlu0 %2285 }
 0x371   : > { %2291 = vst.msk [vmem:[#allocation5] sm:$0x1] %vm4862_vm2, %v2286_v38  ;;  %vm4929_vm2 = vmand %vm4601_vm10, %vm4606_vm11  ;;  %vm4933_vm10 = vnez %v4923_v26 }
 0x372   : > { %vm4934_vm11 = vmand %vm4677_vm6, %vm4933_vm10 }
 0x374   : > { %v2309_v4 = vpop.permute.xlu0 %2308 }
 0x375   : > { %2314 = vst.msk [vmem:[#allocation5] sm:$0x1] %vm4863_vm5, %v2309_v4  ;;  %vm4930_vm5 = vmand %vm4620_vm13, %vm4625_vm14 }
 0x376   : > { %vm4935_vm13 = vmand %vm4696_vm12, %vm4701_vm9 }
 0x380   : > { %v2334_v33 = vpop.permute.xlu1 %2333 }
 0x381   : > { %2336 = vst.msk [vmem:[#allocation5 + $0x1] sm:$0x1] %vm4928_vm15, %v2334_v33 }
 0x384   : > { %v2354_v19 = vpop.permute.xlu1 %2353 }
 0x385   : > { %2356 = vst.msk [vmem:[#allocation5 + $0x1] sm:$0x1] %vm4929_vm2, %v2354_v19  ;;  %v2461_v31 = vpop.permute.xlu0 %2460 }
 0x386   : > { %v2478_v7 = vmul.f32 %v2898_v49, %v2461_v31  ;;  %v2479_v30 = vmul.f32 %v2899_v8, %v2461_v31 }
 0x388   : > { %v2374_v24 = vpop.permute.xlu1 %2373 }
 0x389   : > { %2376 = vst.msk [vmem:[#allocation5 + $0x1] sm:$0x1] %vm4930_vm5, %v2374_v24  ;;  %v2476_v14 = vpop.permute.xlu0 %2475 }
 0x38a   : > { %v2484_v58 = vmul.f32 %v2900_v36, %v2476_v14  ;;  %v2485_v39 = vmul.f32 %v2901_v22, %v2476_v14 }
 0x38c   : > { %v2394_v53 = vpop.permute.xlu1 %2393 }
 0x38d   : > { %2396 = vst.msk [vmem:[#allocation5 + $0x1] sm:$0x1] %vm4931_vm7, %v2394_v53 }
 0x390   : > { %v2414_v20 = vpop.permute.xlu1 %2413 }
 0x391   : > { %2416 = vst.msk [vmem:[#allocation5 + $0x1] sm:$0x1] %vm4932_vm8, %v2414_v20 }
 0x394   : > { %v2434_v9 = vpop.permute.xlu1 %2433 }
 0x395   : > { %2436 = vst.msk [vmem:[#allocation5 + $0x1] sm:$0x1] %vm4934_vm11, %v2434_v9 }
 0x398   : > { %v2454_v25 = vpop.permute.xlu1 %2453 }
 0x399   : > { %2456 = vst.msk [vmem:[#allocation5 + $0x1] sm:$0x1] %vm4935_vm13, %v2454_v25 }
 0x3a0   : > { %v2457_v45 = vld [vmem:[#allocation5] sm:$0x3] }
 0x3a1   : > { %v2490_v56 = vrot.slane %v2457_v45, %v2489_v10  ;;  %v2494_v60 = vrot.slane %v2457_v45, %v2493_v40 }
 0x3a3   : > { %v2497_v41 = vmul.f32 %v2490_v56, %v2478_v7  ;;  %v2498_v44 = vmul.f32 %v2494_v60, %v2479_v30  ;;  %v2503_v42 = vmul.f32 %v2490_v56, %v2484_v58  ;;  %v2504_v34 = vmul.f32 %v2494_v60, %v2485_v39 }
 0x3a5   : > { %2505 = vst [vmem:[%s299_s13] sm:$0xff] %v2497_v41  ;;  %2506 = vst [vmem:[%s299_s13 + $0x8] sm:$0xff] %v2498_v44 }
 0x3a6   : > { %2511 = vst [vmem:[%s299_s13 + $0x30] sm:$0xff] %v2503_v42  ;;  %2512 = vst [vmem:[%s299_s13 + $0x38] sm:$0xff] %v2504_v34 }
 0x3a9   : > { %v2466_v37 = vpop.permute.xlu1 %2465 }
 0x3aa   : > { %v2480_v32 = vmul.f32 %v2902_v3, %v2466_v37  ;;  %v2481_v43 = vmul.f32 %v2903_v63, %v2466_v37 }
 0x3ac   : > { %v2499_v28 = vmul.f32 %v2490_v56, %v2480_v32  ;;  %v2500_v11 = vmul.f32 %v2494_v60, %v2481_v43 }
 0x3ad   : > { %v2471_v52 = vpop.permute.xlu1 %2470 }
 0x3ae   : > { %2507 = vst [vmem:[%s299_s13 + $0x10] sm:$0xff] %v2499_v28  ;;  %2508 = vst [vmem:[%s299_s13 + $0x18] sm:$0xff] %v2500_v11  ;;  %v2482_v47 = vmul.f32 %v2904_v15, %v2471_v52  ;;  %v2483_v35 = vmul.f32 %v2905_v62, %v2471_v52 }
 0x3b0   : > { %v2501_v23 = vmul.f32 %v2490_v56, %v2482_v47  ;;  %v2502_v29 = vmul.f32 %v2494_v60, %v2483_v35 }
 0x3b2   : > { %2509 = vst [vmem:[%s299_s13 + $0x20] sm:$0xff] %v2501_v23  ;;  %2510 = vst [vmem:[%s299_s13 + $0x28] sm:$0xff] %v2502_v29 }
 0x3b3   : > { %2949 = shalt.err (!%p2946_p1)
}
 0x3b4   : > { %s2950_s0 = scalar_lea.hbm %s4771_s21, 1024  ;;  %s2954_s30 = scalar_lea.hbm %s4826_s7, 2048 }
 0x3b5   : > { %p2951_p2 = scmp.ne.s32.totalorder %s4771_s21, %s2950_s0  ;;  %p2955_p9 = scmp.lt.u32.totalorder %s4771_s21, %s4826_s7 }
 0x3b6   : > { %p2956_p5 = scmp.lt.u32.totalorder %s2954_s30, %s2950_s0  ;;  %p2958_p10 = scmp.lt.u32.totalorder %s2950_s0, %s4771_s21 }
 0x3b7   : > { %p2952_p3 = pnand %p2951_p2, %p4936_p12 }
 0x3b8   : > { %p2957_p6 = por %p2956_p5, %p2955_p9 }
 0x3b9   : > { %p2953_p4 = pneg %p2952_p3 }
 0x3ba   : > { %p2959_p0 = por %p2958_p10, %p2957_p6 }
 0x3bc   : > { %p2960_p7 = pnand %p2959_p0, %p2953_p4 }
 0x3be   : > { %2963 = shalt.err (!%p2960_p7)
}
 0x3bf   : > { %s3035_s14 = smov 256  }
 0x3c0   : > { %2795 = dma.vmem_to_hbm [thread:$0]  (%p4936_p12), %s4773_s5, 1024, %s4771_s21, %s4777_s6, %s3035_s14, %s3035_s14, %s3027_s10  }
 0x3c1 PF: > { %s4937_s23 = sld [smem:[#allocation16_spill]]  ;;  %s4938_s18 = sld [smem:[#allocation20_spill]] }
 0x3c2   : > { %p2812_p8 = scmp.ge.s32.totalorder %s3006_s29, 2 }
 0x3c7   : > { %s2542_s16 = sand.u32 1, %s4937_s23   ;;  %p4939_p11 = scmp.ne.s32.totalorder %s4938_s18, 0 }
 0x3c8   : > { %s2543_s26 = scalar_lea.sflag [#allocation8], %s2542_s16 }
 0x3c9   : > { %p2805_p13 = pnand %p2812_p8, %p4939_p11 }
 0x3cb   : > { %2989 = dma.done.wait (!%p2805_p13), %s2543_s26, 1024  }
 0x3cc   : > { %2991 = vsyncadd (!%p2805_p13), %s2543_s26, 4294966272  ;;  %s4940_s29 = sld [smem:[#allocation18_spill]]  ;;  %s4941_s11 = sld [smem:[#allocation17_spill]] }
 0x3cd   : > { %s4942_s28 = sld [smem:[#allocation19_spill]]  ;;  %s4943_s26 = smov %s2998_s27 }
 0x3d2   : > { %p20_p1 = scmp.ge.s32.totalorder %s4940_s29, 4   ;;  %s4944_s27 = smov %s4941_s11 }
 0x3d4   :  { %22 = sbr.rel (!%p20_p1) target bundleno = 10 (0xa), region = 96 }
 0x3db   :  { %2548 = vsyncpa [#allocation8], 1 }
 0x3dc   :  { %2550 = vsyncpa [#allocation8 + $0x1], 1 }
 0x3dd   :  { %2551 = vsyncpa [#allocation9], 1 }
 0x3de   :  { %2553 = vsyncpa [#allocation9 + $0x1], 1 }
 0x3df   :  { %2554 = vsyncpa [#allocation11], 1 }

</bundles_post_ra>
